<compile_context>
chip_gen: v5e
topology: v5e:2x2
jax: 0.10.0
libtpu: 0.0.40
codegen_flags: <defaults>
</compile_context>

<pallas_src>
import functools
import math

import jax
import jax.numpy as jnp
from jax.experimental import pallas as pl
from jax.experimental.pallas import tpu as pltpu


def _round_up(x, m):
    return ((x + m - 1) // m) * m


def _pad_same(k, stride):
    # timm get_padding(kernel_size, stride, dilation=1)
    return ((stride - 1) + (k - 1)) // 2


def _pick_vmem_limit():
    """Generation-aware scoped-VMEM limit (v7x has 64 MiB physical per TC)."""
    try:
        cap = getattr(pltpu.get_tpu_info(), "vmem_capacity_bytes", None)
    except Exception:
        cap = None
    if cap is None:
        return 48 * 1024 * 1024
    if cap <= 64 * 1024 * 1024:          # v7x
        return 32 * 1024 * 1024
    return 64 * 1024 * 1024              # v5e / v6e (128 MiB physical)


_VMEM_LIMIT = _pick_vmem_limit()


# ----------------------------- fused tiled matmul -----------------------------

def _fmm_kernel(*refs, nk, act, has_shortcut):
    x_ref, w_ref, b_ref = refs[0], refs[1], refs[2]
    shortcut_ref = refs[3] if has_shortcut else None
    o_ref, acc_ref = refs[-2], refs[-1]

    kstep = pl.program_id(2)

    @pl.when(kstep == 0)
    def _():
        acc_ref[...] = jnp.zeros_like(acc_ref)

    acc_ref[...] += jnp.dot(x_ref[...], w_ref[...],
                            preferred_element_type=jnp.float32)

    @pl.when(kstep == nk - 1)
    def _():
        y = acc_ref[...] + b_ref[...]
        if act == "silu":
            y = y * jax.nn.sigmoid(y)
        elif act == "sigmoid":
            y = jax.nn.sigmoid(y)
        if has_shortcut:
            y = y + shortcut_ref[...].astype(jnp.float32)
        o_ref[...] = y.astype(o_ref.dtype)


@functools.partial(jax.jit, static_argnames=("act", "out_dtype", "in_dtype"))
def fused_matmul(x, w, b, *, act="none", shortcut=None,
                 out_dtype=jnp.bfloat16, in_dtype=jnp.bfloat16):
    """(M, K) @ (K, N) + b with fused activation / residual.

    Callers flatten batch into M so the MXU M dimension is well filled.
    K padded to a 128 multiple and tiled when large; N tiled (512/256) when it
    is a large aligned multiple (lane-dense stores, small f32 accumulator)."""
    M, K = x.shape
    N = w.shape[1]

    Kp = _round_up(K, 128)
    kt = Kp if Kp <= 2048 else 1024      # all large K here (3072) divide 1024
    Kp = _round_up(Kp, kt)
    nk = Kp // kt

    mt = min(256, _round_up(M, 16))
    Mp = _round_up(M, mt)

    if N % 512 == 0 and N > 512:
        nt = 512
    elif N % 256 == 0 and N > 1024:
        nt = 256
    else:
        nt = N
    n_tiles = N // nt

    x = x.astype(in_dtype)
    w = w.astype(in_dtype)
    if Kp != K:
        x = jnp.pad(x, ((0, 0), (0, Kp - K)))
        w = jnp.pad(w, ((0, Kp - K), (0, 0)))
    if Mp != M:
        x = jnp.pad(x, ((0, Mp - M), (0, 0)))

    inputs = [x, w, b.reshape(1, N).astype(jnp.float32)]
    in_specs = [
        pl.BlockSpec((mt, kt), lambda mm, nn, kk: (mm, kk)),
        pl.BlockSpec((kt, nt), lambda mm, nn, kk: (kk, nn)),
        pl.BlockSpec((1, nt), lambda mm, nn, kk: (0, nn)),
    ]
    has_shortcut = shortcut is not None
    if has_shortcut:
        sc = shortcut.astype(jnp.bfloat16)
        if Mp != M:
            sc = jnp.pad(sc, ((0, Mp - M), (0, 0)))
        inputs.append(sc)
        in_specs.append(pl.BlockSpec((mt, nt), lambda mm, nn, kk: (mm, nn)))

    cost = pl.CostEstimate(
        flops=2 * Mp * Kp * N,
        transcendentals=(Mp * N if act in ("silu", "sigmoid") else 0),
        bytes_accessed=2 * (Mp * Kp + Kp * N + 2 * Mp * N),
    )

    out = pl.pallas_call(
        functools.partial(_fmm_kernel, nk=nk, act=act, has_shortcut=has_shortcut),
        grid=(Mp // mt, n_tiles, nk),
        in_specs=in_specs,
        out_specs=pl.BlockSpec((mt, nt), lambda mm, nn, kk: (mm, nn)),
        out_shape=jax.ShapeDtypeStruct((Mp, N), out_dtype),
        scratch_shapes=[pltpu.VMEM((mt, nt), jnp.float32)],
        compiler_params=pltpu.CompilerParams(
            dimension_semantics=("parallel", "parallel", "arbitrary"),
            vmem_limit_bytes=_VMEM_LIMIT),
        cost_estimate=cost,
    )(*inputs)
    if Mp != M:
        out = out[:M]
    return out


@functools.partial(jax.jit, static_argnames=("act",))
def conv1x1(x, w, b, *, act, shortcut=None):
    """Pointwise conv (BN folded) as a batch-flattened fused matmul."""
    n, h, wd, cin = x.shape
    cout = w.shape[1]
    xm = x.reshape(n * h * wd, cin)
    sc = None if shortcut is None else shortcut.reshape(n * h * wd, cout)
    y = fused_matmul(xm, w, b, act=act, shortcut=sc)
    return y.reshape(n, h, wd, cout)


@jax.jit
def linear(x, w, b):
    """Classifier head (N, F) @ (F, D) + b, kept in f32."""
    return fused_matmul(x, w, b, act="none",
                        out_dtype=jnp.float32, in_dtype=jnp.float32)


# --------------------- standard kxk conv (in-kernel taps) ----------------------

def _phase_split(xp, stride):
    """Stride-s conv -> s*s stride-1 phases (host-side, one cheap copy)."""
    if stride == 1:
        return [xp]
    return [xp[:, a::stride, b::stride, :]
            for a in range(stride) for b in range(stride)]


def _convk_kernel(*refs, k, stride, act, has_shortcut, ho, wo):
    nphase = stride * stride
    x_refs = refs[:nphase]
    w_ref = refs[nphase]
    b_ref = refs[nphase + 1]
    shortcut_ref = refs[nphase + 2] if has_shortcut else None
    o_ref = refs[-1]

    cin = x_refs[0].shape[3]
    cout = o_ref.shape[2]

    acc = jnp.zeros((ho * wo, cout), jnp.float32)
    for di in range(k):
        for dj in range(k):
            pref = x_refs[(di % stride) * stride + (dj % stride)]
            tap = pref[0, pl.ds(di // stride, ho), pl.ds(dj // stride, wo), :]
            acc = acc + jnp.dot(tap.reshape(ho * wo, cin), w_ref[di * k + dj],
                                preferred_element_type=jnp.float32)
    y = acc + b_ref[...]
    if act == "silu":
        y = y * jax.nn.sigmoid(y)
    if has_shortcut:
        y = y + shortcut_ref[0].astype(jnp.float32)
    o_ref[0] = y.astype(o_ref.dtype)


@functools.partial(jax.jit, static_argnames=("k", "stride", "act"))
def conv2d_kxk(x, w, b, *, k, stride, act="silu", shortcut=None):
    """Standard kxk conv (BN folded): the k*k taps are accumulated in-kernel
    (no HBM im2col); bias / SiLU / residual fused into the epilogue."""
    n, h, wdt, cin = x.shape
    cout = w.shape[-1]
    pad = _pad_same(k, stride)
    ho = (h + 2 * pad - k) // stride + 1
    wo = (wdt + 2 * pad - k) // stride + 1
    wo_p = _round_up(wo, 8)              # sublane-aligned in-kernel flatten
    halo = (k - 1) // stride
    hp = max(_round_up(h + 2 * pad, stride), stride * (ho + halo))
    wp = max(_round_up(wdt + 2 * pad, stride), stride * (wo_p + halo))

    xp = jnp.pad(x.astype(jnp.bfloat16),
                 ((0, 0), (pad, hp - h - pad), (pad, wp - wdt - pad), (0, 0)))
    phases = _phase_split(xp, stride)
    hh, wh = hp // stride, wp // stride

    wk = w.reshape(k * k, cin, cout).astype(jnp.bfloat16)
    inputs = list(phases) + [wk, b.reshape(1, cout).astype(jnp.float32)]
    in_specs = ([pl.BlockSpec((1, hh, wh, cin), lambda nn: (nn, 0, 0, 0))]
                * len(phases)
                + [pl.BlockSpec((k * k, cin, cout), lambda nn: (0, 0, 0)),
                   pl.BlockSpec((1, cout), lambda nn: (0, 0))])
    has_shortcut = shortcut is not None
    if has_shortcut:
        sc = shortcut.astype(jnp.bfloat16)
        if wo_p != wo:
            sc = jnp.pad(sc, ((0, 0), (0, 0), (0, wo_p - wo), (0, 0)))
        inputs.append(sc.reshape(n, ho * wo_p, cout))
        in_specs.append(pl.BlockSpec((1, ho * wo_p, cout), lambda nn: (nn, 0, 0)))

    cost = pl.CostEstimate(
        flops=2 * n * ho * wo_p * k * k * cin * cout,
        transcendentals=(n * ho * wo_p * cout if act == "silu" else 0),
        bytes_accessed=2 * n * (hp * wp * cin + 2 * ho * wo_p * cout)
        + 2 * k * k * cin * cout,
    )
    out = pl.pallas_call(
        functools.partial(_convk_kernel, k=k, stride=stride, act=act,
                          has_shortcut=has_shortcut, ho=ho, wo=wo_p),
        grid=(n,),
        in_specs=in_specs,
        out_specs=pl.BlockSpec((1, ho * wo_p, cout), lambda nn: (nn, 0, 0)),
        out_shape=jax.ShapeDtypeStruct((n, ho * wo_p, cout), jnp.bfloat16),
        compiler_params=pltpu.CompilerParams(
            dimension_semantics=("parallel",), vmem_limit_bytes=_VMEM_LIMIT),
        cost_estimate=cost,
    )(*inputs)
    out = out.reshape(n, ho, wo_p, cout)
    if wo_p != wo:
        out = out[:, :, :wo, :]
    # TODO(synk): at large image resolutions this whole-sample block should be
    # split into H row-blocks with a (k-1)-row halo to fit v7x's 64 MiB VMEM.
    return out


# --------------------- depthwise conv + fused Squeeze-Excite -------------------

def _dwse_kernel(*refs, k, stride, inv_hw, ho, wo):
    nphase = stride * stride
    x_refs = refs[:nphase]
    w_ref, b_ref, w1_ref, b1_ref, w2_ref, b2_ref = refs[nphase:nphase + 6]
    o_ref = refs[-1]
    c = o_ref.shape[3]

    wv = w_ref[...].astype(jnp.float32)                  # (k*k, C), small
    acc = jnp.zeros((ho, wo, c), jnp.float32)
    for di in range(k):
        for dj in range(k):
            pref = x_refs[(di % stride) * stride + (dj % stride)]
            tap = pref[0, pl.ds(di // stride, ho), pl.ds(dj // stride, wo), :]
            acc = acc + tap.astype(jnp.float32) * wv[di * k + dj]
    y = acc + b_ref[...]
    y = y * jax.nn.sigmoid(y)                            # SiLU

    # Squeeze-Excite fused: global pool -> MLP -> sigmoid gate -> channel scale.
    pooled = (jnp.sum(y, axis=(0, 1)) * inv_hw).reshape(1, c)
    hmid = jnp.dot(pooled.astype(jnp.bfloat16), w1_ref[...],
                   preferred_element_type=jnp.float32) + b1_ref[...]
    hmid = hmid * jax.nn.sigmoid(hmid)
    gate = jax.nn.sigmoid(jnp.dot(hmid.astype(jnp.bfloat16), w2_ref[...],
                                  preferred_element_type=jnp.float32)
                          + b2_ref[...])                 # (1, C)
    o_ref[0] = (y * gate).astype(o_ref.dtype)


@functools.partial(jax.jit, static_argnames=("k", "stride"))
def depthwise_se(x, w, b, w1, b1, w2, b2, *, k, stride):
    """Depthwise kxk conv (BN folded) + SiLU with the whole SE branch fused
    into the same kernel (no standalone SE launch, no gate tensor in HBM)."""
    n, h, wdt, c = x.shape
    rd = w1.shape[1]
    pad = _pad_same(k, stride)
    ho = (h + 2 * pad - k) // stride + 1
    wo = (wdt + 2 * pad - k) // stride + 1
    halo = (k - 1) // stride
    hp = max(_round_up(h + 2 * pad, stride), stride * (ho + halo))
    wp = max(_round_up(wdt + 2 * pad, stride), stride * (wo + halo))

    xp = jnp.pad(x.astype(jnp.bfloat16),
                 ((0, 0), (pad, hp - h - pad), (pad, wp - wdt - pad), (0, 0)))
    phases = _phase_split(xp, stride)
    hh, wh = hp // stride, wp // stride

    inputs = list(phases) + [
        w.astype(jnp.bfloat16),
        b.reshape(1, c).astype(jnp.float32),
        w1.astype(jnp.bfloat16),
        b1.reshape(1, rd).astype(jnp.float32),
        w2.astype(jnp.bfloat16),
        b2.reshape(1, c).astype(jnp.float32),
    ]
    in_specs = ([pl.BlockSpec((1, hh, wh, c), lambda nn: (nn, 0, 0, 0))]
                * len(phases)
                + [pl.BlockSpec((k * k, c), lambda nn: (0, 0)),
                   pl.BlockSpec((1, c), lambda nn: (0, 0)),
                   pl.BlockSpec((c, rd), lambda nn: (0, 0)),
                   pl.BlockSpec((1, rd), lambda nn: (0, 0)),
                   pl.BlockSpec((rd, c), lambda nn: (0, 0)),
                   pl.BlockSpec((1, c), lambda nn: (0, 0))])
    out = pl.pallas_call(
        functools.partial(_dwse_kernel, k=k, stride=stride,
                          inv_hw=1.0 / float(ho * wo), ho=ho, wo=wo),
        grid=(n,),
        in_specs=in_specs,
        out_specs=pl.BlockSpec((1, ho, wo, c), lambda nn: (nn, 0, 0, 0)),
        out_shape=jax.ShapeDtypeStruct((n, ho, wo, c), jnp.bfloat16),
        compiler_params=pltpu.CompilerParams(
            dimension_semantics=("parallel",), vmem_limit_bytes=_VMEM_LIMIT),
    )(*inputs)
    return out


# --------------------------------- global pool ---------------------------------

def _avgpool_kernel(x_ref, o_ref, *, inv_hw):
    o_ref[0] = jnp.sum(x_ref[0].astype(jnp.float32), axis=0, keepdims=True) * inv_hw


@jax.jit
def global_avg_pool(x):
    """(N, H, W, C) -> (N, C) f32 mean over spatial (f32 in-kernel reduction)."""
    n, h, wdt, c = x.shape
    out = pl.pallas_call(
        functools.partial(_avgpool_kernel, inv_hw=1.0 / float(h * wdt)),
        grid=(n,),
        in_specs=[pl.BlockSpec((1, h * wdt, c), lambda nn: (nn, 0, 0))],
        out_specs=pl.BlockSpec((1, 1, c), lambda nn: (nn, 0, 0)),
        out_shape=jax.ShapeDtypeStruct((n, 1, c), jnp.float32),
        compiler_params=pltpu.CompilerParams(
            dimension_semantics=("parallel",), vmem_limit_bytes=_VMEM_LIMIT),
    )(x.reshape(n, h * wdt, c))
    return out.reshape(n, c)


# ------------------------- EfficientNetV2-M definition ---------------------------

STEM_CH = 24
HEAD_CH = 1280            # backbone.num_features for efficientnetv2_m
BN_EPS = 1e-3
# (block_type, expand_ratio, kernel, stride, out_ch, repeats) — timm efficientnetv2_m
STAGES = [
    ("cn", 1, 3, 1, 24, 3),     # ConvBnAct (+skip)
    ("er", 4, 3, 2, 48, 5),     # Fused-MBConv
    ("er", 4, 3, 2, 80, 5),
    ("ir", 4, 3, 2, 160, 7),    # MBConv + SE(0.25 of block input)
    ("ir", 6, 3, 1, 176, 14),
    ("ir", 6, 3, 2, 304, 18),
    ("ir", 6, 3, 1, 512, 5),
]


class _KeyGen:
    def __init__(self, seed):
        self._key = jax.random.PRNGKey(seed)

    def __call__(self):
        self._key, k = jax.random.split(self._key)
        return k


def _conv_params(kg, k, cin, cout):
    fan_in = k * k * cin
    w = jax.random.normal(kg(), (k * k * cin, cout), jnp.float32) * math.sqrt(2.0 / fan_in)
    w = w * (1.0 / math.sqrt(1.0 + BN_EPS))           # identity-init BN folded in
    return {"w": w.astype(jnp.bfloat16), "b": jnp.zeros((cout,), jnp.float32)}


def _dw_params(kg, k, c):
    w = jax.random.normal(kg(), (k * k, c), jnp.float32) * math.sqrt(2.0 / (k * k))
    w = w * (1.0 / math.sqrt(1.0 + BN_EPS))
    return {"w": w.astype(jnp.bfloat16), "b": jnp.zeros((c,), jnp.float32)}


def _linear_params(kg, cin, cout):
    bound = 1.0 / math.sqrt(cin)
    w = jax.random.uniform(kg(), (cin, cout), jnp.float32, -bound, bound)
    b = jax.random.uniform(kg(), (cout,), jnp.float32, -bound, bound)
    return {"w": w, "b": b}


def init_params(seed=0, in_chans=3, output_dim=1):
    kg = _KeyGen(seed)
    params = {"stem": _conv_params(kg, 3, in_chans, STEM_CH), "blocks": []}
    cin = STEM_CH
    for (btype, exp, k, s, cout, reps) in STAGES:
        stage = []
        for bi in range(reps):
            block_in = cin if bi == 0 else cout
            cmid = block_in * exp
            blk = {}
            if btype == "cn":
                blk["conv"] = _conv_params(kg, k, block_in, cout)
            elif btype == "er":
                blk["exp"] = _conv_params(kg, k, block_in, cmid)
                blk["pwl"] = _conv_params(kg, 1, cmid, cout)
            else:  # ir (MBConv + SE)
                rd = max(1, int(round(block_in * 0.25)))
                blk["pw"] = _conv_params(kg, 1, block_in, cmid)
                blk["dw"] = _dw_params(kg, k, cmid)
                se1 = _linear_params(kg, cmid, rd)
                se2 = _linear_params(kg, rd, cmid)
                blk["se"] = {"w1": se1["w"], "b1": se1["b"],
                             "w2": se2["w"], "b2": se2["b"]}
                blk["pwl"] = _conv_params(kg, 1, cmid, cout)
            stage.append(blk)
        params["blocks"].append(stage)
        cin = cout
    params["head"] = _conv_params(kg, 1, cin, HEAD_CH)
    params["fc"] = _linear_params(kg, HEAD_CH, output_dim)
    return params


def efficientnetv2_m_forward(params, x_nchw, return_embeds=False):
    # cfg gates: self.stn1 / self.resizer / self.stn2 disabled -> identity.
    # TODO(synk): STN / learnable Resizer branches not implemented (cfg disables them).
    x = jnp.transpose(x_nchw.astype(jnp.float32), (0, 2, 3, 1)).astype(jnp.bfloat16)
    x = conv2d_kxk(x, params["stem"]["w"], params["stem"]["b"], k=3, stride=2,
                   act="silu")
    cin = STEM_CH
    for si, (btype, exp, k, s, cout, reps) in enumerate(STAGES):
        for bi in range(reps):
            blk = params["blocks"][si][bi]
            block_in = cin if bi == 0 else cout
            stride = s if bi == 0 else 1
            shortcut = x if (stride == 1 and block_in == cout) else None
            if btype == "cn":            # ConvBnAct, residual after activation
                x = conv2d_kxk(x, blk["conv"]["w"], blk["conv"]["b"], k=k,
                               stride=stride, act="silu", shortcut=shortcut)
            elif btype == "er":          # Fused-MBConv
                h = conv2d_kxk(x, blk["exp"]["w"], blk["exp"]["b"], k=k,
                               stride=stride, act="silu")
                x = conv1x1(h, blk["pwl"]["w"], blk["pwl"]["b"], act="none",
                            shortcut=shortcut)
            else:                        # MBConv + fused SE
                h = conv1x1(x, blk["pw"]["w"], blk["pw"]["b"], act="silu")
                h = depthwise_se(h, blk["dw"]["w"], blk["dw"]["b"],
                                 blk["se"]["w1"], blk["se"]["b1"],
                                 blk["se"]["w2"], blk["se"]["b2"],
                                 k=k, stride=stride)
                x = conv1x1(h, blk["pwl"]["w"], blk["pwl"]["b"], act="none",
                            shortcut=shortcut)
        cin = cout
    x = conv1x1(x, params["head"]["w"], params["head"]["b"], act="silu")
    embeds = global_avg_pool(x)                          # (N, 1280) f32
    # TODO(synk): nn.Dropout skipped (cfg.use_dropout=False / inference identity).
    logits = linear(embeds, params["fc"]["w"], params["fc"]["b"])
    if return_embeds:
        return logits, embeds
    return logits


# ----------------------------------- main ----------------------------------------

if __name__ == "__main__":
    key = jax.random.PRNGKey(0)
    # Small input consistent with the module's NCHW / in_chans=3 contract.
    x = jax.random.normal(key, (2, 3, 32, 32), jnp.float32)
    params = init_params(seed=0, in_chans=3, output_dim=1)
    logits = efficientnetv2_m_forward(params, x)
    logits = jax.block_until_ready(logits)
    assert logits.shape == (2, 1), logits.shape
    assert bool(jnp.all(jnp.isfinite(logits)))
    print("KERNEL_OK")
</pallas_src>

<mosaic_0001>
module attributes {stable_mosaic.version = 11 : i64} {
  func.func @_convk_kernel(%arg0: i32, %arg1: memref<1x17x17x3xbf16, #tpu.memory_space<vmem>>, %arg2: memref<1x17x17x3xbf16, #tpu.memory_space<vmem>>, %arg3: memref<1x17x17x3xbf16, #tpu.memory_space<vmem>>, %arg4: memref<1x17x17x3xbf16, #tpu.memory_space<vmem>>, %arg5: memref<9x3x24xbf16, #tpu.memory_space<vmem>>, %arg6: memref<1x24xf32, #tpu.memory_space<vmem>>, %arg7: memref<1x256x24xbf16, #tpu.memory_space<vmem>>) attributes {dimension_semantics = [#tpu.dimension_semantics<parallel>], iteration_bounds = array<i64: 2>, scalar_prefetch = 0 : i64, scratch_operands = 0 : i64, tpu.core_type = #tpu.core_type<tc>, window_params = [{transform_indices = @transform_0, window_bounds = array<i64: 1, 17, 17, 3>}, {transform_indices = @transform_1, window_bounds = array<i64: 1, 17, 17, 3>}, {transform_indices = @transform_2, window_bounds = array<i64: 1, 17, 17, 3>}, {transform_indices = @transform_3, window_bounds = array<i64: 1, 17, 17, 3>}, {pipeline_mode = #tpu.pipeline_mode<synchronous>, transform_indices = @transform_4, window_bounds = array<i64: 9, 3, 24>}, {pipeline_mode = #tpu.pipeline_mode<synchronous>, transform_indices = @transform_5, window_bounds = array<i64: 1, 24>}, {transform_indices = @transform_6, window_bounds = array<i64: 1, 256, 24>}]} {
    %cst = arith.constant 0.000000e+00 : f32
    %0 = vector.broadcast %cst : f32 to vector<256x24xf32>
    %c0 = arith.constant 0 : index
    %c0_0 = arith.constant 0 : index
    %c0_1 = arith.constant 0 : index
    %c0_2 = arith.constant 0 : index
    %1 = vector.load %arg1[%c0, %c0_0, %c0_1, %c0_2] : memref<1x17x17x3xbf16, #tpu.memory_space<vmem>>, vector<1x16x16x3xbf16>
    %2 = vector.shape_cast %1 : vector<1x16x16x3xbf16> to vector<16x16x3xbf16>
    %3 = vector.shape_cast %2 : vector<16x16x3xbf16> to vector<256x3xbf16>
    %c0_3 = arith.constant 0 : index
    %c0_4 = arith.constant 0 : index
    %c0_5 = arith.constant 0 : index
    %4 = vector.load %arg5[%c0_3, %c0_4, %c0_5] : memref<9x3x24xbf16, #tpu.memory_space<vmem>>, vector<1x3x24xbf16>
    %5 = vector.shape_cast %4 : vector<1x3x24xbf16> to vector<3x24xbf16>
    %cst_6 = arith.constant dense<0.000000e+00> : vector<256x24xf32>
    %6 = tpu.matmul %3, %5, %cst_6 {dimension_numbers = #tpu.dot_dimension_numbers<[1], [0], [0], [1], [0, 0, 1, 1], [], []>} : vector<256x3xbf16>, vector<3x24xbf16>, vector<256x24xf32> -> vector<256x24xf32>
    %7 = arith.addf %0, %6 : vector<256x24xf32>
    %c0_7 = arith.constant 0 : index
    %c0_8 = arith.constant 0 : index
    %c0_9 = arith.constant 0 : index
    %c0_10 = arith.constant 0 : index
    %8 = vector.load %arg2[%c0_7, %c0_8, %c0_9, %c0_10] : memref<1x17x17x3xbf16, #tpu.memory_space<vmem>>, vector<1x16x16x3xbf16>
    %9 = vector.shape_cast %8 : vector<1x16x16x3xbf16> to vector<16x16x3xbf16>
    %10 = vector.shape_cast %9 : vector<16x16x3xbf16> to vector<256x3xbf16>
    %c1 = arith.constant 1 : index
    %c0_11 = arith.constant 0 : index
    %c0_12 = arith.constant 0 : index
    %11 = vector.load %arg5[%c1, %c0_11, %c0_12] : memref<9x3x24xbf16, #tpu.memory_space<vmem>>, vector<1x3x24xbf16>
    %12 = vector.shape_cast %11 : vector<1x3x24xbf16> to vector<3x24xbf16>
    %cst_13 = arith.constant dense<0.000000e+00> : vector<256x24xf32>
    %13 = tpu.matmul %10, %12, %cst_13 {dimension_numbers = #tpu.dot_dimension_numbers<[1], [0], [0], [1], [0, 0, 1, 1], [], []>} : vector<256x3xbf16>, vector<3x24xbf16>, vector<256x24xf32> -> vector<256x24xf32>
    %14 = arith.addf %7, %13 : vector<256x24xf32>
    %c0_14 = arith.constant 0 : index
    %c0_15 = arith.constant 0 : index
    %c1_16 = arith.constant 1 : index
    %c0_17 = arith.constant 0 : index
    %15 = vector.load %arg1[%c0_14, %c0_15, %c1_16, %c0_17] : memref<1x17x17x3xbf16, #tpu.memory_space<vmem>>, vector<1x16x16x3xbf16>
    %16 = vector.shape_cast %15 : vector<1x16x16x3xbf16> to vector<16x16x3xbf16>
    %17 = vector.shape_cast %16 : vector<16x16x3xbf16> to vector<256x3xbf16>
    %c2 = arith.constant 2 : index
    %c0_18 = arith.constant 0 : index
    %c0_19 = arith.constant 0 : index
    %18 = vector.load %arg5[%c2, %c0_18, %c0_19] : memref<9x3x24xbf16, #tpu.memory_space<vmem>>, vector<1x3x24xbf16>
    %19 = vector.shape_cast %18 : vector<1x3x24xbf16> to vector<3x24xbf16>
    %cst_20 = arith.constant dense<0.000000e+00> : vector<256x24xf32>
    %20 = tpu.matmul %17, %19, %cst_20 {dimension_numbers = #tpu.dot_dimension_numbers<[1], [0], [0], [1], [0, 0, 1, 1], [], []>} : vector<256x3xbf16>, vector<3x24xbf16>, vector<256x24xf32> -> vector<256x24xf32>
    %21 = arith.addf %14, %20 : vector<256x24xf32>
    %c0_21 = arith.constant 0 : index
    %c0_22 = arith.constant 0 : index
    %c0_23 = arith.constant 0 : index
    %c0_24 = arith.constant 0 : index
    %22 = vector.load %arg3[%c0_21, %c0_22, %c0_23, %c0_24] : memref<1x17x17x3xbf16, #tpu.memory_space<vmem>>, vector<1x16x16x3xbf16>
    %23 = vector.shape_cast %22 : vector<1x16x16x3xbf16> to vector<16x16x3xbf16>
    %24 = vector.shape_cast %23 : vector<16x16x3xbf16> to vector<256x3xbf16>
    %c3 = arith.constant 3 : index
    %c0_25 = arith.constant 0 : index
    %c0_26 = arith.constant 0 : index
    %25 = vector.load %arg5[%c3, %c0_25, %c0_26] : memref<9x3x24xbf16, #tpu.memory_space<vmem>>, vector<1x3x24xbf16>
    %26 = vector.shape_cast %25 : vector<1x3x24xbf16> to vector<3x24xbf16>
    %cst_27 = arith.constant dense<0.000000e+00> : vector<256x24xf32>
    %27 = tpu.matmul %24, %26, %cst_27 {dimension_numbers = #tpu.dot_dimension_numbers<[1], [0], [0], [1], [0, 0, 1, 1], [], []>} : vector<256x3xbf16>, vector<3x24xbf16>, vector<256x24xf32> -> vector<256x24xf32>
    %28 = arith.addf %21, %27 : vector<256x24xf32>
    %c0_28 = arith.constant 0 : index
    %c0_29 = arith.constant 0 : index
    %c0_30 = arith.constant 0 : index
    %c0_31 = arith.constant 0 : index
    %29 = vector.load %arg4[%c0_28, %c0_29, %c0_30, %c0_31] : memref<1x17x17x3xbf16, #tpu.memory_space<vmem>>, vector<1x16x16x3xbf16>
    %30 = vector.shape_cast %29 : vector<1x16x16x3xbf16> to vector<16x16x3xbf16>
    %31 = vector.shape_cast %30 : vector<16x16x3xbf16> to vector<256x3xbf16>
    %c4 = arith.constant 4 : index
    %c0_32 = arith.constant 0 : index
    %c0_33 = arith.constant 0 : index
    %32 = vector.load %arg5[%c4, %c0_32, %c0_33] : memref<9x3x24xbf16, #tpu.memory_space<vmem>>, vector<1x3x24xbf16>
    %33 = vector.shape_cast %32 : vector<1x3x24xbf16> to vector<3x24xbf16>
    %cst_34 = arith.constant dense<0.000000e+00> : vector<256x24xf32>
    %34 = tpu.matmul %31, %33, %cst_34 {dimension_numbers = #tpu.dot_dimension_numbers<[1], [0], [0], [1], [0, 0, 1, 1], [], []>} : vector<256x3xbf16>, vector<3x24xbf16>, vector<256x24xf32> -> vector<256x24xf32>
    %35 = arith.addf %28, %34 : vector<256x24xf32>
    %c0_35 = arith.constant 0 : index
    %c0_36 = arith.constant 0 : index
    %c1_37 = arith.constant 1 : index
    %c0_38 = arith.constant 0 : index
    %36 = vector.load %arg3[%c0_35, %c0_36, %c1_37, %c0_38] : memref<1x17x17x3xbf16, #tpu.memory_space<vmem>>, vector<1x16x16x3xbf16>
    %37 = vector.shape_cast %36 : vector<1x16x16x3xbf16> to vector<16x16x3xbf16>
    %38 = vector.shape_cast %37 : vector<16x16x3xbf16> to vector<256x3xbf16>
    %c5 = arith.constant 5 : index
    %c0_39 = arith.constant 0 : index
    %c0_40 = arith.constant 0 : index
    %39 = vector.load %arg5[%c5, %c0_39, %c0_40] : memref<9x3x24xbf16, #tpu.memory_space<vmem>>, vector<1x3x24xbf16>
    %40 = vector.shape_cast %39 : vector<1x3x24xbf16> to vector<3x24xbf16>
    %cst_41 = arith.constant dense<0.000000e+00> : vector<256x24xf32>
    %41 = tpu.matmul %38, %40, %cst_41 {dimension_numbers = #tpu.dot_dimension_numbers<[1], [0], [0], [1], [0, 0, 1, 1], [], []>} : vector<256x3xbf16>, vector<3x24xbf16>, vector<256x24xf32> -> vector<256x24xf32>
    %42 = arith.addf %35, %41 : vector<256x24xf32>
    %c0_42 = arith.constant 0 : index
    %c1_43 = arith.constant 1 : index
    %c0_44 = arith.constant 0 : index
    %c0_45 = arith.constant 0 : index
    %43 = vector.load %arg1[%c0_42, %c1_43, %c0_44, %c0_45] : memref<1x17x17x3xbf16, #tpu.memory_space<vmem>>, vector<1x16x16x3xbf16>
    %44 = vector.shape_cast %43 : vector<1x16x16x3xbf16> to vector<16x16x3xbf16>
    %45 = vector.shape_cast %44 : vector<16x16x3xbf16> to vector<256x3xbf16>
    %c6 = arith.constant 6 : index
    %c0_46 = arith.constant 0 : index
    %c0_47 = arith.constant 0 : index
    %46 = vector.load %arg5[%c6, %c0_46, %c0_47] : memref<9x3x24xbf16, #tpu.memory_space<vmem>>, vector<1x3x24xbf16>
    %47 = vector.shape_cast %46 : vector<1x3x24xbf16> to vector<3x24xbf16>
    %cst_48 = arith.constant dense<0.000000e+00> : vector<256x24xf32>
    %48 = tpu.matmul %45, %47, %cst_48 {dimension_numbers = #tpu.dot_dimension_numbers<[1], [0], [0], [1], [0, 0, 1, 1], [], []>} : vector<256x3xbf16>, vector<3x24xbf16>, vector<256x24xf32> -> vector<256x24xf32>
    %49 = arith.addf %42, %48 : vector<256x24xf32>
    %c0_49 = arith.constant 0 : index
    %c1_50 = arith.constant 1 : index
    %c0_51 = arith.constant 0 : index
    %c0_52 = arith.constant 0 : index
    %50 = vector.load %arg2[%c0_49, %c1_50, %c0_51, %c0_52] : memref<1x17x17x3xbf16, #tpu.memory_space<vmem>>, vector<1x16x16x3xbf16>
    %51 = vector.shape_cast %50 : vector<1x16x16x3xbf16> to vector<16x16x3xbf16>
    %52 = vector.shape_cast %51 : vector<16x16x3xbf16> to vector<256x3xbf16>
    %c7 = arith.constant 7 : index
    %c0_53 = arith.constant 0 : index
    %c0_54 = arith.constant 0 : index
    %53 = vector.load %arg5[%c7, %c0_53, %c0_54] : memref<9x3x24xbf16, #tpu.memory_space<vmem>>, vector<1x3x24xbf16>
    %54 = vector.shape_cast %53 : vector<1x3x24xbf16> to vector<3x24xbf16>
    %cst_55 = arith.constant dense<0.000000e+00> : vector<256x24xf32>
    %55 = tpu.matmul %52, %54, %cst_55 {dimension_numbers = #tpu.dot_dimension_numbers<[1], [0], [0], [1], [0, 0, 1, 1], [], []>} : vector<256x3xbf16>, vector<3x24xbf16>, vector<256x24xf32> -> vector<256x24xf32>
    %56 = arith.addf %49, %55 : vector<256x24xf32>
    %c0_56 = arith.constant 0 : index
    %c1_57 = arith.constant 1 : index
    %c1_58 = arith.constant 1 : index
    %c0_59 = arith.constant 0 : index
    %57 = vector.load %arg1[%c0_56, %c1_57, %c1_58, %c0_59] : memref<1x17x17x3xbf16, #tpu.memory_space<vmem>>, vector<1x16x16x3xbf16>
    %58 = vector.shape_cast %57 : vector<1x16x16x3xbf16> to vector<16x16x3xbf16>
    %59 = vector.shape_cast %58 : vector<16x16x3xbf16> to vector<256x3xbf16>
    %c8 = arith.constant 8 : index
    %c0_60 = arith.constant 0 : index
    %c0_61 = arith.constant 0 : index
    %60 = vector.load %arg5[%c8, %c0_60, %c0_61] : memref<9x3x24xbf16, #tpu.memory_space<vmem>>, vector<1x3x24xbf16>
    %61 = vector.shape_cast %60 : vector<1x3x24xbf16> to vector<3x24xbf16>
    %cst_62 = arith.constant dense<0.000000e+00> : vector<256x24xf32>
    %62 = tpu.matmul %59, %61, %cst_62 {dimension_numbers = #tpu.dot_dimension_numbers<[1], [0], [0], [1], [0, 0, 1, 1], [], []>} : vector<256x3xbf16>, vector<3x24xbf16>, vector<256x24xf32> -> vector<256x24xf32>
    %63 = arith.addf %56, %62 : vector<256x24xf32>
    %c0_63 = arith.constant 0 : index
    %c0_64 = arith.constant 0 : index
    %64 = vector.load %arg6[%c0_63, %c0_64] : memref<1x24xf32, #tpu.memory_space<vmem>>, vector<1x24xf32>
    %65 = vector.broadcast %64 : vector<1x24xf32> to vector<256x24xf32>
    %66 = arith.addf %63, %65 : vector<256x24xf32>
    %67 = arith.negf %66 : vector<256x24xf32>
    %68 = math.exp %67 : vector<256x24xf32>
    %cst_65 = arith.constant 1.000000e+00 : f32
    %69 = vector.broadcast %cst_65 : f32 to vector<256x24xf32>
    %70 = arith.addf %69, %68 : vector<256x24xf32>
    %71 = arith.divf %69, %70 : vector<256x24xf32>
    %72 = arith.mulf %66, %71 : vector<256x24xf32>
    %73 = arith.truncf %72 : vector<256x24xf32> to vector<256x24xbf16>
    %c0_66 = arith.constant 0 : index
    %c0_67 = arith.constant 0 : index
    %c0_68 = arith.constant 0 : index
    %74 = vector.load %arg7[%c0_66, %c0_67, %c0_68] : memref<1x256x24xbf16, #tpu.memory_space<vmem>>, vector<1x256x24xbf16>
    %75 = vector.shape_cast %74 : vector<1x256x24xbf16> to vector<256x24xbf16>
    %76 = vector.shape_cast %73 : vector<256x24xbf16> to vector<1x256x24xbf16>
    tpu.vector_store %arg7[%c0_66, %c0_67, %c0_68], %76 {strides = array<i32>} : memref<1x256x24xbf16, #tpu.memory_space<vmem>>, vector<1x256x24xbf16>,
    return
  }
  func.func @transform_0(%arg0: i32) -> (i32, i32, i32, i32) {
    %c0_i32 = arith.constant 0 : i32
    %c0_i32_0 = arith.constant 0 : i32
    %c0_i32_1 = arith.constant 0 : i32
    %c0_i32_2 = arith.constant 0 : i32
    return %arg0, %c0_i32, %c0_i32_0, %c0_i32_1 : i32, i32, i32, i32
  }
  func.func @transform_1(%arg0: i32) -> (i32, i32, i32, i32) {
    %c0_i32 = arith.constant 0 : i32
    %c0_i32_0 = arith.constant 0 : i32
    %c0_i32_1 = arith.constant 0 : i32
    %c0_i32_2 = arith.constant 0 : i32
    return %arg0, %c0_i32, %c0_i32_0, %c0_i32_1 : i32, i32, i32, i32
  }
  func.func @transform_2(%arg0: i32) -> (i32, i32, i32, i32) {
    %c0_i32 = arith.constant 0 : i32
    %c0_i32_0 = arith.constant 0 : i32
    %c0_i32_1 = arith.constant 0 : i32
    %c0_i32_2 = arith.constant 0 : i32
    return %arg0, %c0_i32, %c0_i32_0, %c0_i32_1 : i32, i32, i32, i32
  }
  func.func @transform_3(%arg0: i32) -> (i32, i32, i32, i32) {
    %c0_i32 = arith.constant 0 : i32
    %c0_i32_0 = arith.constant 0 : i32
    %c0_i32_1 = arith.constant 0 : i32
    %c0_i32_2 = arith.constant 0 : i32
    return %arg0, %c0_i32, %c0_i32_0, %c0_i32_1 : i32, i32, i32, i32
  }
  func.func @transform_4(%arg0: i32) -> (i32, i32, i32) {
    %c0_i32 = arith.constant 0 : i32
    %c0_i32_0 = arith.constant 0 : i32
    %c0_i32_1 = arith.constant 0 : i32
    %c0_i32_2 = arith.constant 0 : i32
    return %c0_i32, %c0_i32_0, %c0_i32_1 : i32, i32, i32
  }
  func.func @transform_5(%arg0: i32) -> (i32, i32) {
    %c0_i32 = arith.constant 0 : i32
    %c0_i32_0 = arith.constant 0 : i32
    %c0_i32_1 = arith.constant 0 : i32
    return %c0_i32, %c0_i32_0 : i32, i32
  }
  func.func @transform_6(%arg0: i32) -> (i32, i32, i32) {
    %c0_i32 = arith.constant 0 : i32
    %c0_i32_0 = arith.constant 0 : i32
    %c0_i32_1 = arith.constant 0 : i32
    return %arg0, %c0_i32, %c0_i32_0 : i32, i32, i32
  }
}

</mosaic_0001>

<bundles_post_ra>
// kernel: conv2d_kxk.1
= control target key start
LH: loop header
LB: loop body
LE: loop exit
PB: predicated region body
PF: predicated region fallthrough
CT: control target
= control target key end

     0   :  { %11 = vsyncpa [#allocation3], 0  ;;  %s7475_s0 = inlined_call_operand.vmem [shape: bf16[2,17,17,3], index: 0, kind: input, shape index: {}]   ;;  %s7476_s1 = inlined_call_operand.vmem [shape: bf16[2,17,17,3], index: 1, kind: input, shape index: {}]   ;;  %s7477_s2 = inlined_call_operand.vmem [shape: bf16[2,17,17,3], index: 2, kind: input, shape index: {}]   ;;  %s7478_s3 = inlined_call_operand.vmem [shape: bf16[2,17,17,3], index: 3, kind: input, shape index: {}]   ;;  %s7479_s4 = inlined_call_operand.vmem [shape: bf16[9,3,24], index: 4, kind: input, shape index: {}]   ;;  %s7480_s5 = inlined_call_operand.vmem [shape: f32[1,24], index: 5, kind: input, shape index: {}]   ;;  %s7481_s6 = inlined_call_operand.hbm [shape: bf16[2,256,24], index: 6, kind: output, shape index: {}]  }
   0x1   :  { %13 = vsyncpa [#allocation3 + $0x1], 0  ;;  %s5859_s21 = smov 0   ;;  %s5861_s22 = smov 0  }
   0x2   :  { %s5863_s23 = smov 0   ;;  %s5865_s24 = smov 0  }
   0x3 LB: > { %s5880_s25 = sadd.s32 4294967295, %s5819_s24   ;;  %s4789_s26 = sadd.s32 4294967294, %s5819_s24   ;;  %s5819_s24 = sphi %s5865_s24, %s7537_s24   ;;  %s5815_s23 = sphi %s5863_s23, %s7536_s23   ;;  %s5811_s22 = sphi %s5861_s22, %s7535_s22   ;;  %s5807_s21 = sphi %s5859_s21, %s7534_s21  }
   0x4   : > { %s5884_s27 = sadd.s32 1, %s5819_s24   ;;  %s172_s28 = sadd.s32 1, %s5815_s23 }
   0x5   : > { %s169_s29 = ssub.s32 %s5819_s24, %s5884_s27  ;;  %p182_p0 = scmp.ne.s32.totalorder %s5815_s23, %s5811_s22 }
   0x6   : > { %p170_p1 = scmp.eq.s32.totalorder %s169_s29, 0  ;;  %p183_p2 = scmp.eq.s32.totalorder %s5880_s25, 1 }
   0x7   : > { %p188_p3 = scmp.ne.s32.totalorder %s5811_s22, %s5807_s21  ;;  %p189_p4 = scmp.eq.s32.totalorder %s4789_s26, 1 }
   0x8   : > { %s5895_s30 = scalar_select %p170_p1, %s5815_s23, %s172_s28  }
   0x9   : > { %p5897_p5 = por %p183_p2, %p182_p0  ;;  %p5901_p6 = por %p189_p4, %p188_p3 }
   0xa   : > { %p4792_p7 = scmp.ge.s32.totalorder %s5819_s24, 1  ;;  %p245_p8 = scmp.lt.s32.totalorder %s5819_s24, 3 }
   0xc   : > { %p246_p9 = pnand %p4792_p7, %p245_p8 }
   0xe   : > { %249 = sbr.rel (%p246_p9) target bundleno = 791 (0x317), region = 44 }
  0x13   : > { %v4798_v0 = vld [vmem:[%s7479_s4 + $0x2] sm:$0x3]  ;;  %vm507_vm0 = vcmask 1040384   ;;  %vm508_vm1 = vcmask 1041408   ;;  %p290_p10 = scmp.lt.s32.totalorder %s5880_s25, 1  ;;  %v5821_v1 = vmov 65535  }
  0x14   : > { %v509_v2 = vsel %vm507_vm0, 4294967295, %v5821_v1  ;;  %v4959_v3 = vld [vmem:[%s7479_s4 + $0x4] sm:$0x3]  ;;  %v4976_v4 = vld [vmem:[%s7479_s4 + $0x6] sm:$0x3]  ;;  %vm458_vm2 = vcmask 23552  }
  0x15   : > { %v510_v5 = vsel %vm508_vm1, %v509_v2, 0  ;;  %s291_s15 = scalar_select %p290_p10, %s5880_s25, 1  ;;  %v343_v6 = vld [vmem:[%s7479_s4] sm:$0x3]  ;;  %v5057_v7 = vld [vmem:[%s7479_s4 + $0x8] sm:$0x3] }
  0x16   : > { %v512_v8 = vand.u32 %v4798_v0, %v510_v5  ;;  %v1357_v9 = vand.u32 %v4959_v3, %v510_v5  ;;  %v1643_v10 = vand.u32 %v4976_v4, %v510_v5  ;;  %v732_v11 = vand.u32 %v510_v5, %v343_v6  ;;  %v5187_v27 = vld [vmem:[%s7479_s4 + $0xc] sm:$0x3]  ;;  %v5300_v28 = vld [vmem:[%s7479_s4 + $0xe] sm:$0x3]  ;;  %v5138_v33 = vld [vmem:[%s7479_s4 + $0xa] sm:$0x3] }
  0x17   : > { %s5924_s20 = smul.u32 204, %s291_s15  ;;  %v1929_v12 = vand.u32 %v5057_v7, %v510_v5  ;;  %v2870_v31 = vand.u32 %v5187_v27, %v510_v5  ;;  %v3157_v32 = vand.u32 %v5300_v28, %v510_v5  ;;  %v5429_v34 = vld [vmem:[%s7479_s4 + $0x10] sm:$0x3]  ;;  %v2583_v37 = vand.u32 %v5138_v33, %v510_v5  ;;  %s287_s15 = sand.u32 1, %s5811_s22  }
  0x18   : > { %5580 = vmatpush.bf16.msra.mxu1 %v512_v8  ;;  %5581 = vmatpush.bf16.msra.mxu2 %v512_v8  ;;  %v3811_v38 = vand.u32 %v5429_v34, %v510_v5  ;;  %vm871_vm3 = vsmask.f32 3328  ;;  %vm872_vm4 = vsmask.f32 7440  ;;  %vm4642_vm9 = vcmask 191488   ;;  %s4793_s16 = sshll.u32 %s287_s15, 7 }
  0x19   : > { %5582 = vmatpush.bf16.msra.mxu3 %v512_v8  ;;  %521 = vmatpush.bf16.msra.mxu0 %v512_v8  ;;  %s5930_s29 = scalar_lea.vmem %s7476_s1, %s5924_s20  ;;  %s5952_s11 = scalar_lea.vmem %s7475_s0, %s5924_s20  ;;  %vm5983_vm5 = vmor %vm871_vm3, %vm872_vm4 }
  0x1a   : > { %v5503_v13 = vld [vmem:[%s5930_s29 + $0x30] sm:$0xff]  ;;  %v5507_v14 = vld [vmem:[%s5930_s29 + $0x60] sm:$0xff]  ;;  %v5505_v21 = vld [vmem:[%s5930_s29 + $0x48] sm:$0xff]  ;;  %s6000_s9 = scalar_lea.vmem %s7477_s2, %s5924_s20  ;;  %s6006_s13 = scalar_lea.vmem %s7478_s3, %s5924_s20 }
  0x1b   : > { %v5511_v15 = vld [vmem:[%s5930_s29 + $0x90] sm:$0xff]  ;;  %v5499_v16 = vld [vmem:[%s5930_s29] sm:$0xff]  ;;  %4867 = vmatmul.msk.bf16.vlgmr.msra.gmra.mxu1 %vm458_vm2, %v5503_v13  ;;  %4871 = vmatmul.msk.bf16.vlgmr.msra.gmra.mxu2 %vm458_vm2, %v5507_v14  ;;  %v5509_v22 = vld [vmem:[%s5930_s29 + $0x78] sm:$0xff]  ;;  %s6794_s17 = scalar_lea.vmem [#allocation2], %s4793_s16  ;;  %s5579_s26 = sshll.u32 %s5880_s25, 7 }
  0x1c   : > { %1366 = vmatpush.bf16.msrb.mxu2 %v1357_v9  ;;  %741 = vmatpush.bf16.msrb.mxu1 %v732_v11  ;;  %v5504_v17 = vld [vmem:[%s5930_s29 + $0x3c] sm:$0xff]  ;;  %v5508_v18 = vld [vmem:[%s5930_s29 + $0x6c] sm:$0xff]  ;;  %v824_v26 = vld [vmem:[%s5952_s11 + $0x4] sm:$0xf]  ;;  %s4687_s10 = scalar_lea.hbm %s7481_s6, %s5579_s26  ;;  %s4688_s25 = sshll.u32 %s6794_s17, 4  ;;  %s4689_s25 = int_to_ptr.vmem [resolvable:$true] %s4688_s25 }
  0x1d   : > { %1652 = vmatpush.bf16.msrb.mxu3 %v1643_v10  ;;  %1938 = vmatpush.bf16.msrb.mxu0 %v1929_v12  ;;  %v5512_v19 = vld [vmem:[%s5930_s29 + $0x9c] sm:$0xff]  ;;  %v5500_v20 = vld [vmem:[%s5930_s29 + $0xc] sm:$0xff]  ;;  %v884_v35 = vshll.u32 %v824_v26, 16  ;;  %v888_v36 = vshrl.u32 %v824_v26, 16  ;;  %v825_v43 = vld [vmem:[%s5952_s11 + $0x8] sm:$0x1] }
  0x1e   : > { %4875 = vmatmul.msk.bf16.vlgmr.msra.gmra.mxu3 %vm458_vm2, %v5511_v15  ;;  %4863 = vmatmul.msk.bf16.vlgmr.msra.gmra.mxu0 %vm458_vm2, %v5499_v16  ;;  %v5513_v23 = vld [vmem:[%s5930_s29 + $0xa8] sm:$0xff]  ;;  %v5501_v24 = vld [vmem:[%s5930_s29 + $0x18] sm:$0xff]  ;;  %v823_v25 = vld [vmem:[%s5952_s11] sm:$0xf]  ;;  %v894_v46 = vshll.u32 %v825_v43, 16  ;;  %s4690_s12 = sshll.u32 %s4687_s10, 4  ;;  %s4691_s12 = int_to_ptr.hbm [resolvable:$true] %s4690_s12 }
  0x1f   : > { %v875_v29 = vshrl.u32 %v823_v25, 16  ;;  %v878_v30 = vshll.u32 %v823_v25, 16  ;;  %v886_v41 = vrot.slane %v884_v35, 5  ;;  %v890_v42 = vrot.slane %v888_v36, 4  ;;  %v5506_v47 = vld [vmem:[%s5930_s29 + $0x54] sm:$0xff]  ;;  %v5510_v48 = vld [vmem:[%s5930_s29 + $0x84] sm:$0xff] }
  0x20   : > { %2879 = vmatpush.bf16.msra.mxu2 %v2870_v31  ;;  %2592 = vmatpush.bf16.msra.mxu1 %v2583_v37  ;;  %v5514_v49 = vld [vmem:[%s5930_s29 + $0xb4] sm:$0xff]  ;;  %v5502_v50 = vld [vmem:[%s5930_s29 + $0x24] sm:$0xff]  ;;  %v896_v53 = vrot.slane %v894_v46, 5  ;;  %v826_v55 = vld [vmem:[%s5952_s11 + $0xc] sm:$0xf]  ;;  %s5771_s20 = sshra.s32 %s4691_s12, 4  ;;  %s5772_s20 = int_to_ptr.hbm [resolvable:$true] %s5771_s20 }
  0x21   : > { %3166 = vmatpush.bf16.msra.mxu3 %v3157_v32  ;;  %3820 = vmatpush.bf16.msra.mxu0 %v3811_v38  ;;  %v877_v39 = vrot.slane %v875_v29, 4  ;;  %v880_v40 = vrot.slane %v878_v30, 5  ;;  %v891_v45 = vor.u32 %v890_v42, %v886_v41  ;;  %v827_v56 = vld [vmem:[%s5952_s11 + $0x10] sm:$0xf]  ;;  %v899_v59 = vshrl.u32 %v826_v55, 16  ;;  %v5483_v6 = vld [vmem:[%s5952_s11] sm:$0xff]  ;;  %p5778_p0 = scmp.lt.s32.totalorder %s5772_s20, %s7481_s6 }
  0x22   : > { %v902_v60 = vshll.u32 %v826_v55, 16  ;;  %v908_v61 = vshll.u32 %v827_v56, 16  ;;  %v912_v62 = vshrl.u32 %v827_v56, 16  ;;  %v828_v5 = vld [vmem:[%s5952_s11 + $0x14] sm:$0x1]  ;;  %v5515_v11 = vld [vmem:[%s6000_s9] sm:$0xff] }
  0x23   : > { %v881_v44 = vor.u32 %v880_v40, %v877_v39  ;;  %v892_v52 = vrot.slane %v891_v45, 4  ;;  %v901_v1 = vrot.slane %v899_v59, 4  ;;  %v918_v10 = vshll.u32 %v828_v5, 16  ;;  %v5531_v12 = vld [vmem:[%s6006_s13] sm:$0xff]  ;;  %v829_v16 = vld [vmem:[%s5952_s11 + $0x18] sm:$0xf] }
  0x24   : > { %v904_v2 = vrot.slane %v902_v60, 5  ;;  %v910_v3 = vrot.slane %v908_v61, 5  ;;  %v914_v4 = vrot.slane %v912_v62, 4  ;;  %v831_v30 = vld [vmem:[%s5952_s11 + $0x20] sm:$0x1]  ;;  %v5484_v31 = vld [vmem:[%s5952_s11 + $0xc] sm:$0xff] }
  0x25   : > { %v882_v51 = vrot.slane %v881_v44, 4  ;;  %v897_v58 = vsel %vm5983_vm5, %v892_v52, %v896_v53  ;;  %v920_v15 = vrot.slane %v918_v10, 5  ;;  %v5516_v33 = vld [vmem:[%s6000_s9 + $0xc] sm:$0xff]  ;;  %v942_v37 = vshll.u32 %v831_v30, 16  ;;  %v832_v38 = vld [vmem:[%s5952_s11 + $0x24] sm:$0xf] }
  0x26   : > { %v1261_v0 = vunpack.c.l.b16 %v897_v58  ;;  %v905_v8 = vor.u32 %v904_v2, %v901_v1  ;;  %v915_v9 = vor.u32 %v914_v4, %v910_v3  ;;  %v5532_v34 = vld [vmem:[%s6006_s13 + $0xc] sm:$0xff]  ;;  %v833_v39 = vld [vmem:[%s5952_s11 + $0x28] sm:$0xf]  ;;  %v947_v43 = vshrl.u32 %v832_v38, 16  ;;  %v5485_v60 = vld [vmem:[%s5952_s11 + $0x18] sm:$0xff]  ;;  %s5773_s14 = scalar_lea.hbm %s5772_s20, 128 }
  0x27   : > { %v887_v57 = vsel %vm5983_vm5, %v882_v51, %v886_v41  ;;  %v944_v42 = vrot.slane %v942_v37, 5  ;;  %v950_v44 = vshll.u32 %v832_v38, 16  ;;  %v956_v45 = vshll.u32 %v833_v39, 16  ;;  %v834_v56 = vld [vmem:[%s5952_s11 + $0x2c] sm:$0x1]  ;;  %v5517_v62 = vld [vmem:[%s6000_s9 + $0x18] sm:$0xff]  ;;  %p5774_p11 = scmp.ne.s32.totalorder %s5772_s20, %s5773_s14 }
  0x28   : > { %v1260_v63 = vunpack.c.l.b16 %v887_v57  ;;  %v906_v13 = vrot.slane %v905_v8, 4  ;;  %v916_v14 = vrot.slane %v915_v9, 4  ;;  %v960_v46 = vshrl.u32 %v833_v39, 16  ;;  %v836_v4 = vld [vmem:[%s5952_s11 + $0x34] sm:$0xf]  ;;  %s5777_s19 = scalar_lea.hbm %s7481_s6, 256 }
  0x29   : > { %v958_v51 = vrot.slane %v956_v45, 5  ;;  %v966_v59 = vshll.u32 %v834_v56, 16  ;;  %v980_v9 = vshll.u32 %v836_v4, 16  ;;  %v984_v10 = vshrl.u32 %v836_v4, 16  ;;  %p5775_p12 = pnand %p5774_p11, %p5897_p5  ;;  %p5779_p1 = scmp.lt.s32.totalorder %s5777_s19, %s5773_s14 }
  0x2a   : > { %v1292_v7 = vpack.c.b16 %v1261_v0, %v1260_v63  ;;  %v962_v52 = vrot.slane %v960_v46, 4  ;;  %v5533_v63 = vld [vmem:[%s6006_s13 + $0x18] sm:$0xff]  ;;  %v5519_v46 = vld [vmem:[%s6000_s9 + $0x30] sm:$0xff] }
  0x2b   : > { %4868 = vmatmul.msk.bf16.gmra.mxu1 %vm458_vm2, %v5504_v17  ;;  %4872 = vmatmul.msk.bf16.gmra.mxu2 %vm458_vm2, %v5508_v18  ;;  %v830_v17 = vld [vmem:[%s5952_s11 + $0x1c] sm:$0xf]  ;;  %v911_v18 = vsel %vm5983_vm5, %v906_v13, %v910_v3  ;;  %v968_v2 = vrot.slane %v966_v59, 5  ;;  %v835_v3 = vld [vmem:[%s5952_s11 + $0x30] sm:$0xf]  ;;  %p5776_p13 = pneg %p5775_p12  ;;  %p5780_p2 = por %p5779_p1, %p5778_p0 }
  0x2c   : > { %v963_v58 = vor.u32 %v962_v52, %v958_v51  ;;  %v974_v8 = vshll.u32 %v835_v3, 16  ;;  %v841_v52 = vld [vmem:[%s5952_s11 + $0x48] sm:$0xf] }
  0x2d   : > { %v1019_v59 = vshrl.u32 %v841_v52, 16  ;;  %p5781_p3 = pnand %p5780_p2, %p5776_p13 }
  0x2e   : > { %4876 = vmatmul.msk.bf16.gmra.mxu3 %vm458_vm2, %v5512_v19  ;;  %4864 = vmatmul.msk.bf16.gmra.mxu0 %vm458_vm2, %v5500_v20  ;;  %v921_v19 = vsel %vm5983_vm5, %v916_v14, %v920_v15  ;;  %v923_v20 = vshrl.u32 %v829_v16, 16  ;;  %v964_v1 = vrot.slane %v963_v58, 4  ;;  %v976_v14 = vrot.slane %v974_v8, 5 }
  0x2f   : > { %v1263_v25 = vunpack.c.l.b16 %v921_v19  ;;  %v982_v15 = vrot.slane %v980_v9, 5  ;;  %v1021_v4 = vrot.slane %v1019_v59, 4 }
  0x30   : > { %v925_v26 = vrot.slane %v923_v20, 4 }
  0x3b   : > { %4869 = vmatmul.msk.bf16.gmra.mxu1 %vm458_vm2, %v5505_v21  ;;  %4873 = vmatmul.msk.bf16.gmra.mxu2 %vm458_vm2, %v5509_v22  ;;  %v926_v21 = vshll.u32 %v829_v16, 16  ;;  %v932_v22 = vshll.u32 %v830_v17, 16  ;;  %v986_v16 = vrot.slane %v984_v10, 4  ;;  %v843_v10 = vld [vmem:[%s5952_s11 + $0x50] sm:$0x1] }
  0x3d   : > { %v928_v27 = vrot.slane %v926_v21, 5  ;;  %v934_v28 = vrot.slane %v932_v22, 5  ;;  %v987_v21 = vor.u32 %v986_v16, %v982_v15  ;;  %v5488_v16 = vld [vmem:[%s5952_s11 + $0x3c] sm:$0xff] }
  0x3e   : > { %4877 = vmatmul.msk.bf16.gmra.mxu3 %vm458_vm2, %v5513_v23  ;;  %4865 = vmatmul.msk.bf16.gmra.mxu0 %vm458_vm2, %v5501_v24  ;;  %v936_v23 = vshrl.u32 %v830_v17, 16  ;;  %v1262_v24 = vunpack.c.l.b16 %v911_v18  ;;  %v837_v17 = vld [vmem:[%s5952_s11 + $0x38] sm:$0x1]  ;;  %v5486_v18 = vld [vmem:[%s5952_s11 + $0x24] sm:$0xff] }
  0x3f   : > { %v929_v35 = vor.u32 %v928_v27, %v925_v26  ;;  %v990_v22 = vshll.u32 %v837_v17, 16  ;;  %v988_v26 = vrot.slane %v987_v21, 4 }
  0x40   : > { %v938_v29 = vrot.slane %v936_v23, 4  ;;  %v1293_v32 = vpack.c.b16 %v1263_v25, %v1262_v24  ;;  %v5518_v23 = vld [vmem:[%s6000_s9 + $0x24] sm:$0xff] }
  0x41   : > { %v930_v40 = vrot.slane %v929_v35, 4  ;;  %v5534_v24 = vld [vmem:[%s6006_s13 + $0x24] sm:$0xff]  ;;  %v992_v27 = vrot.slane %v990_v22, 5 }
  0x42   : > { %v939_v36 = vor.u32 %v938_v29, %v934_v28  ;;  %v839_v29 = vld [vmem:[%s5952_s11 + $0x40] sm:$0xf] }
  0x43   : > { %v1008_v35 = vshrl.u32 %v839_v29, 16 }
  0x44   : > { %v940_v41 = vrot.slane %v939_v36, 4 }
  0x4b   : > { %4870 = vmatmul.msk.bf16.gmra.mxu1 %vm458_vm2, %v5506_v47  ;;  %4874 = vmatmul.msk.bf16.gmra.mxu2 %vm458_vm2, %v5510_v48  ;;  %v935_v47 = vsel %vm5983_vm5, %v930_v40, %v934_v28  ;;  %v945_v48 = vsel %vm5983_vm5, %v940_v41, %v944_v42  ;;  %v838_v28 = vld [vmem:[%s5952_s11 + $0x3c] sm:$0xf]  ;;  %v1010_v41 = vrot.slane %v1008_v35, 4  ;;  %v840_v42 = vld [vmem:[%s5952_s11 + $0x44] sm:$0x1] }
  0x4c   : > { %v1264_v53 = vunpack.c.l.b16 %v935_v47  ;;  %v1265_v55 = vunpack.c.l.b16 %v945_v48  ;;  %v5535_v47 = vld [vmem:[%s6006_s13 + $0x30] sm:$0xff] }
  0x4e   : > { %4878 = vmatmul.msk.bf16.gmra.mxu3 %vm458_vm2, %v5514_v49  ;;  %4866 = vmatmul.msk.bf16.gmra.mxu0 %vm458_vm2, %v5502_v50  ;;  %v949_v49 = vrot.slane %v947_v43, 4  ;;  %v952_v50 = vrot.slane %v950_v44, 5  ;;  %v1294_v61 = vpack.c.b16 %v1265_v55, %v1264_v53  ;;  %v5487_v43 = vld [vmem:[%s5952_s11 + $0x30] sm:$0xff]  ;;  %v842_v53 = vld [vmem:[%s5952_s11 + $0x4c] sm:$0xf] }
  0x50   : > { %v953_v57 = vor.u32 %v952_v50, %v949_v49  ;;  %v1014_v50 = vshll.u32 %v840_v42, 16 }
  0x52   : > { %v954_v0 = vrot.slane %v953_v57, 4  ;;  %v1016_v57 = vrot.slane %v1014_v50, 5 }
  0x54   : > { %v959_v5 = vsel %vm5983_vm5, %v954_v0, %v958_v51 }
  0x5b   : > { %4943 = vmatmul.msk.bf16.vlgmr.msrb.gmra.mxu1 %vm458_vm2, %v5483_v6  ;;  %4960 = vmatmul.msk.bf16.vlgmr.msrb.gmra.mxu2 %vm458_vm2, %v1292_v7  ;;  %v969_v6 = vsel %vm5983_vm5, %v964_v1, %v968_v2  ;;  %v971_v7 = vshrl.u32 %v835_v3, 16 }
  0x5d   : > { %v973_v13 = vrot.slane %v971_v7, 4 }
  0x5e   : > { %5041 = vmatmul.msk.bf16.vlgmr.msrb.gmra.mxu3 %vm458_vm2, %v5515_v11  ;;  %5122 = vmatmul.msk.bf16.vlgmr.msrb.gmra.mxu0 %vm458_vm2, %v5531_v12  ;;  %v1266_v11 = vunpack.c.l.b16 %v959_v5  ;;  %v1267_v12 = vunpack.c.l.b16 %v969_v6 }
  0x5f   : > { %v977_v20 = vor.u32 %v976_v14, %v973_v13  ;;  %v1038_v14 = vshll.u32 %v843_v10, 16 }
  0x60   : > { %v1295_v19 = vpack.c.b16 %v1267_v12, %v1266_v11 }
  0x61   : > { %v978_v25 = vrot.slane %v977_v20, 4  ;;  %v5536_v20 = vld [vmem:[%s6006_s13 + $0x3c] sm:$0xff] }
  0x63   : > { %v983_v30 = vsel %vm5983_vm5, %v978_v25, %v982_v15  ;;  %v844_v25 = vld [vmem:[%s5952_s11 + $0x54] sm:$0xf] }
  0x64   : > { %v1268_v36 = vunpack.c.l.b16 %v983_v30 }
  0x6b   : > { %4944 = vmatmul.msk.bf16.gmra.mxu1 %vm458_vm2, %v5484_v31  ;;  %4961 = vmatmul.msk.bf16.gmra.mxu2 %vm458_vm2, %v1293_v32  ;;  %v993_v31 = vsel %vm5983_vm5, %v988_v26, %v992_v27  ;;  %v995_v32 = vshrl.u32 %v838_v28, 16  ;;  %v845_v26 = vld [vmem:[%s5952_s11 + $0x58] sm:$0xf] }
  0x6c   : > { %v1269_v37 = vunpack.c.l.b16 %v993_v31  ;;  %v1043_v31 = vshrl.u32 %v844_v25, 16 }
  0x6d   : > { %v997_v38 = vrot.slane %v995_v32, 4  ;;  %v1046_v32 = vshll.u32 %v844_v25, 16 }
  0x6e   : > { %5042 = vmatmul.msk.bf16.gmra.mxu3 %vm458_vm2, %v5516_v33  ;;  %5123 = vmatmul.msk.bf16.gmra.mxu0 %vm458_vm2, %v5532_v34  ;;  %v998_v33 = vshll.u32 %v838_v28, 16  ;;  %v1004_v34 = vshll.u32 %v839_v29, 16  ;;  %v1296_v44 = vpack.c.b16 %v1269_v37, %v1268_v36 }
  0x70   : > { %v1000_v39 = vrot.slane %v998_v33, 5  ;;  %v1006_v40 = vrot.slane %v1004_v34, 5  ;;  %v1052_v33 = vshll.u32 %v845_v26, 16  ;;  %v1056_v34 = vshrl.u32 %v845_v26, 16  ;;  %v5490_v26 = vld [vmem:[%s5952_s11 + $0x54] sm:$0xff] }
  0x72   : > { %v1001_v48 = vor.u32 %v1000_v39, %v997_v38  ;;  %v1011_v49 = vor.u32 %v1010_v41, %v1006_v40  ;;  %v1045_v39 = vrot.slane %v1043_v31, 4  ;;  %v1054_v41 = vrot.slane %v1052_v33, 5  ;;  %v5522_v31 = vld [vmem:[%s6000_s9 + $0x54] sm:$0xff] }
  0x73   : > { %v1058_v42 = vrot.slane %v1056_v34, 4 }
  0x74   : > { %v1002_v55 = vrot.slane %v1001_v48, 4  ;;  %v1012_v56 = vrot.slane %v1011_v49, 4 }
  0x75   : > { %v1059_v50 = vor.u32 %v1058_v42, %v1054_v41  ;;  %v850_v42 = vld [vmem:[%s5952_s11 + $0x6c] sm:$0xf] }
  0x76   : > { %v1007_v1 = vsel %vm5983_vm5, %v1002_v55, %v1006_v40  ;;  %v1017_v2 = vsel %vm5983_vm5, %v1012_v56, %v1016_v57  ;;  %v1048_v40 = vrot.slane %v1046_v32, 5  ;;  %v5521_v55 = vld [vmem:[%s6000_s9 + $0x48] sm:$0xff]  ;;  %v5538_v32 = vld [vmem:[%s6006_s13 + $0x54] sm:$0xff] }
  0x77   : > { %v1270_v8 = vunpack.c.l.b16 %v1007_v1  ;;  %v1271_v9 = vunpack.c.l.b16 %v1017_v2  ;;  %v5537_v56 = vld [vmem:[%s6006_s13 + $0x48] sm:$0xff]  ;;  %v848_v1 = vld [vmem:[%s5952_s11 + $0x64] sm:$0xf] }
  0x78   : > { %v1049_v49 = vor.u32 %v1048_v40, %v1045_v39  ;;  %v1076_v10 = vshll.u32 %v848_v1, 16 }
  0x79   : > { %v1297_v17 = vpack.c.b16 %v1271_v9, %v1270_v8 }
  0x7a   : > { %v1050_v59 = vrot.slane %v1049_v49, 4  ;;  %v1091_v49 = vshrl.u32 %v850_v42, 16 }
  0x7b   : > { %4945 = vmatmul.msk.bf16.gmra.mxu1 %vm458_vm2, %v5485_v60  ;;  %4962 = vmatmul.msk.bf16.gmra.mxu2 %vm458_vm2, %v1294_v61  ;;  %v1022_v60 = vshll.u32 %v841_v52, 16  ;;  %v1028_v61 = vshll.u32 %v842_v53, 16 }
  0x7d   : > { %v1024_v5 = vrot.slane %v1022_v60, 5  ;;  %v1030_v6 = vrot.slane %v1028_v61, 5  ;;  %v1060_v60 = vrot.slane %v1059_v50, 4  ;;  %v1094_v50 = vshll.u32 %v850_v42, 16 }
  0x7e   : > { %5043 = vmatmul.msk.bf16.gmra.mxu3 %vm458_vm2, %v5517_v62  ;;  %5124 = vmatmul.msk.bf16.gmra.mxu0 %vm458_vm2, %v5533_v63  ;;  %v1032_v62 = vshrl.u32 %v842_v53, 16 }
  0x7f   : > { %v1025_v12 = vor.u32 %v1024_v5, %v1021_v4  ;;  %v1055_v5 = vsel %vm5983_vm5, %v1050_v59, %v1054_v41 }
  0x80   : > { %v1034_v7 = vrot.slane %v1032_v62, 4  ;;  %v847_v62 = vld [vmem:[%s5952_s11 + $0x60] sm:$0xf] }
  0x81   : > { %v1026_v22 = vrot.slane %v1025_v12, 4  ;;  %v1067_v8 = vshrl.u32 %v847_v62, 16  ;;  %v1070_v9 = vshll.u32 %v847_v62, 16  ;;  %v1080_v12 = vshrl.u32 %v848_v1, 16 }
  0x82   : > { %v1035_v13 = vor.u32 %v1034_v7, %v1030_v6 }
  0x83   : > { %v1031_v28 = vsel %vm5983_vm5, %v1026_v22, %v1030_v6  ;;  %v1082_v22 = vrot.slane %v1080_v12, 4 }
  0x84   : > { %v1272_v37 = vunpack.c.l.b16 %v1031_v28 }
  0x8b   : > { %4946 = vmatmul.msk.bf16.gmra.mxu1 %vm458_vm2, %v5486_v18  ;;  %4963 = vmatmul.msk.bf16.gmra.mxu2 %vm458_vm2, %v1295_v19  ;;  %v5520_v19 = vld [vmem:[%s6000_s9 + $0x3c] sm:$0xff] }
  0x8e   : > { %5044 = vmatmul.msk.bf16.gmra.mxu3 %vm458_vm2, %v5518_v23  ;;  %5125 = vmatmul.msk.bf16.gmra.mxu0 %vm458_vm2, %v5534_v24  ;;  %v1036_v23 = vrot.slane %v1035_v13, 4  ;;  %v1040_v24 = vrot.slane %v1038_v14, 5  ;;  %v1274_v14 = vunpack.c.l.b16 %v1055_v5  ;;  %v1093_v5 = vrot.slane %v1091_v49, 4 }
  0x90   : > { %v1041_v29 = vsel %vm5983_vm5, %v1036_v23, %v1040_v24  ;;  %v849_v23 = vld [vmem:[%s5952_s11 + $0x68] sm:$0x1] }
  0x91   : > { %v1273_v38 = vunpack.c.l.b16 %v1041_v29 }
  0x93   : > { %v1298_v48 = vpack.c.b16 %v1273_v38, %v1272_v37  ;;  %v1086_v37 = vshll.u32 %v849_v23, 16  ;;  %v5539_v23 = vld [vmem:[%s6006_s13 + $0x60] sm:$0xff] }
  0x95   : > { %v1088_v41 = vrot.slane %v1086_v37, 5 }
  0x98   : > { %v6065_v45 = vpop.f32.mrf.mxu1 }
  0x9b   : > { %v6069_v51 = vpop.f32.mrf.mxu0  ;;  %4947 = vmatmul.msk.bf16.gmra.mxu1 %vm458_vm2, %v5487_v43  ;;  %4964 = vmatmul.msk.bf16.gmra.mxu2 %vm458_vm2, %v1296_v44  ;;  %v846_v43 = vld [vmem:[%s5952_s11 + $0x5c] sm:$0x1] }
  0x9c   : > { %v1062_v52 = vshll.u32 %v846_v43, 16  ;;  %v851_v43 = vld [vmem:[%s5952_s11 + $0x70] sm:$0xf] }
  0x9d   : > { %v1100_v59 = vshll.u32 %v851_v43, 16 }
  0x9e   : > { %5045 = vmatmul.msk.bf16.gmra.mxu3 %vm458_vm2, %v5519_v46  ;;  %5126 = vmatmul.msk.bf16.gmra.mxu0 %vm458_vm2, %v5535_v47  ;;  %v6077_v58 = vpop.f32.mrf.mxu2  ;;  %v5489_v47 = vld [vmem:[%s5952_s11 + $0x48] sm:$0xff]  ;;  %v1064_v61 = vrot.slane %v1062_v52, 5 }
  0xa0   : > { %v6081_v0 = vpop.f32.mrf.mxu1  ;;  %v1065_v6 = vsel %vm5983_vm5, %v1060_v60, %v1064_v61  ;;  %v1104_v60 = vshrl.u32 %v851_v43, 16 }
  0xa1   : > { %v6079_v63 = vpop.f32.mrf.mxu3 }
  0xa3   : > { %v6087_v3 = vpop.f32.mrf.mxu0 }
  0xa6   : > { %v6090_v11 = vpop.f32.mrf.mxu2 }
  0xa8   : > { %v6095_v18 = vpop.f32.mrf.mxu1 }
  0xa9   : > { %v6092_v15 = vpop.f32.mrf.mxu3 }
  0xab   : > { %v6099_v21 = vpop.f32.mrf.mxu0  ;;  %4948 = vmatmul.msk.bf16.gmra.mxu1 %vm458_vm2, %v5488_v16  ;;  %4965 = vmatmul.msk.bf16.gmra.mxu2 %vm458_vm2, %v1297_v17  ;;  %v1275_v16 = vunpack.c.l.b16 %v1065_v6  ;;  %v1069_v17 = vrot.slane %v1067_v8, 4  ;;  %v1096_v6 = vrot.slane %v1094_v50, 5  ;;  %v1102_v8 = vrot.slane %v1100_v59, 5 }
  0xad   : > { %v1299_v28 = vpack.c.b16 %v1275_v16, %v1274_v14  ;;  %v5491_v16 = vld [vmem:[%s5952_s11 + $0x60] sm:$0xff] }
  0xae   : > { %5046 = vmatmul.msk.bf16.gmra.mxu3 %vm458_vm2, %v5520_v19  ;;  %5127 = vmatmul.msk.bf16.gmra.mxu0 %vm458_vm2, %v5536_v20  ;;  %v6107_v27 = vpop.f32.mrf.mxu2  ;;  %v1072_v19 = vrot.slane %v1070_v9, 5  ;;  %v1078_v20 = vrot.slane %v1076_v10, 5  ;;  %v1106_v9 = vrot.slane %v1104_v60, 4  ;;  %v852_v10 = vld [vmem:[%s5952_s11 + $0x74] sm:$0x1] }
  0xb0   : > { %v6115_v35 = vpop.f32.mrf.mxu1  ;;  %v1073_v33 = vor.u32 %v1072_v19, %v1069_v17  ;;  %v1083_v34 = vor.u32 %v1082_v22, %v1078_v20  ;;  %v1097_v19 = vor.u32 %v1096_v6, %v1093_v5  ;;  %v5523_v22 = vld [vmem:[%s6000_s9 + $0x60] sm:$0xff] }
  0xb1   : > { %v6113_v30 = vpop.f32.mrf.mxu3 }
  0xb2   : > { %v1074_v39 = vrot.slane %v1073_v33, 4  ;;  %v1084_v40 = vrot.slane %v1083_v34, 4  ;;  %v1098_v33 = vrot.slane %v1097_v19, 4 }
  0xb3   : > { %v6117_v36 = vpop.f32.mrf.mxu0 }
  0xb6   : > { %v6120_v44 = vpop.f32.mrf.mxu2 }
  0xb8   : > { %v6125_v53 = vpop.f32.mrf.mxu1 }
  0xb9   : > { %v6122_v46 = vpop.f32.mrf.mxu3 }
  0xbb   : > { %v6129_v57 = vpop.f32.mrf.mxu0  ;;  %4949 = vmatmul.msk.bf16.gmra.mxu1 %vm458_vm2, %v5489_v47  ;;  %4966 = vmatmul.msk.bf16.gmra.mxu2 %vm458_vm2, %v1298_v48 }
  0xbe   : > { %5047 = vmatmul.msk.bf16.gmra.mxu3 %vm458_vm2, %v5521_v55  ;;  %5128 = vmatmul.msk.bf16.gmra.mxu0 %vm458_vm2, %v5537_v56  ;;  %v6137_v2 = vpop.f32.mrf.mxu2  ;;  %v1079_v55 = vsel %vm5983_vm5, %v1074_v39, %v1078_v20  ;;  %v1089_v56 = vsel %vm5983_vm5, %v1084_v40, %v1088_v41  ;;  %v853_v39 = vld [vmem:[%s5952_s11 + $0x78] sm:$0xf]  ;;  %v854_v40 = vld [vmem:[%s5952_s11 + $0x7c] sm:$0xf] }
  0xbf   : > { %v1276_v62 = vunpack.c.l.b16 %v1079_v55  ;;  %v1277_v1 = vunpack.c.l.b16 %v1089_v56  ;;  %v1115_v49 = vshrl.u32 %v853_v39, 16  ;;  %v1118_v50 = vshll.u32 %v853_v39, 16 }
  0xc0   : > { %v6145_v7 = vpop.f32.mrf.mxu1  ;;  %v1124_v59 = vshll.u32 %v854_v40, 16  ;;  %v1128_v60 = vshrl.u32 %v854_v40, 16 }
  0xc1   : > { %v6139_v4 = vpop.f32.mrf.mxu3  ;;  %v1300_v17 = vpack.c.b16 %v1277_v1, %v1276_v62 }
  0xc2   : > { %v1130_v19 = vrot.slane %v1128_v60, 4 }
  0xc3   : > { %v6147_v13 = vpop.f32.mrf.mxu0 }
  0xc6   : > { %v6150_v24 = vpop.f32.mrf.mxu2 }
  0xc8   : > { %v6155_v29 = vpop.f32.mrf.mxu1 }
  0xc9   : > { %v6152_v25 = vpop.f32.mrf.mxu3 }
  0xcb   : > { %v6159_v38 = vpop.f32.mrf.mxu0  ;;  %4950 = vmatmul.msk.bf16.gmra.mxu1 %vm458_vm2, %v5490_v26  ;;  %4967 = vmatmul.msk.bf16.gmra.mxu2 %vm458_vm2, %v1299_v28  ;;  %v1107_v26 = vor.u32 %v1106_v9, %v1102_v8  ;;  %v1110_v28 = vshll.u32 %v852_v10, 16  ;;  %v1117_v10 = vrot.slane %v1115_v49, 4 }
  0xcd   : > { %v1108_v34 = vrot.slane %v1107_v26, 4  ;;  %v1112_v37 = vrot.slane %v1110_v28, 5  ;;  %v5492_v28 = vld [vmem:[%s5952_s11 + $0x6c] sm:$0xff] }
  0xce   : > { %5048 = vmatmul.msk.bf16.gmra.mxu3 %vm458_vm2, %v5522_v31  ;;  %5129 = vmatmul.msk.bf16.gmra.mxu0 %vm458_vm2, %v5538_v32  ;;  %v6167_v47 = vpop.f32.mrf.mxu2 }
  0xcf   : > { %v1113_v56 = vsel %vm5983_vm5, %v1108_v34, %v1112_v37  ;;  %v5540_v37 = vld [vmem:[%s6006_s13 + $0x6c] sm:$0xff] }
  0xd0   : > { %v6171_v52 = vpop.f32.mrf.mxu1  ;;  %v1279_v9 = vunpack.c.l.b16 %v1113_v56  ;;  %v857_v56 = vld [vmem:[%s5952_s11 + $0x88] sm:$0xf] }
  0xd1   : > { %v6169_v48 = vpop.f32.mrf.mxu3 }
  0xd3   : > { %v6177_v61 = vpop.f32.mrf.mxu0 }
  0xd6   : > { %v6180_v12 = vpop.f32.mrf.mxu2 }
  0xd8   : > { %v743_v20 = vpop.f32.mrf.mxu1 }
  0xd9   : > { %v6182_v14 = vpop.f32.mrf.mxu3  ;;  %v744_v31 = vadd.f32 %v743_v20, %v6069_v51  ;;  %v1103_v51 = vsel %vm5983_vm5, %v1098_v33, %v1102_v8  ;;  %v1120_v8 = vrot.slane %v1118_v50, 5  ;;  %v855_v20 = vld [vmem:[%s5952_s11 + $0x80] sm:$0x1] }
  0xda   : > { %v1278_v6 = vunpack.c.l.b16 %v1103_v51  ;;  %v1134_v40 = vshll.u32 %v855_v20, 16 }
  0xdb   : > { %v1940_v32 = vpop.f32.mrf.mxu0  ;;  %4951 = vmatmul.msk.bf16.gmra.mxu1 %vm458_vm2, %v5491_v16  ;;  %4968 = vmatmul.msk.bf16.gmra.mxu2 %vm458_vm2, %v1300_v17  ;;  %v1126_v17 = vrot.slane %v1124_v59, 5  ;;  %v1121_v33 = vor.u32 %v1120_v8, %v1117_v10  ;;  %v1148_v10 = vshll.u32 %v857_v56, 16  ;;  %v1152_v8 = vshrl.u32 %v857_v56, 16 }
  0xdc   : > { %v1136_v50 = vrot.slane %v1134_v40, 5 }
  0xdd   : > { %v1131_v39 = vor.u32 %v1130_v19, %v1126_v17 }
  0xde   : > { %5049 = vmatmul.msk.bf16.gmra.mxu3 %vm458_vm2, %v5523_v22  ;;  %5130 = vmatmul.msk.bf16.gmra.mxu0 %vm458_vm2, %v5539_v23  ;;  %v1368_v41 = vpop.f32.mrf.mxu2 }
  0xdf   : > { %v1448_v42 = vadd.f32 %v1368_v41, %v744_v31  ;;  %v1301_v31 = vpack.c.b16 %v1279_v9, %v1278_v6  ;;  %v1132_v49 = vrot.slane %v1131_v39, 4 }
  0xe0   : > { %v745_v55 = vpop.f32.mrf.mxu1 }
  0xe1   : > { %v1654_v43 = vpop.f32.mrf.mxu3  ;;  %v746_v1 = vadd.f32 %v745_v55, %v6087_v3  ;;  %v5524_v3 = vld [vmem:[%s6000_s9 + $0x6c] sm:$0xff]  ;;  %v856_v55 = vld [vmem:[%s5952_s11 + $0x84] sm:$0xf] }
  0xe2   : > { %v1734_v62 = vadd.f32 %v1654_v43, %v1448_v42  ;;  %v1122_v43 = vrot.slane %v1121_v33, 4  ;;  %v1142_v6 = vshll.u32 %v856_v55, 16  ;;  %v1150_v33 = vrot.slane %v1148_v10, 5 }
  0xe3   : > { %v1942_v5 = vpop.f32.mrf.mxu0 }
  0xe4   : > { %v6199_v16 = vadd.f32 %v1940_v32, %v1734_v62 }
  0xe6   : > { %v1370_v22 = vpop.f32.mrf.mxu2 }
  0xe7   : > { %v1449_v23 = vadd.f32 %v1370_v22, %v746_v1  ;;  %v1139_v1 = vshrl.u32 %v856_v55, 16 }
  0xe8   : > { %v748_v34 = vpop.f32.mrf.mxu1 }
  0xe9   : > { %v1656_v26 = vpop.f32.mrf.mxu3  ;;  %v749_v32 = vadd.f32 %v748_v34, %v6099_v21  ;;  %v1127_v21 = vsel %vm5983_vm5, %v1122_v43, %v1126_v17  ;;  %v1144_v17 = vrot.slane %v1142_v6, 5  ;;  %v1154_v34 = vrot.slane %v1152_v8, 4 }
  0xea   : > { %v1735_v41 = vadd.f32 %v1656_v26, %v1449_v23  ;;  %v1280_v23 = vunpack.c.l.b16 %v1127_v21 }
  0xeb   : > { %v1945_v42 = vpop.f32.mrf.mxu0  ;;  %4952 = vmatmul.msk.bf16.gmra.mxu1 %vm458_vm2, %v5492_v28  ;;  %4969 = vmatmul.msk.bf16.gmra.mxu2 %vm458_vm2, %v1301_v31  ;;  %v1141_v28 = vrot.slane %v1139_v1, 4  ;;  %v1155_v55 = vor.u32 %v1154_v34, %v1150_v33 }
  0xec   : > { %v6208_v51 = vadd.f32 %v1942_v5, %v1735_v41  ;;  %v1137_v5 = vsel %vm5983_vm5, %v1132_v49, %v1136_v50  ;;  %v5493_v41 = vld [vmem:[%s5952_s11 + $0x78] sm:$0xff] }
  0xed   : > { %v1281_v26 = vunpack.c.l.b16 %v1137_v5  ;;  %v1145_v43 = vor.u32 %v1144_v17, %v1141_v28  ;;  %v5541_v50 = vld [vmem:[%s6006_s13 + $0x78] sm:$0xff]  ;;  %v1156_v1 = vrot.slane %v1155_v55, 4  ;;  %v860_v5 = vld [vmem:[%s5952_s11 + $0x94] sm:$0xf] }
  0xee   : > { %5050 = vmatmul.msk.bf16.gmra.mxu3 %vm458_vm2, %v5524_v3  ;;  %5131 = vmatmul.msk.bf16.gmra.mxu0 %vm458_vm2, %v5540_v37  ;;  %v1373_v59 = vpop.f32.mrf.mxu2  ;;  %v858_v3 = vld [vmem:[%s5952_s11 + $0x8c] sm:$0x1]  ;;  %v1172_v28 = vshll.u32 %v860_v5, 16  ;;  %v1176_v17 = vshrl.u32 %v860_v5, 16 }
  0xef   : > { %v1450_v60 = vadd.f32 %v1373_v59, %v749_v32  ;;  %v1302_v32 = vpack.c.b16 %v1281_v26, %v1280_v23  ;;  %v1158_v56 = vshll.u32 %v858_v3, 16 }
  0xf0   : > { %v750_v9 = vpop.f32.mrf.mxu1 }
  0xf1   : > { %v1659_v62 = vpop.f32.mrf.mxu3  ;;  %v751_v20 = vadd.f32 %v750_v9, %v6117_v36  ;;  %v5525_v36 = vld [vmem:[%s6000_s9 + $0x78] sm:$0xff]  ;;  %v1160_v6 = vrot.slane %v1158_v56, 5  ;;  %v859_v9 = vld [vmem:[%s5952_s11 + $0x90] sm:$0xf] }
  0xf2   : > { %v1736_v19 = vadd.f32 %v1659_v62, %v1450_v60  ;;  %v1146_v62 = vrot.slane %v1145_v43, 4  ;;  %v1166_v23 = vshll.u32 %v859_v9, 16  ;;  %v1174_v43 = vrot.slane %v1172_v28, 5 }
  0xf3   : > { %v1947_v22 = vpop.f32.mrf.mxu0 }
  0xf4   : > { %v6219_v31 = vadd.f32 %v1945_v42, %v1736_v19 }
  0xf6   : > { %v1375_v37 = vpop.f32.mrf.mxu2 }
  0xf7   : > { %v1451_v39 = vadd.f32 %v1375_v37, %v751_v20  ;;  %v1163_v20 = vshrl.u32 %v859_v9, 16 }
  0xf8   : > { %v753_v49 = vpop.f32.mrf.mxu1 }
  0xf9   : > { %v1661_v40 = vpop.f32.mrf.mxu3  ;;  %v754_v42 = vadd.f32 %v753_v49, %v6129_v57  ;;  %v1151_v57 = vsel %vm5983_vm5, %v1146_v62, %v1150_v33  ;;  %v1168_v33 = vrot.slane %v1166_v23, 5  ;;  %v1178_v49 = vrot.slane %v1176_v17, 4 }
  0xfa   : > { %v1737_v59 = vadd.f32 %v1661_v40, %v1451_v39  ;;  %v1282_v39 = vunpack.c.l.b16 %v1151_v57 }
  0xfb   : > { %v1950_v60 = vpop.f32.mrf.mxu0  ;;  %4953 = vmatmul.msk.bf16.gmra.mxu1 %vm458_vm2, %v5493_v41  ;;  %4970 = vmatmul.msk.bf16.gmra.mxu2 %vm458_vm2, %v1302_v32  ;;  %v1165_v41 = vrot.slane %v1163_v20, 4  ;;  %v1179_v9 = vor.u32 %v1178_v49, %v1174_v43 }
  0xfc   : > { %v6228_v21 = vadd.f32 %v1947_v22, %v1737_v59  ;;  %v1161_v22 = vsel %vm5983_vm5, %v1156_v1, %v1160_v6  ;;  %v5494_v59 = vld [vmem:[%s5952_s11 + $0x84] sm:$0xff] }
  0xfd   : > { %v1283_v40 = vunpack.c.l.b16 %v1161_v22  ;;  %v1169_v62 = vor.u32 %v1168_v33, %v1165_v41  ;;  %v5542_v6 = vld [vmem:[%s6006_s13 + $0x84] sm:$0xff]  ;;  %v1180_v20 = vrot.slane %v1179_v9, 4  ;;  %v863_v22 = vld [vmem:[%s5952_s11 + $0xa0] sm:$0xf] }
  0xfe   : > { %5051 = vmatmul.msk.bf16.gmra.mxu3 %vm458_vm2, %v5525_v36  ;;  %5132 = vmatmul.msk.bf16.gmra.mxu0 %vm458_vm2, %v5541_v50  ;;  %v1378_v10 = vpop.f32.mrf.mxu2  ;;  %v861_v36 = vld [vmem:[%s5952_s11 + $0x98] sm:$0x1]  ;;  %v1196_v41 = vshll.u32 %v863_v22, 16  ;;  %v1200_v33 = vshrl.u32 %v863_v22, 16 }
  0xff   : > { %v1452_v8 = vadd.f32 %v1378_v10, %v754_v42  ;;  %v1303_v42 = vpack.c.b16 %v1283_v40, %v1282_v39  ;;  %v1182_v5 = vshll.u32 %v861_v36, 16 }
 0x100   : > { %v755_v26 = vpop.f32.mrf.mxu1 }
 0x101   : > { %v1664_v19 = vpop.f32.mrf.mxu3  ;;  %v756_v3 = vadd.f32 %v755_v26, %v6147_v13  ;;  %v5526_v13 = vld [vmem:[%s6000_s9 + $0x84] sm:$0xff]  ;;  %v1184_v23 = vrot.slane %v1182_v5, 5  ;;  %v862_v26 = vld [vmem:[%s5952_s11 + $0x9c] sm:$0xf] }
 0x102   : > { %v1738_v34 = vadd.f32 %v1664_v19, %v1452_v8  ;;  %v1170_v19 = vrot.slane %v1169_v62, 4  ;;  %v1190_v39 = vshll.u32 %v862_v26, 16  ;;  %v1198_v62 = vrot.slane %v1196_v41, 5 }
 0x103   : > { %v1952_v37 = vpop.f32.mrf.mxu0 }
 0x104   : > { %v6239_v32 = vadd.f32 %v1950_v60, %v1738_v34 }
 0x106   : > { %v1380_v50 = vpop.f32.mrf.mxu2 }
 0x107   : > { %v1453_v55 = vadd.f32 %v1380_v50, %v756_v3  ;;  %v1187_v3 = vshrl.u32 %v862_v26, 16 }
 0x108   : > { %v758_v1 = vpop.f32.mrf.mxu1 }
 0x109   : > { %v1666_v56 = vpop.f32.mrf.mxu3  ;;  %v759_v60 = vadd.f32 %v758_v1, %v6159_v38  ;;  %v1175_v38 = vsel %vm5983_vm5, %v1170_v19, %v1174_v43  ;;  %v1192_v43 = vrot.slane %v1190_v39, 5  ;;  %v1202_v1 = vrot.slane %v1200_v33, 4  ;;  %v865_v39 = vld [vmem:[%s5952_s11 + $0xa8] sm:$0xf] }
 0x10a   : > { %v1739_v10 = vadd.f32 %v1666_v56, %v1453_v55  ;;  %v1284_v55 = vunpack.c.l.b16 %v1175_v38 }
 0x10b   : > { %v1955_v8 = vpop.f32.mrf.mxu0  ;;  %4954 = vmatmul.msk.bf16.gmra.mxu1 %vm458_vm2, %v5494_v59  ;;  %4971 = vmatmul.msk.bf16.gmra.mxu2 %vm458_vm2, %v1303_v42  ;;  %v1189_v59 = vrot.slane %v1187_v3, 4  ;;  %v1203_v26 = vor.u32 %v1202_v1, %v1198_v62 }
 0x10c   : > { %v6248_v57 = vadd.f32 %v1952_v37, %v1739_v10  ;;  %v1185_v37 = vsel %vm5983_vm5, %v1180_v20, %v1184_v23  ;;  %v5495_v10 = vld [vmem:[%s5952_s11 + $0x90] sm:$0xff] }
 0x10d   : > { %v1285_v56 = vunpack.c.l.b16 %v1185_v37  ;;  %v1193_v19 = vor.u32 %v1192_v43, %v1189_v59  ;;  %v5527_v20 = vld [vmem:[%s6000_s9 + $0x90] sm:$0xff]  ;;  %v1204_v38 = vrot.slane %v1203_v26, 4  ;;  %v866_v37 = vld [vmem:[%s5952_s11 + $0xac] sm:$0xf] }
 0x10e   : > { %5052 = vmatmul.msk.bf16.gmra.mxu3 %vm458_vm2, %v5526_v13  ;;  %5133 = vmatmul.msk.bf16.gmra.mxu0 %vm458_vm2, %v5542_v6  ;;  %v1383_v28 = vpop.f32.mrf.mxu2  ;;  %v864_v13 = vld [vmem:[%s5952_s11 + $0xa4] sm:$0x1]  ;;  %v5543_v23 = vld [vmem:[%s6006_s13 + $0x90] sm:$0xff]  ;;  %v1220_v43 = vshll.u32 %v866_v37, 16  ;;  %v1224_v1 = vshrl.u32 %v866_v37, 16 }
 0x10f   : > { %v1454_v17 = vadd.f32 %v1383_v28, %v759_v60  ;;  %v1304_v60 = vpack.c.b16 %v1285_v56, %v1284_v55  ;;  %v1206_v22 = vshll.u32 %v864_v13, 16  ;;  %v1211_v55 = vshrl.u32 %v865_v39, 16 }
 0x110   : > { %v760_v40 = vpop.f32.mrf.mxu1 }
 0x111   : > { %v1669_v34 = vpop.f32.mrf.mxu3  ;;  %v761_v36 = vadd.f32 %v760_v40, %v6177_v61  ;;  %v1208_v3 = vrot.slane %v1206_v22, 5 }
 0x112   : > { %v1740_v49 = vadd.f32 %v1669_v34, %v1454_v17 }
 0x113   : > { %v1957_v50 = vpop.f32.mrf.mxu0  ;;  %v1209_v59 = vsel %vm5983_vm5, %v1204_v38, %v1208_v3 }
 0x114   : > { %v6259_v42 = vadd.f32 %v1955_v8, %v1740_v49  ;;  %v1194_v8 = vrot.slane %v1193_v19, 4  ;;  %v1226_v19 = vrot.slane %v1224_v1, 4 }
 0x116   : > { %v1385_v6 = vpop.f32.mrf.mxu2 }
 0x117   : > { %v1455_v9 = vadd.f32 %v1385_v6, %v761_v36  ;;  %v1199_v36 = vsel %vm5983_vm5, %v1194_v8, %v1198_v62  ;;  %v1222_v62 = vrot.slane %v1220_v43, 5 }
 0x118   : > { %v763_v61 = vpop.f32.mrf.mxu1 }
 0x119   : > { %v1671_v5 = vpop.f32.mrf.mxu3  ;;  %v764_v40 = vadd.f32 %v763_v61, %v6065_v45  ;;  %v1286_v45 = vunpack.c.l.b16 %v1199_v36  ;;  %v1227_v37 = vor.u32 %v1226_v19, %v1222_v62 }
 0x11a   : > { %v1741_v28 = vadd.f32 %v1671_v5, %v1455_v9  ;;  %v1287_v9 = vunpack.c.l.b16 %v1209_v59  ;;  %v1213_v5 = vrot.slane %v1211_v55, 4  ;;  %v869_v59 = vld [vmem:[%s5952_s11 + $0xb8] sm:$0xf] }
 0x11b   : > { %v1960_v17 = vpop.f32.mrf.mxu0  ;;  %4955 = vmatmul.msk.bf16.gmra.mxu1 %vm458_vm2, %v5495_v10  ;;  %4972 = vmatmul.msk.bf16.gmra.mxu2 %vm458_vm2, %v1304_v60  ;;  %v1228_v36 = vrot.slane %v1227_v37, 4  ;;  %v1244_v19 = vshll.u32 %v869_v59, 16 }
 0x11c   : > { %v6267_v34 = vadd.f32 %v1957_v50, %v1741_v28  ;;  %v1214_v50 = vshll.u32 %v865_v39, 16  ;;  %v5496_v28 = vld [vmem:[%s5952_s11 + $0x9c] sm:$0xff]  ;;  %v1305_v8 = vpack.c.b16 %v1287_v9, %v1286_v45 }
 0x11d   : > { %v5528_v39 = vld [vmem:[%s6000_s9 + $0x9c] sm:$0xff] }
 0x11e   : > { %5053 = vmatmul.msk.bf16.gmra.mxu3 %vm458_vm2, %v5527_v20  ;;  %5134 = vmatmul.msk.bf16.gmra.mxu0 %vm458_vm2, %v5543_v23  ;;  %v1388_v41 = vpop.f32.mrf.mxu2  ;;  %v1216_v10 = vrot.slane %v1214_v50, 5  ;;  %v867_v20 = vld [vmem:[%s5952_s11 + $0xb0] sm:$0x1]  ;;  %v868_v50 = vld [vmem:[%s5952_s11 + $0xb4] sm:$0xf] }
 0x11f   : > { %v1456_v33 = vadd.f32 %v1388_v41, %v764_v40  ;;  %v5544_v40 = vld [vmem:[%s6006_s13 + $0x9c] sm:$0xff]  ;;  %v1230_v41 = vshll.u32 %v867_v20, 16  ;;  %v1235_v9 = vshrl.u32 %v868_v50, 16 }
 0x120   : > { %v765_v56 = vpop.f32.mrf.mxu1  ;;  %v1217_v38 = vor.u32 %v1216_v10, %v1213_v5  ;;  %v1238_v10 = vshll.u32 %v868_v50, 16  ;;  %v5545_v50 = vld [vmem:[%s6006_s13 + $0xa8] sm:$0xff] }
 0x121   : > { %v1674_v49 = vpop.f32.mrf.mxu3  ;;  %v766_v61 = vadd.f32 %v765_v56, %v6081_v0  ;;  %v1232_v55 = vrot.slane %v1230_v41, 5 }
 0x122   : > { %v1742_v13 = vadd.f32 %v1674_v49, %v1456_v33  ;;  %v1218_v0 = vrot.slane %v1217_v38, 4 }
 0x123   : > { %v1962_v6 = vpop.f32.mrf.mxu0  ;;  %v1233_v5 = vsel %vm5983_vm5, %v1228_v36, %v1232_v55  ;;  %v5529_v55 = vld [vmem:[%s6000_s9 + $0xa8] sm:$0xff] }
 0x124   : > { %v6278_v60 = vadd.f32 %v1960_v17, %v1742_v13  ;;  %v1223_v45 = vsel %vm5983_vm5, %v1218_v0, %v1222_v62 }
 0x126   : > { %v1390_v23 = vpop.f32.mrf.mxu2 }
 0x127   : > { %v1457_v26 = vadd.f32 %v1390_v23, %v766_v61  ;;  %v1248_v61 = vshrl.u32 %v869_v59, 16 }
 0x128   : > { %v768_v3 = vpop.f32.mrf.mxu1 }
 0x129   : > { %v1676_v22 = vpop.f32.mrf.mxu3  ;;  %v769_v56 = vadd.f32 %v768_v3, %v6095_v18  ;;  %v1288_v18 = vunpack.c.l.b16 %v1223_v45  ;;  %v1250_v62 = vrot.slane %v1248_v61, 4  ;;  %v5381_v45 = vld [vmem:[%s5952_s11 + $0xc] sm:$0xf] }
 0x12a   : > { %v1743_v17 = vadd.f32 %v1676_v22, %v1457_v26  ;;  %v1289_v26 = vunpack.c.l.b16 %v1233_v5  ;;  %v1237_v22 = vrot.slane %v1235_v9, 4 }
 0x12b   : > { %v1965_v33 = vpop.f32.mrf.mxu0  ;;  %4956 = vmatmul.msk.bf16.gmra.mxu1 %vm458_vm2, %v5496_v28  ;;  %4973 = vmatmul.msk.bf16.gmra.mxu2 %vm458_vm2, %v1305_v8  ;;  %v1240_v28 = vrot.slane %v1238_v10, 5  ;;  %v1246_v8 = vrot.slane %v1244_v19, 5 }
 0x12c   : > { %v6287_v49 = vadd.f32 %v1962_v6, %v1743_v17  ;;  %v5497_v17 = vld [vmem:[%s5952_s11 + $0xa8] sm:$0xff]  ;;  %v1306_v0 = vpack.c.b16 %v1289_v26, %v1288_v18  ;;  %v5382_v18 = vld [vmem:[%s5952_s11 + $0x10] sm:$0xf] }
 0x12d   : > { %v1251_v59 = vor.u32 %v1250_v62, %v1246_v8  ;;  %v3329_v62 = vshrl.u32 %v5381_v45, 16 }
 0x12e   : > { %5054 = vmatmul.msk.bf16.gmra.mxu3 %vm458_vm2, %v5528_v39  ;;  %5135 = vmatmul.msk.bf16.gmra.mxu0 %vm458_vm2, %v5544_v40  ;;  %v1393_v43 = vpop.f32.mrf.mxu2  ;;  %v870_v39 = vld [vmem:[%s5952_s11 + $0xbc] sm:$0x1] }
 0x12f   : > { %v1458_v1 = vadd.f32 %v1393_v43, %v769_v56  ;;  %v1241_v56 = vor.u32 %v1240_v28, %v1237_v22  ;;  %v1254_v43 = vshll.u32 %v870_v39, 16  ;;  %v1252_v5 = vrot.slane %v1251_v59, 4 }
 0x130   : > { %v770_v6 = vpop.f32.mrf.mxu1 }
 0x131   : > { %v1679_v13 = vpop.f32.mrf.mxu3  ;;  %v771_v3 = vadd.f32 %v770_v6, %v6115_v35  ;;  %v2053_v35 = vld [vmem:[%s6000_s9 + $0x4] sm:$0xf]  ;;  %v1242_v6 = vrot.slane %v1241_v56, 4  ;;  %v1256_v10 = vrot.slane %v1254_v43, 5  ;;  %v3331_v43 = vrot.slane %v3329_v62, 4 }
 0x132   : > { %v1744_v20 = vadd.f32 %v1679_v13, %v1458_v1  ;;  %v2052_v13 = vld [vmem:[%s6000_s9] sm:$0xf]  ;;  %v2110_v22 = vshll.u32 %v2053_v35, 16  ;;  %v2114_v28 = vshrl.u32 %v2053_v35, 16 }
 0x133   : > { %v1967_v23 = vpop.f32.mrf.mxu0  ;;  %v2101_v61 = vshrl.u32 %v2052_v13, 16 }
 0x134   : > { %v6298_v38 = vadd.f32 %v1965_v33, %v1744_v20  ;;  %v2104_v20 = vshll.u32 %v2052_v13, 16  ;;  %v2112_v56 = vrot.slane %v2110_v22, 5  ;;  %v2116_v59 = vrot.slane %v2114_v28, 4 }
 0x136   : > { %v1395_v40 = vpop.f32.mrf.mxu2 }
 0x137   : > { %v1459_v37 = vadd.f32 %v1395_v40, %v771_v3  ;;  %v3332_v3 = vshll.u32 %v5381_v45, 16  ;;  %v2054_v45 = vld [vmem:[%s6000_s9 + $0x8] sm:$0x1] }
 0x138   : > { %v773_v36 = vpop.f32.mrf.mxu1 }
 0x139   : > { %v1681_v41 = vpop.f32.mrf.mxu3  ;;  %v774_v19 = vadd.f32 %v773_v36, %v6125_v53  ;;  %v3342_v53 = vshrl.u32 %v5382_v18, 16 }
 0x13a   : > { %v1745_v1 = vadd.f32 %v1681_v41, %v1459_v37  ;;  %v1247_v37 = vsel %vm5983_vm5, %v1242_v6, %v1246_v8  ;;  %v1257_v41 = vsel %vm5983_vm5, %v1252_v5, %v1256_v10 }
 0x13b   : > { %v1970_v33 = vpop.f32.mrf.mxu0  ;;  %4957 = vmatmul.msk.bf16.gmra.mxu1 %vm458_vm2, %v5497_v17  ;;  %4974 = vmatmul.msk.bf16.gmra.mxu2 %vm458_vm2, %v1306_v0  ;;  %v3338_v17 = vshll.u32 %v5382_v18, 16  ;;  %v1290_v13 = vunpack.c.l.b16 %v1247_v37  ;;  %v1291_v35 = vunpack.c.l.b16 %v1257_v41  ;;  %v3344_v6 = vrot.slane %v3342_v53, 4  ;;  %v5530_v37 = vld [vmem:[%s6000_s9 + $0xb4] sm:$0xff] }
 0x13c   : > { %v6310_v9 = vadd.f32 %v1967_v23, %v1745_v1  ;;  %v3334_v1 = vrot.slane %v3332_v3, 5  ;;  %v5498_v3 = vld [vmem:[%s5952_s11 + $0xb4] sm:$0xff] }
 0x13d   : > { %v3340_v8 = vrot.slane %v3338_v17, 5  ;;  %v5546_v41 = vld [vmem:[%s6006_s13 + $0xb4] sm:$0xff]  ;;  %s4676_s13 = scalar_lea.sflag [#allocation3], %s287_s15 }
 0x13e   : > { %5055 = vmatmul.msk.bf16.gmra.mxu3 %vm458_vm2, %v5529_v55  ;;  %5136 = vmatmul.msk.bf16.gmra.mxu0 %vm458_vm2, %v5545_v50  ;;  %v1398_v26 = vpop.f32.mrf.mxu2  ;;  %v2103_v55 = vrot.slane %v2101_v61, 4  ;;  %v2106_v50 = vrot.slane %v2104_v20, 5  ;;  %v2117_v20 = vor.u32 %v2116_v59, %v2112_v56  ;;  %v3335_v22 = vor.u32 %v3334_v1, %v3331_v43 }
 0x13f   : > { %v1460_v39 = vadd.f32 %v1398_v26, %v774_v19  ;;  %v5383_v19 = vld [vmem:[%s5952_s11 + $0x14] sm:$0x1]  ;;  %v2120_v26 = vshll.u32 %v2054_v45, 16  ;;  %v3345_v17 = vor.u32 %v3344_v6, %v3340_v8  ;;  %v5384_v6 = vld [vmem:[%s5952_s11 + $0x18] sm:$0xf] }
 0x140   : > { %v775_v40 = vpop.f32.mrf.mxu1  ;;  %v2107_v61 = vor.u32 %v2106_v50, %v2103_v55  ;;  %v3336_v50 = vrot.slane %v3335_v22, 4 }
 0x141   : > { %v1684_v23 = vpop.f32.mrf.mxu3  ;;  %v776_v10 = vadd.f32 %v775_v40, %v6145_v7  ;;  %v2122_v55 = vrot.slane %v2120_v26, 5  ;;  %v3346_v43 = vrot.slane %v3345_v17, 4 }
 0x142   : > { %v1746_v0 = vadd.f32 %v1684_v23, %v1460_v39  ;;  %v1307_v39 = vpack.c.b16 %v1291_v35, %v1290_v13  ;;  %v2108_v40 = vrot.slane %v2107_v61, 4  ;;  %v2055_v13 = vld [vmem:[%s6000_s9 + $0xc] sm:$0xf]  ;;  %v2056_v35 = vld [vmem:[%s6000_s9 + $0x10] sm:$0xf] }
 0x143   : > { %v1972_v36 = vpop.f32.mrf.mxu0  ;;  %v5385_v61 = vld [vmem:[%s5952_s11 + $0x1c] sm:$0xf]  ;;  %v2125_v22 = vshrl.u32 %v2055_v13, 16 }
 0x144   : > { %v6321_v5 = vadd.f32 %v1970_v33, %v1746_v0  ;;  %v3348_v33 = vshll.u32 %v5383_v19, 16  ;;  %v2118_v0 = vrot.slane %v2117_v20, 4  ;;  %v2113_v19 = vsel %vm5983_vm5, %v2108_v40, %v2112_v56 }
 0x145   : > { %v3362_v17 = vshll.u32 %v5385_v61, 16 }
 0x146   : > { %v1400_v18 = vpop.f32.mrf.mxu2  ;;  %v3350_v1 = vrot.slane %v3348_v33, 5  ;;  %v3366_v33 = vshrl.u32 %v5385_v61, 16 }
 0x147   : > { %v1461_v28 = vadd.f32 %v1400_v18, %v776_v10  ;;  %v2123_v18 = vsel %vm5983_vm5, %v2118_v0, %v2122_v55  ;;  %v2127_v55 = vrot.slane %v2125_v22, 4  ;;  %v3364_v61 = vrot.slane %v3362_v17, 5 }
 0x148   : > { %v778_v23 = vpop.f32.mrf.mxu1 }
 0x149   : > { %v1686_v62 = vpop.f32.mrf.mxu3  ;;  %v779_v45 = vadd.f32 %v778_v23, %v6155_v29  ;;  %v3351_v29 = vsel %vm5983_vm5, %v3346_v43, %v3350_v1  ;;  %v3353_v23 = vshrl.u32 %v5384_v6, 16 }
 0x14a   : > { %v1747_v53 = vadd.f32 %v1686_v62, %v1461_v28  ;;  %v2128_v28 = vshll.u32 %v2055_v13, 16  ;;  %v2134_v62 = vshll.u32 %v2056_v35, 16  ;;  %v3715_v0 = vunpack.c.l.b16 %v3351_v29 }
 0x14b   : > { %v1975_v7 = vpop.f32.mrf.mxu0  ;;  %4958 = vmatmul.msk.bf16.gmra.mxu1 %vm458_vm2, %v5498_v3  ;;  %4975 = vmatmul.msk.bf16.gmra.mxu2 %vm458_vm2, %v1307_v39  ;;  %v2138_v39 = vshrl.u32 %v2056_v35, 16  ;;  %v3355_v43 = vrot.slane %v3353_v23, 4  ;;  %v5563_v23 = vld [vmem:[%s5930_s29 + $0xc] sm:$0xff] }
 0x14c   : > { %v6330_v59 = vadd.f32 %v1972_v36, %v1747_v53  ;;  %v3341_v36 = vsel %vm5983_vm5, %v3336_v50, %v3340_v8  ;;  %v2486_v8 = vunpack.c.l.b16 %v2113_v19  ;;  %v2487_v53 = vunpack.c.l.b16 %v2123_v18 }
 0x14d   : > { %v3714_v40 = vunpack.c.l.b16 %v3341_v36  ;;  %v2130_v50 = vrot.slane %v2128_v28, 5  ;;  %v6347_v13 = vrot.slane %v2134_v62, 5  ;;  %v3368_v19 = vrot.slane %v3366_v33, 4  ;;  %v5547_v28 = vld [vmem:[%s5952_s11 + $0xc] sm:$0xff] }
 0x14e   : > { %5056 = vmatmul.msk.bf16.gmra.mxu3 %vm458_vm2, %v5530_v37  ;;  %5137 = vmatmul.msk.bf16.gmra.mxu0 %vm458_vm2, %v5546_v41  ;;  %v1403_v10 = vpop.f32.mrf.mxu2  ;;  %v3356_v37 = vshll.u32 %v5384_v6, 16  ;;  %v2518_v22 = vpack.c.b16 %v2487_v53, %v2486_v8  ;;  %v2059_v53 = vld [vmem:[%s6000_s9 + $0x1c] sm:$0xf] }
 0x14f   : > { %v1462_v20 = vadd.f32 %v1403_v10, %v779_v45  ;;  %v2140_v45 = vrot.slane %v2138_v39, 4  ;;  %v2057_v10 = vld [vmem:[%s6000_s9 + $0x14] sm:$0x1]  ;;  %v3746_v62 = vpack.c.b16 %v3715_v0, %v3714_v40  ;;  %v2131_v29 = vor.u32 %v2130_v50, %v2127_v55  ;;  %v5387_v40 = vld [vmem:[%s5952_s11 + $0x24] sm:$0xf] }
 0x150   : > { %v780_v3 = vpop.f32.mrf.mxu1  ;;  %v3358_v1 = vrot.slane %v3356_v37, 5  ;;  %v2144_v37 = vshll.u32 %v2057_v10, 16  ;;  %v3369_v33 = vor.u32 %v3368_v19, %v3364_v61  ;;  %v5388_v19 = vld [vmem:[%s5952_s11 + $0x28] sm:$0xf] }
 0x151   : > { %v1689_v26 = vpop.f32.mrf.mxu3  ;;  %v781_v6 = vadd.f32 %v780_v3, %v6171_v52  ;;  %v2132_v8 = vrot.slane %v2131_v29, 4 }
 0x152   : > { %v1748_v56 = vadd.f32 %v1689_v26, %v1462_v20  ;;  %v5386_v20 = vld [vmem:[%s5952_s11 + $0x20] sm:$0x1]  ;;  %v3359_v52 = vor.u32 %v3358_v1, %v3355_v43  ;;  %v2146_v50 = vrot.slane %v2144_v37, 5 }
 0x153   : > { %v1977_v41 = vpop.f32.mrf.mxu0  ;;  %v3372_v3 = vshll.u32 %v5386_v20, 16 }
 0x154   : > { %v6349_v35 = vadd.f32 %v1975_v7, %v1748_v56  ;;  %v2141_v7 = vor.u32 %v2140_v45, %v6347_v13  ;;  %v3360_v45 = vrot.slane %v3359_v52, 4 }
 0x155   : > { %v3374_v43 = vrot.slane %v3372_v3, 5 }
 0x156   : > { %7486 = vst [vmem:[#allocation5_spill] sm:$0xff] %v6349_v35  ;;  %v1405_v18 = vpop.f32.mrf.mxu2  ;;  %v2058_v35 = vld [vmem:[%s6000_s9 + $0x18] sm:$0xf]  ;;  %v2142_v55 = vrot.slane %v2141_v7, 4 }
 0x157   : > { %v1463_v36 = vadd.f32 %v1405_v18, %v781_v6  ;;  %v3370_v6 = vrot.slane %v3369_v33, 4  ;;  %v2149_v10 = vshrl.u32 %v2058_v35, 16  ;;  %v2152_v20 = vshll.u32 %v2058_v35, 16 }
 0x158   : > { %v783_v39 = vpop.f32.mrf.mxu1  ;;  %v2147_v7 = vsel %vm5983_vm5, %v2142_v55, %v2146_v50  ;;  %v3386_v35 = vshll.u32 %v5388_v19, 16 }
 0x159   : > { %v1691_v26 = vpop.f32.mrf.mxu3  ;;  %v784_v1 = vadd.f32 %v783_v39, %v6077_v58  ;;  %v3365_v58 = vsel %vm5983_vm5, %v3360_v45, %v3364_v61  ;;  %v3390_v39 = vshrl.u32 %v5388_v19, 16  ;;  %v3375_v3 = vsel %vm5983_vm5, %v3370_v6, %v3374_v43  ;;  %v2060_v61 = vld [vmem:[%s6000_s9 + $0x20] sm:$0x1]  ;;  %v5389_v6 = vld [vmem:[%s5952_s11 + $0x2c] sm:$0x1] }
 0x15a   : > { %v1749_v56 = vadd.f32 %v1691_v26, %v1463_v36  ;;  %v2158_v36 = vshll.u32 %v2059_v53, 16  ;;  %v2162_v26 = vshrl.u32 %v2059_v53, 16  ;;  %v2154_v33 = vrot.slane %v2152_v20, 5 }
 0x15b   : > { %v1980_v17 = vpop.f32.mrf.mxu0  ;;  %5139 = vmatmul.msk.bf16.vlgmr.msra.gmra.mxu1 %vm458_vm2, %v2518_v22  ;;  %5252 = vmatmul.msk.bf16.vlgmr.msra.gmra.mxu2 %vm458_vm2, %v5547_v28  ;;  %v3377_v22 = vshrl.u32 %v5387_v40, 16  ;;  %v2489_v50 = vunpack.c.l.b16 %v2147_v7  ;;  %v3717_v45 = vunpack.c.l.b16 %v3375_v3  ;;  %v3388_v19 = vrot.slane %v3386_v35, 5  ;;  %v5548_v7 = vld [vmem:[%s5952_s11 + $0x18] sm:$0xff] }
 0x15c   : > { %v6362_v0 = vadd.f32 %v1977_v41, %v1749_v56  ;;  %v3380_v41 = vshll.u32 %v5387_v40, 16  ;;  %v2151_v56 = vrot.slane %v2149_v10, 4  ;;  %v6377_v53 = vrot.slane %v2158_v36, 5  ;;  %v5564_v3 = vld [vmem:[%s5930_s29 + $0x18] sm:$0xff] }
 0x15e   : > { %7487 = vst [vmem:[#allocation6_spill] sm:$0xff] %v6362_v0  ;;  %5365 = vmatmul.msk.bf16.vlgmr.msra.gmra.mxu3 %vm458_vm2, %v5563_v23  ;;  %5430 = vmatmul.msk.bf16.vlgmr.msra.gmra.mxu0 %vm458_vm2, %v3746_v62  ;;  %v1408_v18 = vpop.f32.mrf.mxu2  ;;  %v2137_v62 = vsel %vm5983_vm5, %v2132_v8, %v6347_v13  ;;  %v2164_v13 = vrot.slane %v2162_v26, 4  ;;  %v3379_v8 = vrot.slane %v3377_v22, 4  ;;  %v3382_v40 = vrot.slane %v3380_v41, 5 }
 0x15f   : > { %v1464_v28 = vadd.f32 %v1408_v18, %v784_v1  ;;  %v2488_v55 = vunpack.c.l.b16 %v2137_v62  ;;  %v3716_v1 = vunpack.c.l.b16 %v3365_v58  ;;  %v3392_v18 = vrot.slane %v3390_v39, 4 }
 0x160   : > { %v785_v23 = vpop.f32.mrf.mxu1  ;;  %v2155_v20 = vor.u32 %v2154_v33, %v2151_v56  ;;  %v2165_v36 = vor.u32 %v2164_v13, %v6377_v53  ;;  %v2168_v26 = vshll.u32 %v2060_v61, 16  ;;  %v3383_v22 = vor.u32 %v3382_v40, %v3379_v8  ;;  %v5390_v61 = vld [vmem:[%s5952_s11 + $0x30] sm:$0xf] }
 0x161   : > { %v1694_v29 = vpop.f32.mrf.mxu3  ;;  %v786_v43 = vadd.f32 %v785_v23, %v6090_v11  ;;  %v2519_v62 = vpack.c.b16 %v2489_v50, %v2488_v55  ;;  %v3747_v0 = vpack.c.b16 %v3717_v45, %v3716_v1  ;;  %v3393_v35 = vor.u32 %v3392_v18, %v3388_v19  ;;  %v2061_v55 = vld [vmem:[%s6000_s9 + $0x24] sm:$0xf]  ;;  %v2062_v50 = vld [vmem:[%s6000_s9 + $0x28] sm:$0xf] }
 0x162   : > { %v1750_v37 = vadd.f32 %v1694_v29, %v1464_v28  ;;  %v2156_v23 = vrot.slane %v2155_v20, 4  ;;  %v2170_v56 = vrot.slane %v2168_v26, 5  ;;  %v3384_v33 = vrot.slane %v3383_v22, 4 }
 0x163   : > { %v1982_v52 = vpop.f32.mrf.mxu0  ;;  %v3394_v8 = vrot.slane %v3393_v35, 4  ;;  %v2173_v20 = vshrl.u32 %v2061_v55, 16  ;;  %v2182_v26 = vshll.u32 %v2062_v50, 16 }
 0x164   : > { %v6380_v28 = vadd.f32 %v1980_v17, %v1750_v37  ;;  %v3396_v17 = vshll.u32 %v5389_v6, 16  ;;  %v2166_v37 = vrot.slane %v2165_v36, 4  ;;  %v2161_v18 = vsel %vm5983_vm5, %v2156_v23, %v6377_v53  ;;  %v5391_v6 = vld [vmem:[%s5952_s11 + $0x34] sm:$0xf] }
 0x165   : > { %v2176_v36 = vshll.u32 %v2061_v55, 16  ;;  %v2175_v23 = vrot.slane %v2173_v20, 4 }
 0x166   : > { %v1410_v10 = vpop.f32.mrf.mxu2  ;;  %v3398_v40 = vrot.slane %v3396_v17, 5 }
 0x167   : > { %v1465_v41 = vadd.f32 %v1410_v10, %v786_v43  ;;  %v3389_v43 = vsel %vm5983_vm5, %v3384_v33, %v3388_v19  ;;  %v2490_v19 = vunpack.c.l.b16 %v2161_v18 }
 0x168   : > { %v788_v58 = vpop.f32.mrf.mxu1  ;;  %v3718_v17 = vunpack.c.l.b16 %v3389_v43 }
 0x169   : > { %v1696_v29 = vpop.f32.mrf.mxu3  ;;  %v789_v1 = vadd.f32 %v788_v58, %v6107_v27  ;;  %v3399_v27 = vsel %vm5983_vm5, %v3394_v8, %v3398_v40  ;;  %v3410_v58 = vshll.u32 %v5391_v6, 16 }
 0x16a   : > { %v1751_v39 = vadd.f32 %v1696_v29, %v1465_v41  ;;  %v2186_v41 = vshrl.u32 %v2062_v50, 16  ;;  %v3401_v29 = vshrl.u32 %v5390_v61, 16 }
 0x16b   : > { %v1985_v11 = vpop.f32.mrf.mxu0  ;;  %5140 = vmatmul.msk.bf16.gmra.mxu1 %vm458_vm2, %v2519_v62  ;;  %5253 = vmatmul.msk.bf16.gmra.mxu2 %vm458_vm2, %v5548_v7  ;;  %v3404_v62 = vshll.u32 %v5390_v61, 16  ;;  %v5392_v61 = vld [vmem:[%s5952_s11 + $0x38] sm:$0x1] }
 0x16c   : > { %v6389_v13 = vadd.f32 %v1982_v52, %v1751_v39  ;;  %v2171_v52 = vsel %vm5983_vm5, %v2166_v37, %v2170_v56  ;;  %v3719_v39 = vunpack.c.l.b16 %v3399_v27  ;;  %v2178_v37 = vrot.slane %v2176_v36, 5  ;;  %v5565_v27 = vld [vmem:[%s5930_s29 + $0x24] sm:$0xff] }
 0x16d   : > { %v2491_v35 = vunpack.c.l.b16 %v2171_v52  ;;  %v6407_v56 = vrot.slane %v2182_v26, 5  ;;  %v2188_v33 = vrot.slane %v2186_v41, 4  ;;  %v3403_v8 = vrot.slane %v3401_v29, 4 }
 0x16e   : > { %5366 = vmatmul.msk.bf16.gmra.mxu3 %vm458_vm2, %v5564_v3  ;;  %5431 = vmatmul.msk.bf16.gmra.mxu0 %vm458_vm2, %v3747_v0  ;;  %v1413_v45 = vpop.f32.mrf.mxu2  ;;  %v3414_v3 = vshrl.u32 %v5391_v6, 16  ;;  %v3406_v40 = vrot.slane %v3404_v62, 5  ;;  %v3748_v20 = vpack.c.b16 %v3719_v39, %v3718_v17  ;;  %v2179_v36 = vor.u32 %v2178_v37, %v2175_v23 }
 0x16f   : > { %v1466_v0 = vadd.f32 %v1413_v45, %v789_v1  ;;  %v2063_v1 = vld [vmem:[%s6000_s9 + $0x2c] sm:$0x1]  ;;  %v3412_v45 = vrot.slane %v3410_v58, 5  ;;  %v2064_v58 = vld [vmem:[%s6000_s9 + $0x30] sm:$0xf] }
 0x170   : > { %v790_v22 = vpop.f32.mrf.mxu1  ;;  %v3416_v18 = vrot.slane %v3414_v3, 4  ;;  %v2192_v41 = vshll.u32 %v2063_v1, 16  ;;  %v2180_v3 = vrot.slane %v2179_v36, 4  ;;  %v2200_v1 = vshll.u32 %v2064_v58, 16 }
 0x171   : > { %v1699_v10 = vpop.f32.mrf.mxu3  ;;  %v791_v50 = vadd.f32 %v790_v22, %v6120_v44  ;;  %v3407_v44 = vor.u32 %v3406_v40, %v3403_v8  ;;  %v3420_v22 = vshll.u32 %v5392_v61, 16  ;;  %v5394_v61 = vld [vmem:[%s5952_s11 + $0x40] sm:$0xf] }
 0x172   : > { %v1752_v53 = vadd.f32 %v1699_v10, %v1466_v0  ;;  %v2520_v0 = vpack.c.b16 %v2491_v35, %v2490_v19  ;;  %v5549_v10 = vld [vmem:[%s5952_s11 + $0x24] sm:$0xff]  ;;  %v2065_v19 = vld [vmem:[%s6000_s9 + $0x34] sm:$0xf]  ;;  %v5393_v35 = vld [vmem:[%s5952_s11 + $0x3c] sm:$0xf]  ;;  %v2194_v23 = vrot.slane %v2192_v41, 5 }
 0x173   : > { %v1987_v7 = vpop.f32.mrf.mxu0  ;;  %v3408_v37 = vrot.slane %v3407_v44, 4 }
 0x174   : > { %v6409_v55 = vadd.f32 %v1985_v11, %v1752_v53  ;;  %v2189_v11 = vor.u32 %v2188_v33, %v6407_v56  ;;  %v3417_v53 = vor.u32 %v3416_v18, %v3412_v45  ;;  %v3422_v33 = vrot.slane %v3420_v22, 5 }
 0x176   : > { %v1415_v52 = vpop.f32.mrf.mxu2  ;;  %v2190_v39 = vrot.slane %v2189_v11, 4  ;;  %v3418_v40 = vrot.slane %v3417_v53, 4  ;;  %v3438_v11 = vshrl.u32 %v5394_v61, 16  ;;  %v2202_v53 = vrot.slane %v2200_v1, 5 }
 0x177   : > { %v1467_v43 = vadd.f32 %v1415_v52, %v791_v50  ;;  %v2197_v50 = vshrl.u32 %v2064_v58, 16  ;;  %v2206_v52 = vshll.u32 %v2065_v19, 16 }
 0x178   : > { %v793_v26 = vpop.f32.mrf.mxu1  ;;  %v3423_v22 = vsel %vm5983_vm5, %v3418_v40, %v3422_v33  ;;  %v5395_v40 = vld [vmem:[%s5952_s11 + $0x44] sm:$0x1] }
 0x179   : > { %v1701_v6 = vpop.f32.mrf.mxu3  ;;  %v794_v8 = vadd.f32 %v793_v26, %v6137_v2  ;;  %v3413_v2 = vsel %vm5983_vm5, %v3408_v37, %v3412_v45  ;;  %v3434_v26 = vshll.u32 %v5394_v61, 16  ;;  %v6437_v58 = vrot.slane %v2206_v52, 5  ;;  %v2066_v45 = vld [vmem:[%s6000_s9 + $0x38] sm:$0x1] }
 0x17a   : > { %v1753_v29 = vadd.f32 %v1701_v6, %v1467_v43  ;;  %v2210_v43 = vshrl.u32 %v2065_v19, 16  ;;  %v3425_v6 = vshrl.u32 %v5393_v35, 16  ;;  %v3721_v37 = vunpack.c.l.b16 %v3423_v22 }
 0x17b   : > { %v1990_v62 = vpop.f32.mrf.mxu0  ;;  %5141 = vmatmul.msk.bf16.gmra.mxu1 %vm458_vm2, %v2520_v0  ;;  %5254 = vmatmul.msk.bf16.gmra.mxu2 %vm458_vm2, %v5549_v10  ;;  %v3440_v61 = vrot.slane %v3438_v11, 4 }
 0x17c   : > { %v6422_v17 = vadd.f32 %v1987_v7, %v1753_v29  ;;  %v3428_v7 = vshll.u32 %v5393_v35, 16  ;;  %v2199_v29 = vrot.slane %v2197_v50, 4 }
 0x17e   : > { %5367 = vmatmul.msk.bf16.gmra.mxu3 %vm458_vm2, %v5565_v27  ;;  %5432 = vmatmul.msk.bf16.gmra.mxu0 %vm458_vm2, %v3748_v20  ;;  %v1418_v18 = vpop.f32.mrf.mxu2  ;;  %v2185_v20 = vsel %vm5983_vm5, %v2180_v3, %v6407_v56  ;;  %v2195_v27 = vsel %vm5983_vm5, %v2190_v39, %v2194_v23  ;;  %v2212_v56 = vrot.slane %v2210_v43, 4  ;;  %v3427_v3 = vrot.slane %v3425_v6, 4 }
 0x17f   : > { %v1468_v0 = vadd.f32 %v1418_v18, %v794_v8  ;;  %v3430_v19 = vrot.slane %v3428_v7, 5  ;;  %v2492_v35 = vunpack.c.l.b16 %v2185_v20  ;;  %v2493_v39 = vunpack.c.l.b16 %v2195_v27  ;;  %v5550_v20 = vld [vmem:[%s5952_s11 + $0x30] sm:$0xff] }
 0x180   : > { %v795_v36 = vpop.f32.mrf.mxu1  ;;  %v3720_v23 = vunpack.c.l.b16 %v3413_v2  ;;  %v3436_v8 = vrot.slane %v3434_v26, 5  ;;  %v2203_v1 = vor.u32 %v2202_v53, %v2199_v29  ;;  %v2213_v52 = vor.u32 %v2212_v56, %v6437_v58  ;;  %v5566_v2 = vld [vmem:[%s5930_s29 + $0x30] sm:$0xff] }
 0x181   : > { %v1704_v10 = vpop.f32.mrf.mxu3  ;;  %v796_v33 = vadd.f32 %v795_v36, %v6150_v24  ;;  %v2216_v43 = vshll.u32 %v2066_v45, 16  ;;  %v3431_v6 = vor.u32 %v3430_v19, %v3427_v3  ;;  %v5396_v45 = vld [vmem:[%s5952_s11 + $0x48] sm:$0xf] }
 0x182   : > { %v1754_v41 = vadd.f32 %v1704_v10, %v1468_v0  ;;  %v2521_v10 = vpack.c.b16 %v2493_v39, %v2492_v35  ;;  %v3749_v22 = vpack.c.b16 %v3721_v37, %v3720_v23  ;;  %v3441_v26 = vor.u32 %v3440_v61, %v3436_v8  ;;  %v2067_v35 = vld [vmem:[%s6000_s9 + $0x3c] sm:$0xf]  ;;  %v2068_v39 = vld [vmem:[%s6000_s9 + $0x40] sm:$0xf] }
 0x183   : > { %v1992_v44 = vpop.f32.mrf.mxu0  ;;  %v2204_v36 = vrot.slane %v2203_v1, 4  ;;  %v2218_v29 = vrot.slane %v2216_v43, 5  ;;  %v3432_v53 = vrot.slane %v3431_v6, 4  ;;  %v2224_v43 = vshll.u32 %v2067_v35, 16 }
 0x184   : > { %v6440_v18 = vadd.f32 %v1990_v62, %v1754_v41  ;;  %v3444_v62 = vshll.u32 %v5395_v40, 16  ;;  %v2214_v41 = vrot.slane %v2213_v52, 4  ;;  %v3442_v3 = vrot.slane %v3441_v26, 4  ;;  %v5397_v40 = vld [vmem:[%s5952_s11 + $0x4c] sm:$0xf] }
 0x185   : > { %v2209_v61 = vsel %vm5983_vm5, %v2204_v36, %v6437_v58  ;;  %v2221_v52 = vshrl.u32 %v2067_v35, 16  ;;  %v2230_v6 = vshll.u32 %v2068_v39, 16 }
 0x186   : > { %v1420_v50 = vpop.f32.mrf.mxu2  ;;  %v3446_v19 = vrot.slane %v3444_v62, 5  ;;  %v2494_v26 = vunpack.c.l.b16 %v2209_v61 }
 0x187   : > { %v1469_v7 = vadd.f32 %v1420_v50, %v796_v33  ;;  %v3437_v33 = vsel %vm5983_vm5, %v3432_v53, %v3436_v8  ;;  %v2223_v36 = vrot.slane %v2221_v52, 4 }
 0x188   : > { %v798_v27 = vpop.f32.mrf.mxu1  ;;  %v3722_v62 = vunpack.c.l.b16 %v3437_v33 }
 0x189   : > { %v1706_v0 = vpop.f32.mrf.mxu3  ;;  %v799_v23 = vadd.f32 %v798_v27, %v6167_v47  ;;  %v3447_v47 = vsel %vm5983_vm5, %v3442_v3, %v3446_v19 }
 0x18a   : > { %v1755_v11 = vadd.f32 %v1706_v0, %v1469_v7  ;;  %v2234_v0 = vshrl.u32 %v2068_v39, 16 }
 0x18b   : > { %v1995_v24 = vpop.f32.mrf.mxu0  ;;  %5142 = vmatmul.msk.bf16.gmra.mxu1 %vm458_vm2, %v2521_v10  ;;  %5255 = vmatmul.msk.bf16.gmra.mxu2 %vm458_vm2, %v5550_v20  ;;  %v3449_v10 = vshrl.u32 %v5396_v45, 16  ;;  %v3452_v20 = vshll.u32 %v5396_v45, 16 }
 0x18c   : > { %v6449_v56 = vadd.f32 %v1992_v44, %v1755_v11  ;;  %v2219_v44 = vsel %vm5983_vm5, %v2214_v41, %v2218_v29  ;;  %v3723_v11 = vunpack.c.l.b16 %v3447_v47  ;;  %v2226_v41 = vrot.slane %v2224_v43, 5 }
 0x18d   : > { %v2495_v8 = vunpack.c.l.b16 %v2219_v44  ;;  %v6467_v29 = vrot.slane %v2230_v6, 5  ;;  %v2236_v53 = vrot.slane %v2234_v0, 4  ;;  %v3451_v3 = vrot.slane %v3449_v10, 4  ;;  %v5398_v44 = vld [vmem:[%s5952_s11 + $0x50] sm:$0x1]  ;;  %v5567_v6 = vld [vmem:[%s5930_s29 + $0x3c] sm:$0xff] }
 0x18e   : > { %5368 = vmatmul.msk.bf16.gmra.mxu3 %vm458_vm2, %v5566_v2  ;;  %5433 = vmatmul.msk.bf16.gmra.mxu0 %vm458_vm2, %v3749_v22  ;;  %v1423_v37 = vpop.f32.mrf.mxu2  ;;  %v3458_v2 = vshll.u32 %v5397_v40, 16  ;;  %v3462_v22 = vshrl.u32 %v5397_v40, 16  ;;  %v3454_v19 = vrot.slane %v3452_v20, 5  ;;  %v2227_v52 = vor.u32 %v2226_v41, %v2223_v36 }
 0x18f   : > { %v1470_v50 = vadd.f32 %v1423_v37, %v799_v23  ;;  %v2069_v23 = vld [vmem:[%s6000_s9 + $0x44] sm:$0x1]  ;;  %v3750_v47 = vpack.c.b16 %v3723_v11, %v3722_v62 }
 0x190   : > { %v800_v7 = vpop.f32.mrf.mxu1  ;;  %v3460_v45 = vrot.slane %v3458_v2, 5  ;;  %v3464_v37 = vrot.slane %v3462_v22, 4  ;;  %v2240_v0 = vshll.u32 %v2069_v23, 16  ;;  %v3455_v10 = vor.u32 %v3454_v19, %v3451_v3  ;;  %v2070_v22 = vld [vmem:[%s6000_s9 + $0x48] sm:$0xf] }
 0x191   : > { %v1709_v1 = vpop.f32.mrf.mxu3  ;;  %v801_v39 = vadd.f32 %v800_v7, %v6180_v12  ;;  %v2228_v2 = vrot.slane %v2227_v52, 4  ;;  %v5399_v19 = vld [vmem:[%s5952_s11 + $0x54] sm:$0xf]  ;;  %v2245_v23 = vshrl.u32 %v2070_v22, 16 }
 0x192   : > { %v1756_v58 = vadd.f32 %v1709_v1, %v1470_v50  ;;  %v2522_v50 = vpack.c.b16 %v2495_v8, %v2494_v26  ;;  %v5551_v1 = vld [vmem:[%s5952_s11 + $0x3c] sm:$0xff]  ;;  %v3465_v20 = vor.u32 %v3464_v37, %v3460_v45  ;;  %v2071_v26 = vld [vmem:[%s6000_s9 + $0x4c] sm:$0xf]  ;;  %v2242_v11 = vrot.slane %v2240_v0, 5 }
 0x193   : > { %v1997_v27 = vpop.f32.mrf.mxu0  ;;  %v3456_v36 = vrot.slane %v3455_v10, 4  ;;  %v2248_v37 = vshll.u32 %v2070_v22, 16 }
 0x194   : > { %v6469_v35 = vadd.f32 %v1995_v24, %v1756_v58  ;;  %v2237_v24 = vor.u32 %v2236_v53, %v6467_v29  ;;  %v3468_v58 = vshll.u32 %v5398_v44, 16  ;;  %v3466_v53 = vrot.slane %v3465_v20, 4 }
 0x195   : > { %v2258_v44 = vshrl.u32 %v2071_v26, 16  ;;  %v2247_v20 = vrot.slane %v2245_v23, 4 }
 0x196   : > { %v1425_v61 = vpop.f32.mrf.mxu2  ;;  %v2238_v62 = vrot.slane %v2237_v24, 4  ;;  %v3470_v3 = vrot.slane %v3468_v58, 5  ;;  %v2250_v58 = vrot.slane %v2248_v37, 5 }
 0x197   : > { %v1471_v33 = vadd.f32 %v1425_v61, %v801_v39  ;;  %v2254_v61 = vshll.u32 %v2071_v26, 16 }
 0x198   : > { %v803_v43 = vpop.f32.mrf.mxu1  ;;  %v2243_v52 = vsel %vm5983_vm5, %v2238_v62, %v2242_v11  ;;  %v3471_v0 = vsel %vm5983_vm5, %v3466_v53, %v3470_v3  ;;  %v2072_v11 = vld [vmem:[%s6000_s9 + $0x50] sm:$0x1]  ;;  %v2251_v37 = vor.u32 %v2250_v58, %v2247_v20 }
 0x199   : > { %v1711_v40 = vpop.f32.mrf.mxu3  ;;  %v804_v41 = vadd.f32 %v803_v43, %v6079_v63  ;;  %v3461_v63 = vsel %vm5983_vm5, %v3456_v36, %v3460_v45  ;;  %v3473_v43 = vshrl.u32 %v5399_v19, 16  ;;  %v2497_v26 = vunpack.c.l.b16 %v2243_v52  ;;  %v5552_v52 = vld [vmem:[%s5952_s11 + $0x48] sm:$0xff] }
 0x19a   : > { %v1757_v12 = vadd.f32 %v1711_v40, %v1471_v33  ;;  %v5400_v33 = vld [vmem:[%s5952_s11 + $0x58] sm:$0xf]  ;;  %v3724_v62 = vunpack.c.l.b16 %v3461_v63  ;;  %v3725_v45 = vunpack.c.l.b16 %v3471_v0  ;;  %v2073_v63 = vld [vmem:[%s6000_s9 + $0x54] sm:$0xf] }
 0x19b   : > { %v2000_v7 = vpop.f32.mrf.mxu0  ;;  %5143 = vmatmul.msk.bf16.gmra.mxu1 %vm458_vm2, %v2522_v50  ;;  %5256 = vmatmul.msk.bf16.gmra.mxu2 %vm458_vm2, %v5551_v1  ;;  %v2233_v50 = vsel %vm5983_vm5, %v2228_v2, %v6467_v29  ;;  %v3482_v10 = vshll.u32 %v5400_v33, 16  ;;  %v6497_v29 = vrot.slane %v2254_v61, 5  ;;  %v2260_v2 = vrot.slane %v2258_v44, 4  ;;  %v2074_v0 = vld [vmem:[%s6000_s9 + $0x58] sm:$0xf] }
 0x19c   : > { %v6481_v8 = vadd.f32 %v1997_v27, %v1757_v12  ;;  %v3486_v12 = vshrl.u32 %v5400_v33, 16  ;;  %v2496_v22 = vunpack.c.l.b16 %v2233_v50  ;;  %v3475_v36 = vrot.slane %v3473_v43, 4  ;;  %v5401_v33 = vld [vmem:[%s5952_s11 + $0x5c] sm:$0x1] }
 0x19d   : > { %v3484_v3 = vrot.slane %v3482_v10, 5  ;;  %v2261_v61 = vor.u32 %v2260_v2, %v6497_v29  ;;  %v2264_v44 = vshll.u32 %v2072_v11, 16  ;;  %v2269_v2 = vshrl.u32 %v2073_v63, 16 }
 0x19e   : > { %5369 = vmatmul.msk.bf16.gmra.mxu3 %vm458_vm2, %v5567_v6  ;;  %5434 = vmatmul.msk.bf16.gmra.mxu0 %vm458_vm2, %v3750_v47  ;;  %v1428_v39 = vpop.f32.mrf.mxu2  ;;  %v3476_v6 = vshll.u32 %v5399_v19, 16  ;;  %v2523_v50 = vpack.c.b16 %v2497_v26, %v2496_v22  ;;  %v2272_v22 = vshll.u32 %v2073_v63, 16  ;;  %v2278_v26 = vshll.u32 %v2074_v0, 16 }
 0x19f   : > { %v1472_v27 = vadd.f32 %v1428_v39, %v804_v41  ;;  %v3488_v39 = vrot.slane %v3486_v12, 4  ;;  %v3492_v12 = vshll.u32 %v5401_v33, 16  ;;  %v2262_v20 = vrot.slane %v2261_v61, 4 }
 0x1a0   : > { %v805_v1 = vpop.f32.mrf.mxu1  ;;  %v3478_v41 = vrot.slane %v3476_v6, 5  ;;  %v5568_v6 = vld [vmem:[%s5930_s29 + $0x48] sm:$0xff]  ;;  %v2266_v58 = vrot.slane %v2264_v44, 5  ;;  %v2282_v11 = vshrl.u32 %v2074_v0, 16  ;;  %v2271_v61 = vrot.slane %v2269_v2, 4 }
 0x1a1   : > { %v1714_v40 = vpop.f32.mrf.mxu3  ;;  %v806_v53 = vadd.f32 %v805_v1, %v6092_v15  ;;  %v3489_v10 = vor.u32 %v3488_v39, %v3484_v3  ;;  %v5402_v39 = vld [vmem:[%s5952_s11 + $0x60] sm:$0xf]  ;;  %v5403_v44 = vld [vmem:[%s5952_s11 + $0x64] sm:$0xf] }
 0x1a2   : > { %v1758_v47 = vadd.f32 %v1714_v40, %v1472_v27  ;;  %v3506_v0 = vshll.u32 %v5403_v44, 16 }
 0x1a3   : > { %v2002_v24 = vpop.f32.mrf.mxu0 }
 0x1a4   : > { %v6500_v19 = vadd.f32 %v2000_v7, %v1758_v47  ;;  %v3751_v7 = vpack.c.b16 %v3725_v45, %v3724_v62  ;;  %v3479_v47 = vor.u32 %v3478_v41, %v3475_v36  ;;  %v3490_v41 = vrot.slane %v3489_v10, 4 }
 0x1a6   : > { %7488 = vst [vmem:[#allocation7_spill] sm:$0xff] %v6500_v19  ;;  %v1430_v23 = vpop.f32.mrf.mxu2  ;;  %v2252_v19 = vrot.slane %v2251_v37, 4  ;;  %v3480_v45 = vrot.slane %v3479_v47, 4 }
 0x1a7   : > { %v1473_v27 = vadd.f32 %v1430_v23, %v806_v53  ;;  %v3494_v53 = vrot.slane %v3492_v12, 5 }
 0x1a8   : > { %v808_v43 = vpop.f32.mrf.mxu1  ;;  %v2257_v37 = vsel %vm5983_vm5, %v2252_v19, %v6497_v29  ;;  %v3485_v63 = vsel %vm5983_vm5, %v3480_v45, %v3484_v3 }
 0x1a9   : > { %v1716_v40 = vpop.f32.mrf.mxu3  ;;  %v809_v36 = vadd.f32 %v808_v43, %v6113_v30  ;;  %v2284_v30 = vrot.slane %v2282_v11, 4  ;;  %v2075_v43 = vld [vmem:[%s6000_s9 + $0x5c] sm:$0x1]  ;;  %v3495_v19 = vsel %vm5983_vm5, %v3490_v41, %v3494_v53  ;;  %v2498_v10 = vunpack.c.l.b16 %v2257_v37 }
 0x1aa   : > { %v1759_v15 = vadd.f32 %v1716_v40, %v1473_v27  ;;  %v2274_v40 = vrot.slane %v2272_v22, 5  ;;  %v2288_v22 = vshll.u32 %v2075_v43, 16  ;;  %v3727_v3 = vunpack.c.l.b16 %v3495_v19  ;;  %v2077_v19 = vld [vmem:[%s6000_s9 + $0x64] sm:$0xf] }
 0x1ab   : > { %v2005_v1 = vpop.f32.mrf.mxu0  ;;  %5144 = vmatmul.msk.bf16.gmra.mxu1 %vm458_vm2, %v2523_v50  ;;  %5257 = vmatmul.msk.bf16.gmra.mxu2 %vm458_vm2, %v5552_v52  ;;  %v6523_v50 = vrot.slane %v2278_v26, 5  ;;  %v3508_v41 = vrot.slane %v3506_v0, 5 }
 0x1ac   : > { %v6511_v62 = vadd.f32 %v2002_v24, %v1759_v15  ;;  %v2267_v24 = vsel %vm5983_vm5, %v2262_v20, %v2266_v58  ;;  %v3510_v15 = vshrl.u32 %v5403_v44, 16  ;;  %v3726_v20 = vunpack.c.l.b16 %v3485_v63  ;;  %v5553_v44 = vld [vmem:[%s5952_s11 + $0x54] sm:$0xff] }
 0x1ad   : > { %v2499_v12 = vunpack.c.l.b16 %v2267_v24  ;;  %v2275_v58 = vor.u32 %v2274_v40, %v2271_v61  ;;  %v2285_v2 = vor.u32 %v2284_v30, %v6523_v50  ;;  %v2290_v40 = vrot.slane %v2288_v22, 5 }
 0x1ae   : > { %5370 = vmatmul.msk.bf16.gmra.mxu3 %vm458_vm2, %v5568_v6  ;;  %5435 = vmatmul.msk.bf16.gmra.mxu0 %vm458_vm2, %v3751_v7  ;;  %v1433_v23 = vpop.f32.mrf.mxu2  ;;  %v3497_v6 = vshrl.u32 %v5402_v39, 16  ;;  %v3500_v7 = vshll.u32 %v5402_v39, 16  ;;  %v5404_v39 = vld [vmem:[%s5952_s11 + $0x68] sm:$0x1]  ;;  %v3512_v53 = vrot.slane %v3510_v15, 4  ;;  %v3752_v63 = vpack.c.b16 %v3727_v3, %v3726_v20 }
 0x1af   : > { %v1474_v33 = vadd.f32 %v1433_v23, %v809_v36  ;;  %v2524_v37 = vpack.c.b16 %v2499_v12, %v2498_v10  ;;  %v5405_v10 = vld [vmem:[%s5952_s11 + $0x6c] sm:$0xf]  ;;  %v5406_v12 = vld [vmem:[%s5952_s11 + $0x70] sm:$0xf] }
 0x1b0   : > { %v810_v52 = vpop.f32.mrf.mxu1  ;;  %v3499_v26 = vrot.slane %v3497_v6, 4  ;;  %v3502_v11 = vrot.slane %v3500_v7, 5  ;;  %v3513_v7 = vor.u32 %v3512_v53, %v3508_v41  ;;  %v3521_v53 = vshrl.u32 %v5405_v10, 16 }
 0x1b1   : > { %v1719_v27 = vpop.f32.mrf.mxu3  ;;  %v811_v36 = vadd.f32 %v810_v52, %v6122_v46  ;;  %v3516_v46 = vshll.u32 %v5404_v39, 16 }
 0x1b2   : > { %v1760_v47 = vadd.f32 %v1719_v27, %v1474_v33  ;;  %v2276_v33 = vrot.slane %v2275_v58, 4  ;;  %v2286_v27 = vrot.slane %v2285_v2, 4  ;;  %v3503_v43 = vor.u32 %v3502_v11, %v3499_v26 }
 0x1b3   : > { %v2007_v29 = vpop.f32.mrf.mxu0  ;;  %v3518_v2 = vrot.slane %v3516_v46, 5  ;;  %v3514_v11 = vrot.slane %v3513_v7, 4  ;;  %v2078_v7 = vld [vmem:[%s6000_s9 + $0x68] sm:$0x1] }
 0x1b4   : > { %v6531_v45 = vadd.f32 %v2005_v1, %v1760_v47  ;;  %v5569_v1 = vld [vmem:[%s5930_s29 + $0x54] sm:$0xff]  ;;  %v2076_v47 = vld [vmem:[%s6000_s9 + $0x60] sm:$0xf]  ;;  %v2281_v0 = vsel %vm5983_vm5, %v2276_v33, %v6523_v50  ;;  %v2291_v15 = vsel %vm5983_vm5, %v2286_v27, %v2290_v40  ;;  %v3504_v58 = vrot.slane %v3503_v43, 4 }
 0x1b5   : > { %v2293_v22 = vshrl.u32 %v2076_v47, 16  ;;  %v2296_v3 = vshll.u32 %v2076_v47, 16  ;;  %v2306_v50 = vshrl.u32 %v2077_v19, 16  ;;  %v2501_v27 = vunpack.c.l.b16 %v2291_v15 }
 0x1b6   : > { %v1435_v23 = vpop.f32.mrf.mxu2  ;;  %v3509_v40 = vsel %vm5983_vm5, %v3504_v58, %v3508_v41  ;;  %v3519_v43 = vsel %vm5983_vm5, %v3514_v11, %v3518_v2  ;;  %v3523_v47 = vrot.slane %v3521_v53, 4 }
 0x1b7   : > { %v1475_v24 = vadd.f32 %v1435_v23, %v811_v36  ;;  %v2302_v36 = vshll.u32 %v2077_v19, 16  ;;  %v3524_v23 = vshll.u32 %v5405_v10, 16  ;;  %v5407_v10 = vld [vmem:[%s5952_s11 + $0x74] sm:$0x1]  ;;  %v3728_v41 = vunpack.c.l.b16 %v3509_v40  ;;  %v5554_v40 = vld [vmem:[%s5952_s11 + $0x60] sm:$0xff] }
 0x1b8   : > { %v813_v30 = vpop.f32.mrf.mxu1  ;;  %v3729_v58 = vunpack.c.l.b16 %v3519_v43 }
 0x1b9   : > { %v1721_v61 = vpop.f32.mrf.mxu3  ;;  %v814_v26 = vadd.f32 %v813_v30, %v6139_v4  ;;  %v2295_v4 = vrot.slane %v2293_v22, 4  ;;  %v2298_v30 = vrot.slane %v2296_v3, 5  ;;  %v6557_v46 = vrot.slane %v2302_v36, 5  ;;  %v2080_v3 = vld [vmem:[%s6000_s9 + $0x70] sm:$0xf] }
 0x1ba   : > { %v1761_v52 = vadd.f32 %v1721_v61, %v1475_v24  ;;  %v3526_v19 = vrot.slane %v3524_v23, 5 }
 0x1bb   : > { %v2010_v6 = vpop.f32.mrf.mxu0  ;;  %5145 = vmatmul.msk.bf16.gmra.mxu1 %vm458_vm2, %v2524_v37  ;;  %5258 = vmatmul.msk.bf16.gmra.mxu2 %vm458_vm2, %v5553_v44  ;;  %v3530_v37 = vshll.u32 %v5406_v12, 16  ;;  %v2500_v44 = vunpack.c.l.b16 %v2281_v0  ;;  %v2299_v22 = vor.u32 %v2298_v30, %v2295_v4  ;;  %v2326_v4 = vshll.u32 %v2080_v3, 16 }
 0x1bc   : > { %v6548_v20 = vadd.f32 %v2007_v29, %v1761_v52  ;;  %v3534_v29 = vshrl.u32 %v5406_v12, 16  ;;  %v2308_v52 = vrot.slane %v2306_v50, 4  ;;  %v2079_v12 = vld [vmem:[%s6000_s9 + $0x6c] sm:$0xf]  ;;  %v2312_v50 = vshll.u32 %v2078_v7, 16 }
 0x1bd   : > { %v6560_v0 = vrot.slane %v3530_v37, 5  ;;  %v2525_v11 = vpack.c.b16 %v2501_v27, %v2500_v44  ;;  %v3527_v53 = vor.u32 %v3526_v19, %v3523_v47  ;;  %v3540_v37 = vshll.u32 %v5407_v10, 16  ;;  %v5408_v47 = vld [vmem:[%s5952_s11 + $0x78] sm:$0xf]  ;;  %v5409_v19 = vld [vmem:[%s5952_s11 + $0x7c] sm:$0xf] }
 0x1be   : > { %7489 = vst [vmem:[#allocation8_spill] sm:$0xff] %v6548_v20  ;;  %5371 = vmatmul.msk.bf16.gmra.mxu3 %vm458_vm2, %v5569_v1  ;;  %5436 = vmatmul.msk.bf16.gmra.mxu0 %vm458_vm2, %v3752_v63  ;;  %v1438_v39 = vpop.f32.mrf.mxu2  ;;  %v3536_v15 = vrot.slane %v3534_v29, 4  ;;  %v2309_v36 = vor.u32 %v2308_v52, %v6557_v46  ;;  %v2317_v29 = vshrl.u32 %v2079_v12, 16  ;;  %v2330_v30 = vshrl.u32 %v2080_v3, 16 }
 0x1bf   : > { %v1476_v24 = vadd.f32 %v1438_v39, %v814_v26  ;;  %v3753_v44 = vpack.c.b16 %v3729_v58, %v3728_v41  ;;  %v2300_v27 = vrot.slane %v2299_v22, 4  ;;  %v2314_v7 = vrot.slane %v2312_v50, 5  ;;  %v2081_v22 = vld [vmem:[%s6000_s9 + $0x74] sm:$0x1] }
 0x1c0   : > { %v815_v33 = vpop.f32.mrf.mxu1  ;;  %v3537_v23 = vor.u32 %v3536_v15, %v6560_v0  ;;  %v2310_v52 = vrot.slane %v2309_v36, 4  ;;  %v3528_v15 = vrot.slane %v3527_v53, 4  ;;  %v6576_v3 = vrot.slane %v2326_v4, 5 }
 0x1c1   : > { %v1724_v61 = vpop.f32.mrf.mxu3  ;;  %v816_v2 = vadd.f32 %v815_v33, %v6152_v25  ;;  %v5570_v33 = vld [vmem:[%s5930_s29 + $0x60] sm:$0xff]  ;;  %v2332_v41 = vrot.slane %v2330_v30, 4  ;;  %v3545_v36 = vshrl.u32 %v5408_v47, 16  ;;  %v3548_v50 = vshll.u32 %v5408_v47, 16  ;;  %v2082_v47 = vld [vmem:[%s6000_s9 + $0x78] sm:$0xf] }
 0x1c2   : > { %v1762_v1 = vadd.f32 %v1724_v61, %v1476_v24  ;;  %v3538_v10 = vrot.slane %v3537_v23, 4  ;;  %v3558_v53 = vshrl.u32 %v5409_v19, 16  ;;  %v2336_v4 = vshll.u32 %v2081_v22, 16 }
 0x1c3   : > { %v2012_v63 = vpop.f32.mrf.mxu0 }
 0x1c4   : > { %v6565_v26 = vadd.f32 %v2010_v6, %v1762_v1  ;;  %v2320_v6 = vshll.u32 %v2079_v12, 16 }
 0x1c6   : > { %7490 = vst [vmem:[#allocation9_spill] sm:$0xff] %v6565_v26  ;;  %v1440_v39 = vpop.f32.mrf.mxu2  ;;  %v3542_v26 = vrot.slane %v3540_v37, 5  ;;  %v2322_v12 = vrot.slane %v2320_v6, 5  ;;  %v2305_v37 = vsel %vm5983_vm5, %v2300_v27, %v6557_v46  ;;  %v2333_v6 = vor.u32 %v2332_v41, %v6576_v3 }
 0x1c7   : > { %v1477_v24 = vadd.f32 %v1440_v39, %v816_v2  ;;  %v2319_v2 = vrot.slane %v2317_v29, 4  ;;  %v3554_v39 = vshll.u32 %v5409_v19, 16  ;;  %v3533_v29 = vsel %vm5983_vm5, %v3528_v15, %v6560_v0  ;;  %v5410_v0 = vld [vmem:[%s5952_s11 + $0x80] sm:$0x1] }
 0x1c8   : > { %v818_v25 = vpop.f32.mrf.mxu1  ;;  %v3547_v46 = vrot.slane %v3545_v36, 4  ;;  %v3564_v22 = vshll.u32 %v5410_v0, 16 }
 0x1c9   : > { %v1726_v61 = vpop.f32.mrf.mxu3  ;;  %v819_v23 = vadd.f32 %v818_v25, %v6169_v48  ;;  %v2323_v48 = vor.u32 %v2322_v12, %v2319_v2  ;;  %v3550_v25 = vrot.slane %v3548_v50, 5  ;;  %v2338_v2 = vrot.slane %v2336_v4, 5 }
 0x1ca   : > { %v1763_v1 = vadd.f32 %v1726_v61, %v1477_v24  ;;  %v3543_v24 = vsel %vm5983_vm5, %v3538_v10, %v3542_v26  ;;  %v3730_v26 = vunpack.c.l.b16 %v3533_v29  ;;  %v2334_v10 = vrot.slane %v2333_v6, 4  ;;  %v5411_v6 = vld [vmem:[%s5952_s11 + $0x84] sm:$0xf] }
 0x1cb   : > { %v2015_v43 = vpop.f32.mrf.mxu0  ;;  %5146 = vmatmul.msk.bf16.gmra.mxu1 %vm458_vm2, %v2525_v11  ;;  %5259 = vmatmul.msk.bf16.gmra.mxu2 %vm458_vm2, %v5554_v40  ;;  %v3731_v19 = vunpack.c.l.b16 %v3543_v24  ;;  %v2324_v15 = vrot.slane %v2323_v48, 4  ;;  %v3551_v12 = vor.u32 %v3550_v25, %v3547_v46  ;;  %v5555_v24 = vld [vmem:[%s5952_s11 + $0x6c] sm:$0xff]  ;;  %v3566_v46 = vrot.slane %v3564_v22, 5 }
 0x1cc   : > { %v6578_v58 = vadd.f32 %v2012_v63, %v1763_v1  ;;  %v2315_v63 = vsel %vm5983_vm5, %v2310_v52, %v2314_v7  ;;  %v2502_v52 = vunpack.c.l.b16 %v2305_v37 }
 0x1cd   : > { %v2503_v7 = vunpack.c.l.b16 %v2315_v63  ;;  %v2329_v48 = vsel %vm5983_vm5, %v2324_v15, %v6576_v3  ;;  %v3552_v4 = vrot.slane %v3551_v12, 4  ;;  %v3572_v3 = vshll.u32 %v5411_v6, 16 }
 0x1ce   : > { %7491 = vst [vmem:[#allocation10_spill] sm:$0xff] %v6578_v58  ;;  %5372 = vmatmul.msk.bf16.gmra.mxu3 %vm458_vm2, %v5570_v33  ;;  %5437 = vmatmul.msk.bf16.gmra.mxu0 %vm458_vm2, %v3753_v44  ;;  %v1443_v11 = vpop.f32.mrf.mxu2  ;;  %v6595_v33 = vrot.slane %v3554_v39, 5  ;;  %v3560_v44 = vrot.slane %v3558_v53, 4  ;;  %v2083_v39 = vld [vmem:[%s6000_s9 + $0x7c] sm:$0xf]  ;;  %v2341_v53 = vshrl.u32 %v2082_v47, 16 }
 0x1cf   : > { %v1478_v61 = vadd.f32 %v1443_v11, %v819_v23  ;;  %v2344_v23 = vshll.u32 %v2082_v47, 16  ;;  %v2526_v37 = vpack.c.b16 %v2503_v7, %v2502_v52  ;;  %v2350_v25 = vshll.u32 %v2083_v39, 16 }
 0x1d0   : > { %v820_v30 = vpop.f32.mrf.mxu1  ;;  %v3561_v41 = vor.u32 %v3560_v44, %v6595_v33  ;;  %v5412_v44 = vld [vmem:[%s5952_s11 + $0x88] sm:$0xf]  ;;  %v2343_v52 = vrot.slane %v2341_v53, 4  ;;  %v2354_v47 = vshrl.u32 %v2083_v39, 16 }
 0x1d1   : > { %v1729_v40 = vpop.f32.mrf.mxu3  ;;  %v821_v50 = vadd.f32 %v820_v30, %v6182_v14  ;;  %v2346_v7 = vrot.slane %v2344_v23, 5  ;;  %v3582_v15 = vshrl.u32 %v5412_v44, 16 }
 0x1d2   : > { %v1764_v27 = vadd.f32 %v1729_v40, %v1478_v61  ;;  %v5571_v61 = vld [vmem:[%s5930_s29 + $0x6c] sm:$0xff]  ;;  %v3754_v40 = vpack.c.b16 %v3731_v19, %v3730_v26  ;;  %v3562_v30 = vrot.slane %v3561_v41, 4  ;;  %v3569_v26 = vshrl.u32 %v5411_v6, 16 }
 0x1d3   : > { %v2017_v1 = vpop.f32.mrf.mxu0  ;;  %v3578_v19 = vshll.u32 %v5412_v44, 16  ;;  %v3557_v41 = vsel %vm5983_vm5, %v3552_v4, %v6595_v33  ;;  %v2347_v39 = vor.u32 %v2346_v7, %v2343_v52  ;;  %v2356_v53 = vrot.slane %v2354_v47, 4  ;;  %v2086_v52 = vld [vmem:[%s6000_s9 + $0x88] sm:$0xf] }
 0x1d4   : > { %v6600_v36 = vadd.f32 %v2015_v43, %v1764_v27  ;;  %v2339_v43 = vsel %vm5983_vm5, %v2334_v10, %v2338_v2  ;;  %v6619_v2 = vunpack.c.l.b16 %v2329_v48  ;;  %v3567_v22 = vsel %vm5983_vm5, %v3562_v30, %v3566_v46 }
 0x1d5   : > { %v6621_v12 = vunpack.c.l.b16 %v2339_v43  ;;  %v3584_v33 = vrot.slane %v3582_v15, 4  ;;  %v6641_v43 = vunpack.c.l.b16 %v3557_v41  ;;  %v6643_v6 = vunpack.c.l.b16 %v3567_v22  ;;  %v5414_v41 = vld [vmem:[%s5952_s11 + $0x90] sm:$0xf]  ;;  %v5415_v22 = vld [vmem:[%s5952_s11 + $0x94] sm:$0xf] }
 0x1d6   : > { %7492 = vst [vmem:[#allocation11_spill] sm:$0xff] %v6600_v36  ;;  %v1445_v11 = vpop.f32.mrf.mxu2  ;;  %v6646_v46 = vrot.slane %v2347_v39, 4  ;;  %v5572_v36 = vld [vmem:[%s5930_s29 + $0x78] sm:$0xff] }
 0x1d7   : > { %v1479_v63 = vadd.f32 %v1445_v11, %v821_v50  ;;  %v2084_v11 = vld [vmem:[%s6000_s9 + $0x80] sm:$0x1]  ;;  %v2527_v48 = vpack.c.b16 %v6621_v12, %v6619_v2 }
 0x1d8   : > { %v2594_v14 = vpop.f32.mrf.mxu1  ;;  %v2360_v44 = vshll.u32 %v2084_v11, 16 }
 0x1d9   : > { %v1731_v29 = vpop.f32.mrf.mxu3  ;;  %v2674_v50 = vadd.f32 %v2594_v14, %v6199_v16  ;;  %v6637_v16 = vld [vmem:[%s7480_s5] ss:$0 sm:$0xff]  ;;  %v5413_v14 = vld [vmem:[%s5952_s11 + $0x8c] sm:$0x1] }
 0x1da   : > { %v1765_v27 = vadd.f32 %v1731_v29, %v1479_v63  ;;  %v3588_v12 = vshll.u32 %v5413_v14, 16 }
 0x1db   : > { %v3822_v0 = vpop.f32.mrf.mxu0  ;;  %5147 = vmatmul.msk.bf16.gmra.mxu1 %vm458_vm2, %v2526_v37  ;;  %5260 = vmatmul.msk.bf16.gmra.mxu2 %vm458_vm2, %v5555_v24  ;;  %v3571_v37 = vrot.slane %v3569_v26, 4  ;;  %v3574_v24 = vrot.slane %v3572_v3, 5  ;;  %v2374_v26 = vshll.u32 %v2086_v52, 16  ;;  %v2378_v3 = vshrl.u32 %v2086_v52, 16 }
 0x1dc   : > { %v6615_v10 = vadd.f32 %v2017_v1, %v1765_v27  ;;  %v6629_v1 = vrot.slane %v2350_v25, 5  ;;  %v2085_v27 = vld [vmem:[%s6000_s9 + $0x84] sm:$0xf] }
 0x1dd   : > { %v2365_v7 = vshrl.u32 %v2085_v27, 16  ;;  %v2368_v47 = vshll.u32 %v2085_v27, 16  ;;  %v3575_v15 = vor.u32 %v3574_v24, %v3571_v37  ;;  %v3596_v37 = vshll.u32 %v5414_v41, 16 }
 0x1de   : > { %7493 = vst [vmem:[#allocation12_spill] sm:$0xff] %v6615_v10  ;;  %5373 = vmatmul.msk.bf16.gmra.mxu3 %vm458_vm2, %v5571_v61  ;;  %5438 = vmatmul.msk.bf16.gmra.mxu0 %vm458_vm2, %v3754_v40  ;;  %v2881_v23 = vpop.f32.mrf.mxu2  ;;  %v6632_v61 = vrot.slane %v3578_v19, 5  ;;  %v2357_v25 = vor.u32 %v2356_v53, %v6629_v1  ;;  %v2380_v53 = vrot.slane %v2378_v3, 4  ;;  %v3602_v27 = vshll.u32 %v5415_v22, 16 }
 0x1df   : > { %v2961_v63 = vadd.f32 %v2881_v23, %v2674_v50  ;;  %v2367_v50 = vrot.slane %v2365_v7, 4  ;;  %v2370_v39 = vrot.slane %v2368_v47, 5  ;;  %v6654_v23 = vrot.slane %v2374_v26, 5  ;;  %v5556_v26 = vld [vmem:[%s5952_s11 + $0x78] sm:$0xff] }
 0x1e0   : > { %v2596_v40 = vpop.f32.mrf.mxu1  ;;  %v3585_v2 = vor.u32 %v3584_v33, %v6632_v61 }
 0x1e1   : > { %v3168_v29 = vpop.f32.mrf.mxu3  ;;  %v2371_v33 = vor.u32 %v2370_v39, %v2367_v50  ;;  %v2381_v14 = vor.u32 %v2380_v53, %v6654_v23  ;;  %v3590_v50 = vrot.slane %v3588_v12, 5 }
 0x1e2   : > { %v3248_v4 = vadd.f32 %v3168_v29, %v2961_v63  ;;  %v2675_v63 = vadd.f32 %v2596_v40, %v6208_v51  ;;  %v2087_v29 = vld [vmem:[%s6000_s9 + $0x8c] sm:$0x1]  ;;  %v3755_v51 = vpack.c.b16 %v6643_v6, %v6641_v43  ;;  %v2358_v40 = vrot.slane %v2357_v25, 4  ;;  %v5416_v25 = vld [vmem:[%s5952_s11 + $0x98] sm:$0x1] }
 0x1e3   : > { %v3824_v30 = vpop.f32.mrf.mxu0  ;;  %v3586_v58 = vrot.slane %v3585_v2, 4  ;;  %v2382_v43 = vrot.slane %v2381_v14, 4  ;;  %v3612_v14 = vshll.u32 %v5416_v25, 16 }
 0x1e4   : > { %v3902_v19 = vadd.f32 %v3822_v0, %v3248_v4  ;;  %v3593_v0 = vshrl.u32 %v5414_v41, 16  ;;  %v2384_v4 = vshll.u32 %v2087_v29, 16  ;;  %v2362_v41 = vrot.slane %v2360_v44, 5 }
 0x1e5   : > { %v3576_v29 = vrot.slane %v3575_v15, 4  ;;  %v3604_v44 = vrot.slane %v3602_v27, 5  ;;  %v3591_v2 = vsel %vm5983_vm5, %v3586_v58, %v3590_v50 }
 0x1e6   : > { %v6657_v11 = vadd.f32 %v6637_v16, %v3902_v19  ;;  %v2883_v24 = vpop.f32.mrf.mxu2  ;;  %v3595_v3 = vrot.slane %v3593_v0, 4  ;;  %v3598_v19 = vrot.slane %v3596_v37, 5  ;;  %v2372_v0 = vrot.slane %v2371_v33, 4 }
 0x1e7   : > { %v2962_v7 = vadd.f32 %v2883_v24, %v2675_v63  ;;  %v2353_v63 = vsel %vm5983_vm5, %v6646_v46, %v6629_v1  ;;  %v3606_v24 = vshrl.u32 %v5415_v22, 16  ;;  %v2386_v6 = vrot.slane %v2384_v4, 5 }
 0x1e8   : > { %v5446_v52 = vmul.f32 -1.442695, %v6657_v11  ;;  %v2599_v10 = vpop.f32.mrf.mxu1  ;;  %v3599_v37 = vor.u32 %v3598_v19, %v3595_v3  ;;  %v2363_v15 = vsel %vm5983_vm5, %v2358_v40, %v2362_v41  ;;  %v2377_v22 = vsel %vm5983_vm5, %v2372_v0, %v6654_v23  ;;  %v2089_v40 = vld [vmem:[%s6000_s9 + $0x94] sm:$0xf] }
 0x1e9   : > { %v3170_v47 = vpop.f32.mrf.mxu3  ;;  %v3608_v1 = vrot.slane %v3606_v24, 4  ;;  %v6699_v23 = vunpack.c.l.b16 %v3591_v2  ;;  %v6701_v19 = vunpack.c.l.b16 %v2377_v22  ;;  %v2398_v25 = vshll.u32 %v2089_v40, 16 }
 0x1ea   : > { %5627 = vpow2.f32 %v5446_v52  ;;  %v3249_v39 = vadd.f32 %v3170_v47, %v2962_v7  ;;  %v3600_v33 = vrot.slane %v3599_v37, 4  ;;  %v2507_v7 = vunpack.c.l.b16 %v2363_v15 }
 0x1eb   : > { %v3827_v53 = vpop.f32.mrf.mxu0  ;;  %5148 = vmatmul.msk.bf16.gmra.mxu1 %vm458_vm2, %v2527_v48  ;;  %5261 = vmatmul.msk.bf16.gmra.mxu2 %vm458_vm2, %v5556_v26  ;;  %v3581_v48 = vsel %vm5983_vm5, %v3576_v29, %v6632_v61  ;;  %v2387_v61 = vsel %vm5983_vm5, %v2382_v43, %v2386_v6  ;;  %v3609_v58 = vor.u32 %v3608_v1, %v3604_v44 }
 0x1ec   : > { %v3903_v20 = vadd.f32 %v3824_v30, %v3249_v39  ;;  %v2676_v30 = vadd.f32 %v2599_v10, %v6219_v31  ;;  %v6697_v47 = vunpack.c.l.b16 %v3581_v48  ;;  %v6706_v41 = vunpack.c.l.b16 %v2387_v61 }
 0x1ed   : > { %v3605_v50 = vsel %vm5983_vm5, %v3600_v33, %v3604_v44  ;;  %v3614_v39 = vrot.slane %v3612_v14, 5  ;;  %v6729_v61 = vrot.slane %v2398_v25, 5 }
 0x1ee   : > { %5374 = vmatmul.msk.bf16.gmra.mxu3 %vm458_vm2, %v5572_v36  ;;  %5439 = vmatmul.msk.bf16.gmra.mxu0 %vm458_vm2, %v3755_v51  ;;  %v6679_v46 = vadd.f32 %v6637_v16, %v3903_v20  ;;  %v2886_v12 = vpop.f32.mrf.mxu2  ;;  %v6687_v36 = vunpack.c.l.b16 %v2353_v63  ;;  %v2088_v51 = vld [vmem:[%s6000_s9 + $0x90] sm:$0xf]  ;;  %v3610_v63 = vrot.slane %v3609_v58, 4  ;;  %v3756_v6 = vpack.c.b16 %v6699_v23, %v6697_v47  ;;  %v5573_v47 = vld [vmem:[%s5930_s29 + $0x84] sm:$0xff] }
 0x1ef   : > { %v2963_v10 = vadd.f32 %v2886_v12, %v2676_v30  ;;  %v2389_v0 = vshrl.u32 %v2088_v51, 16  ;;  %v2392_v37 = vshll.u32 %v2088_v51, 16  ;;  %v2402_v30 = vshrl.u32 %v2089_v40, 16 }
 0x1f0   : > { %v5628_v20 = vpop.eup %5627  ;;  %v5447_v31 = vmul.f32 -1.442695, %v6679_v46  ;;  %v2601_v52 = vpop.f32.mrf.mxu1  ;;  %v2528_v43 = vpack.c.b16 %v2507_v7, %v6687_v36  ;;  %v2529_v12 = vpack.c.b16 %v6706_v41, %v6701_v19  ;;  %v6722_v36 = vunpack.c.l.b16 %v3605_v50 }
 0x1f1   : > { %v3173_v4 = vpop.f32.mrf.mxu3  ;;  %v6695_v27 = vadd.f32 1.0, %v5628_v20  ;;  %v2677_v24 = vadd.f32 %v2601_v52, %v6228_v21  ;;  %v2391_v1 = vrot.slane %v2389_v0, 4  ;;  %v2394_v44 = vrot.slane %v2392_v37, 5 }
 0x1f2   : > { %5629 = vpow2.f32 %v5447_v31  ;;  %v3250_v26 = vadd.f32 %v3173_v4, %v2963_v10  ;;  %v5557_v31 = vld [vmem:[%s5952_s11 + $0x84] sm:$0xff]  ;;  %v3615_v10 = vsel %vm5983_vm5, %v3610_v63, %v3614_v39  ;;  %v2090_v4 = vld [vmem:[%s6000_s9 + $0x98] sm:$0x1] }
 0x1f3   : > { %v3829_v3 = vpop.f32.mrf.mxu0  ;;  %5631 = vrcp.f32 %v6695_v27  ;;  %v4107_v48 = vand.u32 2147483647, %v6695_v27  ;;  %v4109_v21 = vand.u32 2147483648, %v6695_v27  ;;  %v2395_v23 = vor.u32 %v2394_v44, %v2391_v1  ;;  %v5418_v44 = vld [vmem:[%s5952_s11 + $0xa0] sm:$0xf] }
 0x1f4   : > { %v3904_v29 = vadd.f32 %v3827_v53, %v3250_v26  ;;  %v5417_v53 = vld [vmem:[%s5952_s11 + $0x9c] sm:$0xf]  ;;  %v2404_v26 = vrot.slane %v2402_v30, 4  ;;  %vm4103_vm6 = vweird.f32 %v6695_v27  ;;  %v6739_v39 = vunpack.c.l.b16 %v3615_v10 }
 0x1f5   : > { %v3617_v51 = vshrl.u32 %v5417_v53, 16  ;;  %v3620_v0 = vshll.u32 %v5417_v53, 16  ;;  %v2408_v63 = vshll.u32 %v2090_v4, 16  ;;  %vm6741_vm7 = vcmp.eq.f32.partialorder %v4107_v48, 8.507059e+37 }
 0x1f6   : > { %v6715_v15 = vadd.f32 %v6637_v16, %v3904_v29  ;;  %v2888_v2 = vpop.f32.mrf.mxu2  ;;  %v4110_v25 = vor.u32 1.1754944e-38, %v4109_v21  ;;  %v2396_v30 = vrot.slane %v2395_v23, 4  ;;  %v2405_v53 = vor.u32 %v2404_v26, %v6729_v61 }
 0x1f7   : > { %v2964_v14 = vadd.f32 %v2888_v2, %v2677_v24  ;;  %v3619_v48 = vrot.slane %v3617_v51, 4 }
 0x1f8   : > { %v5630_v22 = vpop.eup %5629  ;;  %v5448_v33 = vmul.f32 -1.442695, %v6715_v15  ;;  %v2604_v7 = vpop.f32.mrf.mxu1 }
 0x1f9   : > { %v3175_v20 = vpop.f32.mrf.mxu3  ;;  %v5632_v58 = vpop.eup %5631  ;;  %v6731_v52 = vadd.f32 1.0, %v5630_v22 }
 0x1fa   : > { %v4099_v40 = vmul.f32 %v5632_v58, %v6695_v27  ;;  %5633 = vpow2.f32 %v5448_v33  ;;  %v3251_v50 = vadd.f32 %v3175_v20, %v2964_v14  ;;  %vm4104_vm8 = vweird.f32 %v5632_v58 }
 0x1fb   : > { %v6735_v29 = vpop.f32.mrf.mxu0  ;;  %5635 = vrcp.f32 %v6731_v52  ;;  %5149 = vmatmul.msk.bf16.gmra.mxu1 %vm458_vm2, %v2528_v43  ;;  %5262 = vmatmul.msk.bf16.gmra.mxu2 %vm458_vm2, %v5557_v31  ;;  %v3622_v43 = vrot.slane %v3620_v0, 5  ;;  %v3757_v33 = vpack.c.b16 %v6739_v39, %v6722_v36  ;;  %v2410_v14 = vrot.slane %v2408_v63, 5  ;;  %vm4105_vm11 = vmor %vm4103_vm6, %vm4104_vm8 }
 0x1fc   : > { %v4100_v37 = vsub.f32 1.0, %v4099_v40  ;;  %v3905_v1 = vadd.f32 %v3829_v3, %v3251_v50  ;;  %v2678_v3 = vadd.f32 %v2604_v7, %v6239_v32  ;;  %v3626_v20 = vshll.u32 %v5418_v44, 16 }
 0x1fd   : > { %vm4118_vm10 = vweird.f32 %v6731_v52  ;;  %v4122_v4 = vand.u32 2147483647, %v6731_v52  ;;  %v4124_v26 = vand.u32 2147483648, %v6731_v52  ;;  %v2401_v50 = vsel %vm5983_vm5, %v2396_v30, %v6729_v61 }
 0x1fe   : > { %5375 = vmatmul.msk.bf16.gmra.mxu3 %vm458_vm2, %v5573_v47  ;;  %5440 = vmatmul.msk.bf16.gmra.mxu0 %vm458_vm2, %v3756_v6  ;;  %v4101_v2 = vmul.f32 %v5632_v58, %v4100_v37  ;;  %v6752_v21 = vadd.f32 %v6637_v16, %v3905_v1  ;;  %v2891_v22 = vpop.f32.mrf.mxu2  ;;  %v3630_v6 = vshrl.u32 %v5418_v44, 16  ;;  %v2406_v0 = vrot.slane %v2405_v53, 4 }
 0x1ff   : > { %v2965_v23 = vadd.f32 %v2891_v22, %v2678_v3  ;;  %v3623_v27 = vor.u32 %v3622_v43, %v3619_v48  ;;  %vm6781_vm12 = vcmp.eq.f32.partialorder %v4122_v4, 8.507059e+37  ;;  %v5419_v22 = vld [vmem:[%s5952_s11 + $0xa4] sm:$0x1] }
 0x200   : > { %v5634_v31 = vpop.eup %5633  ;;  %v4102_v10 = vadd.f32 %v5632_v58, %v4101_v2  ;;  %v5449_v47 = vmul.f32 -1.442695, %v6752_v21  ;;  %v2606_v40 = vpop.f32.mrf.mxu1  ;;  %v6778_v2 = vrot.slane %v3626_v20, 5  ;;  %v3632_v3 = vrot.slane %v3630_v6, 4 }
 0x201   : > { %v3178_v32 = vpop.f32.mrf.mxu3  ;;  %v5636_v7 = vpop.eup %5635  ;;  %v6765_v51 = vadd.f32 1.0, %v5634_v31  ;;  %v4125_v31 = vor.u32 1.1754944e-38, %v4124_v26  ;;  %v2411_v24 = vsel %vm5983_vm5, %v2406_v0, %v2410_v14  ;;  %v2679_v6 = vadd.f32 %v2606_v40, %v6248_v57  ;;  %v5558_v40 = vld [vmem:[%s5952_s11 + $0x90] sm:$0xff] }
 0x202   : > { %v4106_v63 = vsel %vm4105_vm11, %v5632_v58, %v4102_v10  ;;  %v4114_v37 = vmul.f32 %v5636_v7, %v6731_v52  ;;  %5637 = vpow2.f32 %v5449_v47  ;;  %v3252_v58 = vadd.f32 %v3178_v32, %v2965_v23 }
 0x203   : > { %v6773_v1 = vpop.f32.mrf.mxu0  ;;  %v4111_v44 = vsel %vm6741_vm7, %v4110_v25, %v4106_v63  ;;  %5639 = vrcp.f32 %v6765_v51  ;;  %vm4119_vm13 = vweird.f32 %v5636_v7  ;;  %v6788_v25 = vunpack.c.l.b16 %v2401_v50  ;;  %v2091_v50 = vld [vmem:[%s6000_s9 + $0x9c] sm:$0xf] }
 0x204   : > { %v4578_v61 = vmul.f32 %v4111_v44, %v6657_v11  ;;  %v4115_v30 = vsub.f32 1.0, %v4114_v37  ;;  %v4137_v20 = vand.u32 2147483647, %v6765_v51  ;;  %v3906_v11 = vadd.f32 %v6735_v29, %v3252_v58  ;;  %vm4120_vm15 = vmor %vm4118_vm10, %vm4119_vm13  ;;  %v5574_v44 = vld [vmem:[%s5930_s29 + $0x90] sm:$0xff] }
 0x205   : > { %v3624_v4 = vrot.slane %v3623_v27, 4  ;;  %v3633_v47 = vor.u32 %v3632_v3, %v6778_v2  ;;  %v3636_v23 = vshll.u32 %v5419_v22, 16  ;;  %vm4133_vm14 = vweird.f32 %v6765_v51 }
 0x206   : > { %v4610_v48 = vpack.c.bf16 %v4578_v61, %v4578_v61  ;;  %v4116_v43 = vmul.f32 %v5636_v7, %v4115_v30  ;;  %v2893_v10 = vpop.f32.mrf.mxu2  ;;  %v4139_v26 = vand.u32 2147483648, %v6765_v51  ;;  %v6801_v29 = vadd.f32 %v6637_v16, %v3906_v11 }
 0x207   : > { %v2966_v37 = vadd.f32 %v2893_v10, %v2679_v6  ;;  %v6811_v3 = vunpack.c.l.b16 %v2411_v24  ;;  %v3634_v61 = vrot.slane %v3633_v47, 4  ;;  %vm6814_vm0 = vcmp.eq.f32.partialorder %v4137_v20, 8.507059e+37 }
 0x208   : > { %v5638_v32 = vpop.eup %5637  ;;  %4643 = vst.msk [vmem:[%s6794_s17] sm:$0xf] %vm4642_vm9, %v4610_v48  ;;  %v4117_v14 = vadd.f32 %v5636_v7, %v4116_v43  ;;  %v2609_v27 = vpop.f32.mrf.mxu1  ;;  %v5450_v48 = vmul.f32 -1.442695, %v6801_v29  ;;  %v3638_v43 = vrot.slane %v3636_v23, 5  ;;  %v2413_v24 = vshrl.u32 %v2091_v50, 16 }
 0x209   : > { %v3180_v57 = vpop.f32.mrf.mxu3  ;;  %v5640_v0 = vpop.eup %5639  ;;  %v6808_v63 = vadd.f32 1.0, %v5638_v32  ;;  %v2416_v6 = vshll.u32 %v2091_v50, 16  ;;  %v3629_v53 = vsel %vm5983_vm5, %v3624_v4, %v6778_v2  ;;  %v4140_v20 = vor.u32 1.1754944e-38, %v4139_v26 }
 0x20a   : > { %v4121_v30 = vsel %vm4120_vm15, %v5636_v7, %v4117_v14  ;;  %v4129_v58 = vmul.f32 %v5640_v0, %v6765_v51  ;;  %vm4134_vm1 = vweird.f32 %v5640_v0  ;;  %v3253_v47 = vadd.f32 %v3180_v57, %v2966_v37 }
 0x20b   : > { %v3837_v52 = vpop.f32.mrf.mxu0  ;;  %v4126_v11 = vsel %vm6781_vm12, %v4125_v31, %v4121_v30  ;;  %5641 = vrcp.f32 %v6808_v63  ;;  %5150 = vmatmul.msk.bf16.gmra.mxu1 %vm458_vm2, %v2529_v12  ;;  %5263 = vmatmul.msk.bf16.gmra.mxu2 %vm458_vm2, %v5558_v40  ;;  %v2092_v31 = vld [vmem:[%s6000_s9 + $0xa0] sm:$0xf]  ;;  %v2680_v12 = vadd.f32 %v2609_v27, %v6259_v42  ;;  %v3639_v2 = vsel %vm5983_vm5, %v3634_v61, %v3638_v43  ;;  %vm4135_vm3 = vmor %vm4133_vm14, %vm4134_vm1 }
 0x20c   : > { %v4579_v7 = vmul.f32 %v4126_v11, %v6679_v46  ;;  %v4130_v10 = vsub.f32 1.0, %v4129_v58  ;;  %5643 = vpow2.f32 %v5450_v48  ;;  %v2530_v46 = vpack.c.b16 %v6811_v3, %v6788_v25 }
 0x20d   : > { %v3907_v4 = vadd.f32 %v6773_v1, %v3253_v47  ;;  %v2415_v32 = vrot.slane %v2413_v24, 4  ;;  %v2418_v14 = vrot.slane %v2416_v6, 5  ;;  %v2422_v26 = vshll.u32 %v2092_v31, 16 }
 0x20e   : > { %5376 = vmatmul.msk.bf16.gmra.mxu3 %vm458_vm2, %v5574_v44  ;;  %5441 = vmatmul.msk.bf16.gmra.mxu0 %vm458_vm2, %v3757_v33  ;;  %v4611_v19 = vpack.c.bf16 %v4579_v7, %v4579_v7  ;;  %v4131_v41 = vmul.f32 %v5640_v0, %v4130_v10  ;;  %v2896_v23 = vpop.f32.mrf.mxu2  ;;  %v4152_v39 = vand.u32 2147483647, %v6808_v63  ;;  %v6846_v40 = vunpack.c.l.b16 %v3629_v53  ;;  %v2093_v44 = vld [vmem:[%s6000_s9 + $0xa4] sm:$0x1] }
 0x20f   : > { %v2967_v33 = vadd.f32 %v2896_v23, %v2680_v12  ;;  %v4154_v1 = vand.u32 2147483648, %v6808_v63  ;;  %v6853_v50 = vadd.f32 %v6637_v16, %v3907_v4  ;;  %v6855_v27 = vunpack.c.l.b16 %v3639_v2  ;;  %v5420_v2 = vld [vmem:[%s5952_s11 + $0xa8] sm:$0xf] }
 0x210   : > { %4644 = vst.msk [vmem:[%s6794_s17 + $0x4] sm:$0xf] %vm4642_vm9, %v4611_v19  ;;  %v4132_v36 = vadd.f32 %v5640_v0, %v4131_v41  ;;  %v2611_v37 = vpop.f32.mrf.mxu1  ;;  %v2419_v61 = vor.u32 %v2418_v14, %v2415_v32  ;;  %v2426_v24 = vshrl.u32 %v2092_v31, 16  ;;  %v6864_v10 = vrot.slane %v2422_v26, 5 }
 0x211   : > { %v3183_v57 = vpop.f32.mrf.mxu3  ;;  %v5642_v42 = vpop.eup %5641  ;;  %v5451_v7 = vmul.f32 -1.442695, %v6853_v50  ;;  %v2681_v31 = vadd.f32 %v2611_v37, %v6267_v34  ;;  %vm4148_vm6 = vweird.f32 %v6808_v63  ;;  %vm6874_vm7 = vcmp.eq.f32.partialorder %v4152_v39, 8.507059e+37  ;;  %v5575_v39 = vld [vmem:[%s5930_s29 + $0x9c] sm:$0xff] }
 0x212   : > { %v5644_v30 = vpop.eup %5643  ;;  %v4136_v58 = vsel %vm4135_vm3, %v5640_v0, %v4132_v36  ;;  %v4144_v48 = vmul.f32 %v5642_v42, %v6808_v63  ;;  %v3254_v43 = vadd.f32 %v3183_v57, %v2967_v33  ;;  %v2432_v0 = vshll.u32 %v2093_v44, 16  ;;  %v5559_v36 = vld [vmem:[%s5952_s11 + $0x9c] sm:$0xff] }
 0x213   : > { %v3839_v11 = vpop.f32.mrf.mxu0  ;;  %v4141_v51 = vsel %vm6814_vm0, %v4140_v20, %v4136_v58  ;;  %v6861_v6 = vadd.f32 1.0, %v5644_v30  ;;  %vm4149_vm4 = vweird.f32 %v5642_v42  ;;  %v2420_v22 = vrot.slane %v2419_v61, 4 }
 0x214   : > { %v4580_v53 = vmul.f32 %v4141_v51, %v6715_v15  ;;  %v4145_v47 = vsub.f32 1.0, %v4144_v48  ;;  %v3908_v19 = vadd.f32 %v3837_v52, %v3254_v43  ;;  %v4155_v52 = vor.u32 1.1754944e-38, %v4154_v1  ;;  %vm4150_vm8 = vmor %vm4148_vm6, %vm4149_vm4 }
 0x215   : > { %5645 = vrcp.f32 %v6861_v6  ;;  %v2428_v23 = vrot.slane %v2426_v24, 4  ;;  %v3758_v33 = vpack.c.b16 %v6855_v27, %v6846_v40  ;;  %v2434_v1 = vrot.slane %v2432_v0, 5 }
 0x216   : > { %v4612_v20 = vpack.c.bf16 %v4580_v53, %v4580_v53  ;;  %v4146_v41 = vmul.f32 %v5642_v42, %v4145_v47  ;;  %5647 = vpow2.f32 %v5451_v7  ;;  %v6870_v12 = vadd.f32 %v6637_v16, %v3908_v19  ;;  %v2898_v4 = vpop.f32.mrf.mxu2 }
 0x217   : > { %v2968_v14 = vadd.f32 %v2898_v4, %v2681_v31  ;;  %v2429_v57 = vor.u32 %v2428_v23, %v6864_v10  ;;  %v3641_v37 = vshrl.u32 %v5420_v2, 16  ;;  %v3644_v44 = vshll.u32 %v5420_v2, 16  ;;  %v5421_v31 = vld [vmem:[%s5952_s11 + $0xac] sm:$0xf] }
 0x218   : > { %4645 = vst.msk [vmem:[%s6794_s17 + $0x8] sm:$0xf] %vm4642_vm9, %v4612_v20  ;;  %v4147_v34 = vadd.f32 %v5642_v42, %v4146_v41  ;;  %v5452_v32 = vmul.f32 -1.442695, %v6870_v12  ;;  %v2614_v63 = vpop.f32.mrf.mxu1  ;;  %v2425_v48 = vsel %vm5983_vm5, %v2420_v22, %v6864_v10  ;;  %v4167_v10 = vand.u32 2147483647, %v6861_v6 }
 0x219   : > { %v3185_v26 = vpop.f32.mrf.mxu3  ;;  %v2430_v27 = vrot.slane %v2429_v57, 4  ;;  %v3643_v24 = vrot.slane %v3641_v37, 4  ;;  %v3646_v51 = vrot.slane %v3644_v44, 5  ;;  %v4169_v19 = vand.u32 2147483648, %v6861_v6 }
 0x21a   : > { %v4151_v61 = vsel %vm4150_vm8, %v5642_v42, %v4147_v34  ;;  %5649 = vpow2.f32 %v5452_v32  ;;  %v3255_v30 = vadd.f32 %v3185_v26, %v2968_v14  ;;  %v6913_v20 = vunpack.c.l.b16 %v2425_v48 }
 0x21b   : > { %v3842_v58 = vpop.f32.mrf.mxu0  ;;  %v5646_v43 = vpop.eup %5645  ;;  %v4156_v40 = vsel %vm6874_vm7, %v4155_v52, %v4151_v61  ;;  %5151 = vmatmul.msk.bf16.gmra.mxu1 %vm458_vm2, %v2530_v46  ;;  %5264 = vmatmul.msk.bf16.gmra.mxu2 %vm458_vm2, %v5559_v36  ;;  %v2682_v46 = vadd.f32 %v2614_v63, %v6278_v60  ;;  %v3647_v41 = vor.u32 %v3646_v51, %v3643_v24  ;;  %vm4163_vm11 = vweird.f32 %v6861_v6 }
 0x21c   : > { %v5648_v7 = vpop.eup %5647  ;;  %v4581_v53 = vmul.f32 %v4156_v40, %v6752_v21  ;;  %v4159_v42 = vmul.f32 %v5646_v43, %v6861_v6  ;;  %v3909_v47 = vadd.f32 %v3839_v11, %v3255_v30  ;;  %v2435_v21 = vsel %vm5983_vm5, %v2430_v27, %v2434_v1  ;;  %v5422_v30 = vld [vmem:[%s5952_s11 + $0xb0] sm:$0x1]  ;;  %v2094_v40 = vld [vmem:[%s6000_s9 + $0xa8] sm:$0xf] }
 0x21d   : > { %v6901_v0 = vadd.f32 1.0, %v5648_v7  ;;  %vm4164_vm10 = vweird.f32 %v5646_v43  ;;  %v6918_v34 = vunpack.c.l.b16 %v2435_v21  ;;  %vm6921_vm12 = vcmp.eq.f32.partialorder %v4167_v10, 8.507059e+37 }
 0x21e   : > { %5377 = vmatmul.msk.bf16.gmra.mxu3 %vm458_vm2, %v5575_v39  ;;  %5442 = vmatmul.msk.bf16.gmra.mxu0 %vm458_vm2, %v3758_v33  ;;  %v4613_v11 = vpack.c.bf16 %v4581_v53, %v4581_v53  ;;  %v4160_v25 = vsub.f32 1.0, %v4159_v42  ;;  %v6908_v3 = vadd.f32 %v6637_v16, %v3909_v47  ;;  %v2901_v22 = vpop.f32.mrf.mxu2  ;;  %v3650_v26 = vshll.u32 %v5421_v31, 16  ;;  %vm4165_vm13 = vmor %vm4163_vm11, %vm4164_vm10 }
 0x21f   : > { %5651 = vrcp.f32 %v6901_v0  ;;  %v2969_v4 = vadd.f32 %v2901_v22, %v2682_v46  ;;  %v4182_v33 = vand.u32 2147483647, %v6901_v0  ;;  %v4170_v6 = vor.u32 1.1754944e-38, %v4169_v19 }
 0x220   : > { %v5650_v2 = vpop.eup %5649  ;;  %4646 = vst.msk [vmem:[%s6794_s17 + $0xc] sm:$0xf] %vm4642_vm9, %v4613_v11  ;;  %v4161_v15 = vmul.f32 %v5646_v43, %v4160_v25  ;;  %v5453_v52 = vmul.f32 -1.442695, %v6908_v3  ;;  %v2616_v14 = vpop.f32.mrf.mxu1  ;;  %v4184_v57 = vand.u32 2147483648, %v6901_v0  ;;  %v3648_v1 = vrot.slane %v3647_v41, 4 }
 0x221   : > { %v3188_v23 = vpop.f32.mrf.mxu3  ;;  %v6925_v32 = vadd.f32 1.0, %v5650_v2  ;;  %vm4178_vm14 = vweird.f32 %v6901_v0  ;;  %v2531_v61 = vpack.c.b16 %v6918_v34, %v6913_v20  ;;  %v3654_v48 = vshrl.u32 %v5421_v31, 16  ;;  %v5560_v2 = vld [vmem:[%s5952_s11 + $0xa8] sm:$0xff] }
 0x222   : > { %v4162_v36 = vadd.f32 %v5646_v43, %v4161_v15  ;;  %5653 = vpow2.f32 %v5453_v52  ;;  %v3256_v63 = vadd.f32 %v3188_v23, %v2969_v4  ;;  %v2683_v7 = vadd.f32 %v2616_v14, %v6287_v49  ;;  %v5576_v34 = vld [vmem:[%s5930_s29 + $0xa8] sm:$0xff] }
 0x223   : > { %v6928_v39 = vpop.f32.mrf.mxu0  ;;  %5655 = vrcp.f32 %v6925_v32  ;;  %v4197_v51 = vand.u32 2147483647, %v6925_v32  ;;  %v3652_v53 = vrot.slane %v3650_v26, 5  ;;  %vm6944_vm15 = vcmp.eq.f32.partialorder %v4182_v33, 8.507059e+37 }
 0x224   : > { %v4166_v37 = vsel %vm4165_vm13, %v5646_v43, %v4162_v36  ;;  %v3910_v44 = vadd.f32 %v3842_v58, %v3256_v63  ;;  %v4199_v47 = vand.u32 2147483648, %v6925_v32  ;;  %v3656_v49 = vrot.slane %v3654_v48, 4 }
 0x225   : > { %v5652_v27 = vpop.eup %5651  ;;  %v4171_v24 = vsel %vm6921_vm12, %v4170_v6, %v4166_v37  ;;  %v3653_v21 = vsel %vm5983_vm5, %v3648_v1, %v3652_v53  ;;  %v3660_v11 = vshll.u32 %v5422_v30, 16  ;;  %v4185_v52 = vor.u32 1.1754944e-38, %v4184_v57 }
 0x226   : > { %v4582_v43 = vmul.f32 %v4171_v24, %v6801_v29  ;;  %v4174_v58 = vmul.f32 %v5652_v27, %v6901_v0  ;;  %v6950_v10 = vadd.f32 %v6637_v16, %v3910_v44  ;;  %v2903_v19 = vpop.f32.mrf.mxu2  ;;  %v2437_v29 = vshrl.u32 %v2094_v40, 16 }
 0x227   : > { %v2970_v20 = vadd.f32 %v2903_v19, %v2683_v7  ;;  %vm4193_vm0 = vweird.f32 %v6925_v32  ;;  %v3657_v60 = vor.u32 %v3656_v49, %v3652_v53  ;;  %vm4179_vm1 = vweird.f32 %v5652_v27 }
 0x228   : > { %v5654_v25 = vpop.eup %5653  ;;  %v4614_v46 = vpack.c.bf16 %v4582_v43, %v4582_v43  ;;  %v4175_v31 = vsub.f32 1.0, %v4174_v58  ;;  %v5454_v22 = vmul.f32 -1.442695, %v6950_v10  ;;  %v2619_v23 = vpop.f32.mrf.mxu1  ;;  %vm6963_vm3 = vcmp.eq.f32.partialorder %v4197_v51, 8.507059e+37  ;;  %vm4180_vm4 = vmor %vm4178_vm14, %vm4179_vm1  ;;  %v2095_v51 = vld [vmem:[%s6000_s9 + $0xac] sm:$0xf] }
 0x229   : > { %v3190_v41 = vpop.f32.mrf.mxu3  ;;  %v5656_v15 = vpop.eup %5655  ;;  %v6957_v4 = vadd.f32 1.0, %v5654_v25  ;;  %v4200_v63 = vor.u32 1.1754944e-38, %v4199_v47  ;;  %v3662_v6 = vrot.slane %v3660_v11, 5  ;;  %v3740_v57 = vunpack.c.l.b16 %v3653_v21 }
 0x22a   : > { %4647 = vst.msk [vmem:[%s6794_s17 + $0x10] sm:$0xf] %vm4642_vm9, %v4614_v46  ;;  %v4176_v14 = vmul.f32 %v5652_v27, %v4175_v31  ;;  %v4189_v26 = vmul.f32 %v5656_v15, %v6925_v32  ;;  %5657 = vpow2.f32 %v5454_v22  ;;  %v3257_v44 = vadd.f32 %v3190_v41, %v2970_v20 }
 0x22b   : > { %v6967_v33 = vpop.f32.mrf.mxu0  ;;  %5659 = vrcp.f32 %v6957_v4  ;;  %5152 = vmatmul.msk.bf16.gmra.mxu1 %vm458_vm2, %v2531_v61  ;;  %5265 = vmatmul.msk.bf16.gmra.mxu2 %vm458_vm2, %v5560_v2  ;;  %v2439_v30 = vrot.slane %v2437_v29, 4  ;;  %vm4194_vm6 = vweird.f32 %v5656_v15  ;;  %v4212_v48 = vand.u32 2147483647, %v6957_v4 }
 0x22c   : > { %v4177_v1 = vadd.f32 %v5652_v27, %v4176_v14  ;;  %v4190_v37 = vsub.f32 1.0, %v4189_v26  ;;  %v3658_v24 = vrot.slane %v3657_v60, 4  ;;  %v2440_v7 = vshll.u32 %v2094_v40, 16  ;;  %vm4195_vm7 = vmor %vm4193_vm0, %vm4194_vm6 }
 0x22d   : > { %v4214_v58 = vand.u32 2147483648, %v6957_v4  ;;  %v3911_v61 = vadd.f32 %v6928_v39, %v3257_v44  ;;  %v2684_v0 = vadd.f32 %v2619_v23, %v6298_v38  ;;  %v2446_v46 = vshll.u32 %v2095_v51, 16 }
 0x22e   : > { %5378 = vmatmul.msk.bf16.gmra.mxu3 %vm458_vm2, %v5576_v34  ;;  %v4181_v53 = vsel %vm4180_vm4, %v5652_v27, %v4177_v1  ;;  %v4191_v43 = vmul.f32 %v5656_v15, %v4190_v37  ;;  %v3663_v19 = vsel %vm5983_vm5, %v3658_v24, %v3662_v6  ;;  %v2906_v21 = vpop.f32.mrf.mxu2  ;;  %v2442_v49 = vrot.slane %v2440_v7, 5  ;;  %v2096_v34 = vld [vmem:[%s6000_s9 + $0xb0] sm:$0x1] }
 0x22f   : > { %v4186_v47 = vsel %vm6944_vm15, %v4185_v52, %v4181_v53  ;;  %v6987_v27 = vadd.f32 %v6637_v16, %v3911_v61  ;;  %vm4208_vm8 = vweird.f32 %v6957_v4  ;;  %v3741_v42 = vunpack.c.l.b16 %v3663_v19 }
 0x230   : > { %v5658_v11 = vpop.eup %5657  ;;  %v4583_v29 = vmul.f32 %v4186_v47, %v6853_v50  ;;  %v4192_v40 = vadd.f32 %v5656_v15, %v4191_v43  ;;  %v2971_v31 = vadd.f32 %v2906_v21, %v2684_v0  ;;  %v2621_v50 = vpop.f32.mrf.mxu1  ;;  %vm6996_vm10 = vcmp.eq.f32.partialorder %v4212_v48, 8.507059e+37  ;;  %v5561_v0 = vld [vmem:[%s5952_s11 + $0xb4] sm:$0xff] }
 0x231   : > { %v3193_v25 = vpop.f32.mrf.mxu3  ;;  %v5660_v39 = vpop.eup %5659  ;;  %v6993_v38 = vadd.f32 1.0, %v5658_v11  ;;  %v4215_v52 = vor.u32 1.1754944e-38, %v4214_v58  ;;  %v2443_v60 = vor.u32 %v2442_v49, %v2439_v30  ;;  %v2450_v14 = vshrl.u32 %v2095_v51, 16 }
 0x232   : > { %v4615_v22 = vpack.c.bf16 %v4583_v29, %v4583_v29  ;;  %v4196_v20 = vsel %vm4195_vm7, %v5656_v15, %v4192_v40  ;;  %v4204_v41 = vmul.f32 %v5660_v39, %v6957_v4  ;;  %v5455_v6 = vmul.f32 -1.442695, %v6987_v27  ;;  %v5577_v40 = vld [vmem:[%s5930_s29 + $0xb4] sm:$0xff] }
 0x233   : > { %v3849_v32 = vpop.f32.mrf.mxu0  ;;  %v4201_v23 = vsel %vm6963_vm3, %v4200_v63, %v4196_v20  ;;  %5661 = vrcp.f32 %v6993_v38  ;;  %v2448_v1 = vrot.slane %v2446_v46, 5  ;;  %vm4209_vm11 = vweird.f32 %v5660_v39  ;;  %v5423_v63 = vld [vmem:[%s5952_s11 + $0xb4] sm:$0xf] }
 0x234   : > { %4648 = vst.msk [vmem:[%s6794_s17 + $0x14] sm:$0xf] %vm4642_vm9, %v4615_v22  ;;  %v4584_v15 = vmul.f32 %v4201_v23, %v6870_v12  ;;  %v4205_v26 = vsub.f32 1.0, %v4204_v41  ;;  %v4227_v37 = vand.u32 2147483647, %v6993_v38  ;;  %v3759_v44 = vpack.c.b16 %v3741_v42, %v3740_v57  ;;  %vm4210_vm12 = vmor %vm4208_vm8, %vm4209_vm11 }
 0x235   : > { %v3258_v36 = vadd.f32 %v3193_v25, %v2971_v31  ;;  %5663 = vpow2.f32 %v5455_v6  ;;  %v2685_v30 = vadd.f32 %v2621_v50, %v6310_v9  ;;  %v2444_v7 = vrot.slane %v2443_v60, 4  ;;  %v5424_v6 = vld [vmem:[%s5952_s11 + $0xb8] sm:$0xf] }
 0x236   : > { %v4616_v48 = vpack.c.bf16 %v4584_v15, %v4584_v15  ;;  %v4206_v24 = vmul.f32 %v5660_v39, %v4205_v26  ;;  %5443 = vmatmul.msk.bf16.gmra.mxu0 %vm458_vm2, %v3759_v44  ;;  %v2908_v51 = vpop.f32.mrf.mxu2  ;;  %v2452_v53 = vrot.slane %v2450_v14, 4  ;;  %v2456_v43 = vshll.u32 %v2096_v34, 16 }
 0x237   : > { %v3912_v12 = vadd.f32 %v6967_v33, %v3258_v36  ;;  %v4229_v58 = vand.u32 2147483648, %v6993_v38  ;;  %v2972_v61 = vadd.f32 %v2908_v51, %v2685_v30  ;;  %v3665_v19 = vshrl.u32 %v5423_v63, 16  ;;  %v5425_v36 = vld [vmem:[%s5952_s11 + $0xbc] sm:$0x1] }
 0x238   : > { %4649 = vst.msk [vmem:[%s6794_s17 + $0x18] sm:$0xf] %vm4642_vm9, %v4616_v48  ;;  %v4207_v57 = vadd.f32 %v5660_v39, %v4206_v24  ;;  %v2624_v33 = vpop.f32.mrf.mxu1  ;;  %v2449_v49 = vsel %vm5983_vm5, %v2444_v7, %v2448_v1  ;;  %v2453_v11 = vor.u32 %v2452_v53, %v2448_v1  ;;  %v2458_v29 = vrot.slane %v2456_v43, 5 }
 0x239   : > { %v3195_v47 = vpop.f32.mrf.mxu3  ;;  %v5662_v21 = vpop.eup %5661  ;;  %v7021_v9 = vadd.f32 %v6637_v16, %v3912_v12  ;;  %v3668_v50 = vshll.u32 %v5423_v63, 16  ;;  %vm4223_vm14 = vweird.f32 %v6993_v38  ;;  %vm7049_vm15 = vcmp.eq.f32.partialorder %v4227_v37, 8.507059e+37 }
 0x23a   : > { %v4211_v25 = vsel %vm4210_vm12, %v5660_v39, %v4207_v57  ;;  %v4219_v46 = vmul.f32 %v5662_v21, %v6993_v38  ;;  %v3259_v42 = vadd.f32 %v3195_v47, %v2972_v61  ;;  %vm4224_vm13 = vweird.f32 %v5662_v21 }
 0x23b   : > { %v7027_v31 = vpop.f32.mrf.mxu0  ;;  %v4216_v4 = vsel %vm6996_vm10, %v4215_v52, %v4211_v25  ;;  %v5456_v16 = vmul.f32 -1.442695, %v7021_v9  ;;  %v2454_v22 = vrot.slane %v2453_v11, 4  ;;  %v5664_v20 = vpop.eup %5663  ;;  %v2514_v39 = vunpack.c.l.b16 %v2449_v49  ;;  %5266 = vmatmul.msk.bf16.gmra.mxu2 %vm458_vm2, %v5561_v0  ;;  %vm4225_vm0 = vmor %vm4223_vm14, %vm4224_vm13 }
 0x23c   : > { %v4585_v41 = vmul.f32 %v4216_v4, %v6908_v3  ;;  %v4220_v23 = vsub.f32 1.0, %v4219_v46  ;;  %v3913_v34 = vadd.f32 %v3849_v32, %v3259_v42  ;;  %v7034_v60 = vadd.f32 1.0, %v5664_v20  ;;  %v7042_v3 = vld [vmem:[%s7480_s5] ss:$0 sm:$0xff] }
 0x23d   : > { %5665 = vpow2.f32 %v5456_v16  ;;  %v2459_v2 = vsel %vm5983_vm5, %v2454_v22, %v2458_v29  ;;  %v3667_v52 = vrot.slane %v3665_v19, 4  ;;  %v4230_v44 = vor.u32 1.1754944e-38, %v4229_v58 }
 0x23e   : > { %5379 = vmatmul.msk.bf16.gmra.mxu3 %vm458_vm2, %v5577_v40  ;;  %v4617_v14 = vpack.c.bf16 %v4585_v41, %v4585_v41  ;;  %v4221_v15 = vmul.f32 %v5662_v21, %v4220_v23  ;;  %v7045_v32 = vadd.f32 %v7042_v3, %v3913_v34  ;;  %v2515_v26 = vunpack.c.l.b16 %v2459_v2  ;;  %v2911_v63 = vpop.f32.mrf.mxu2  ;;  %v2097_v23 = vld [vmem:[%s6000_s9 + $0xb4] sm:$0xf] }
 0x23f   : > { %5667 = vrcp.f32 %v7034_v60  ;;  %v3670_v12 = vrot.slane %v3668_v50, 5  ;;  %v4242_v38 = vand.u32 2147483647, %v7034_v60  ;;  %v2686_v37 = vadd.f32 %v2624_v33, %v6321_v5 }
 0x240   : > { %4650 = vst.msk [vmem:[%s6794_s17 + $0x1c] sm:$0xf] %vm4642_vm9, %v4617_v14  ;;  %v4222_v48 = vadd.f32 %v5662_v21, %v4221_v15  ;;  %v5457_v24 = vmul.f32 -1.442695, %v7045_v32  ;;  %v2532_v30 = vpack.c.b16 %v2515_v26, %v2514_v39  ;;  %v3674_v7 = vshll.u32 %v5424_v6, 16  ;;  %v2626_v43 = vpop.f32.mrf.mxu1  ;;  %v5562_v15 = vld [vmem:[%s5952_s11 + $0xc0] sm:$0xff] }
 0x241   : > { %v3198_v51 = vpop.f32.mrf.mxu3  ;;  %v3678_v53 = vshrl.u32 %v5424_v6, 16  ;;  %v3671_v58 = vor.u32 %v3670_v12, %v3667_v52  ;;  %v3684_v61 = vshll.u32 %v5425_v36, 16  ;;  %v2973_v29 = vadd.f32 %v2911_v63, %v2686_v37  ;;  %v5578_v36 = vld [vmem:[%s5930_s29 + $0xc0] sm:$0xff] }
 0x242   : > { %v4226_v57 = vsel %vm4225_vm0, %v5662_v21, %v4222_v48  ;;  %5669 = vpow2.f32 %v5457_v24  ;;  %5153 = vmatmul.msk.bf16.gmra.mxu1 %vm458_vm2, %v2532_v30  ;;  %v3676_v49 = vrot.slane %v3674_v7, 5  ;;  %vm4238_vm1 = vweird.f32 %v7034_v60 }
 0x243   : > { %v7062_v47 = vpop.f32.mrf.mxu0  ;;  %v5666_v0 = vpop.eup %5665  ;;  %v4231_v19 = vsel %vm7049_vm15, %v4230_v44, %v4226_v57  ;;  %v3680_v11 = vrot.slane %v3678_v53, 4  ;;  %v3672_v21 = vrot.slane %v3671_v58, 4  ;;  %v3260_v46 = vadd.f32 %v3198_v51, %v2973_v29 }
 0x244   : > { %v4586_v5 = vmul.f32 %v4231_v19, %v6950_v10  ;;  %v7067_v33 = vadd.f32 1.0, %v5666_v0  ;;  %v3686_v4 = vrot.slane %v3684_v61, 5  ;;  %vm7072_vm3 = vcmp.eq.f32.partialorder %v4242_v38, 8.507059e+37  ;;  %v7516_v19 = vld [vmem:[#allocation5_spill] sm:$0xff] }
 0x245   : > { %v5668_v40 = vpop.eup %5667  ;;  %v3681_v25 = vor.u32 %v3680_v11, %v3676_v49  ;;  %v4244_v10 = vand.u32 2147483648, %v7034_v60  ;;  %v3677_v22 = vsel %vm5983_vm5, %v3672_v21, %v3676_v49  ;;  %v2687_v20 = vadd.f32 %v2626_v43, %v6330_v59  ;;  %v2098_v11 = vld [vmem:[%s6000_s9 + $0xb8] sm:$0xf]  ;;  %v2099_v21 = vld [vmem:[%s6000_s9 + $0xbc] sm:$0x1] }
 0x246   : > { %v4618_v42 = vpack.c.bf16 %v4586_v5, %v4586_v5  ;;  %v4234_v50 = vmul.f32 %v5668_v40, %v7034_v60  ;;  %5671 = vrcp.f32 %v7067_v33  ;;  %v2913_v41 = vpop.f32.mrf.mxu2  ;;  %vm4239_vm4 = vweird.f32 %v5668_v40 }
 0x247   : > { %v3682_v2 = vrot.slane %v3681_v25, 4  ;;  %v3914_v52 = vadd.f32 %v7027_v31, %v3260_v46  ;;  %v4257_v26 = vand.u32 2147483647, %v7067_v33  ;;  %v4259_v6 = vand.u32 2147483648, %v7067_v33  ;;  %vm4240_vm7 = vmor %vm4238_vm1, %vm4239_vm4 }
 0x248   : > { %v5670_v34 = vpop.eup %5669  ;;  %4651 = vst.msk [vmem:[%s6794_s17 + $0x20] sm:$0xf] %vm4642_vm9, %v4618_v42  ;;  %v4235_v39 = vsub.f32 1.0, %v4234_v50  ;;  %v2974_v59 = vadd.f32 %v2913_v41, %v2687_v20  ;;  %v2629_v44 = vpop.f32.mrf.mxu1  ;;  %v3742_v24 = vunpack.c.l.b16 %v3677_v22  ;;  %v4245_v12 = vor.u32 1.1754944e-38, %v4244_v10 }
 0x249   : > { %v3200_v14 = vpop.f32.mrf.mxu3  ;;  %v7087_v1 = vadd.f32 1.0, %v5670_v34  ;;  %v3687_v48 = vsel %vm5983_vm5, %v3682_v2, %v3686_v4  ;;  %v7093_v30 = vadd.f32 %v7042_v3, %v3914_v52  ;;  %vm4253_vm6 = vweird.f32 %v7067_v33  ;;  %v5426_v4 = vld [vmem:[%s5952_s11 + $0xc0] sm:$0xf] }
 0x24a   : > { %v4236_v63 = vmul.f32 %v5668_v40, %v4235_v39  ;;  %v2461_v51 = vshrl.u32 %v2097_v23, 16  ;;  %v3743_v7 = vunpack.c.l.b16 %v3687_v48  ;;  %v3261_v43 = vadd.f32 %v3200_v14, %v2974_v59 }
 0x24b   : > { %v7095_v31 = vpop.f32.mrf.mxu0  ;;  %5673 = vrcp.f32 %v7087_v1  ;;  %v5458_v53 = vmul.f32 -1.442695, %v7093_v30  ;;  %5267 = vmatmul.msk.bf16.gmra.mxu2 %vm458_vm2, %v5562_v15  ;;  %vm7105_vm8 = vcmp.eq.f32.partialorder %v4257_v26, 8.507059e+37  ;;  %v4260_v61 = vor.u32 1.1754944e-38, %v4259_v6 }
 0x24c   : > { %v5672_v38 = vpop.eup %5671  ;;  %v4237_v37 = vadd.f32 %v5668_v40, %v4236_v63  ;;  %v4272_v0 = vand.u32 2147483647, %v7087_v1  ;;  %v7111_v49 = vadd.f32 %v2629_v44, %v7516_v19  ;;  %v3760_v5 = vpack.c.b16 %v3743_v7, %v3742_v24  ;;  %v5427_v19 = vld [vmem:[%s5952_s11 + $0xc4] sm:$0xf] }
 0x24d   : > { %v4249_v57 = vmul.f32 %v5672_v38, %v7067_v33  ;;  %5675 = vpow2.f32 %v5458_v53  ;;  %v3915_v60 = vadd.f32 %v7062_v47, %v3261_v43  ;;  %v2463_v42 = vrot.slane %v2461_v51, 4 }
 0x24e   : > { %5380 = vmatmul.msk.bf16.gmra.mxu3 %vm458_vm2, %v5578_v36  ;;  %v4241_v29 = vsel %vm4240_vm7, %v5668_v40, %v4237_v37  ;;  %v2464_v50 = vshll.u32 %v2097_v23, 16  ;;  %v7120_v10 = vpop.f32.mrf.mxu2  ;;  %5444 = vmatmul.msk.bf16.gmra.mxu0 %vm458_vm2, %v3760_v5  ;;  %v2470_v20 = vshll.u32 %v2098_v11, 16  ;;  %v2474_v41 = vshrl.u32 %v2098_v11, 16 }
 0x24f   : > { %v4246_v25 = vsel %vm7072_vm3, %v4245_v12, %v4241_v29  ;;  %v4250_v46 = vsub.f32 1.0, %v4249_v57  ;;  %v7125_v40 = vadd.f32 %v7042_v3, %v3915_v60  ;;  %vm4254_vm10 = vweird.f32 %v5672_v38 }
 0x250   : > { %v4587_v22 = vmul.f32 %v4246_v25, %v6987_v27  ;;  %v2466_v39 = vrot.slane %v2464_v50, 5  ;;  %v2480_v23 = vshll.u32 %v2099_v21, 16  ;;  %v7129_v2 = vpop.f32.mrf.mxu1  ;;  %v3689_v15 = vshrl.u32 %v5426_v4, 16  ;;  %vm4255_vm11 = vmor %vm4253_vm6, %vm4254_vm10 }
 0x251   : > { %v7127_v47 = vpop.f32.mrf.mxu3  ;;  %v5674_v34 = vpop.eup %5673  ;;  %v4251_v16 = vmul.f32 %v5672_v38, %v4250_v46  ;;  %v5459_v14 = vmul.f32 -1.442695, %v7125_v40  ;;  %v2472_v44 = vrot.slane %v2470_v20, 5  ;;  %v2476_v36 = vrot.slane %v2474_v41, 4  ;;  %v5428_v41 = vld [vmem:[%s5952_s11 + $0xc8] sm:$0x1] }
 0x252   : > { %v4619_v52 = vpack.c.bf16 %v4587_v22, %v4587_v22  ;;  %v4264_v27 = vmul.f32 %v5674_v34, %v7087_v1  ;;  %v2467_v59 = vor.u32 %v2466_v39, %v2463_v42  ;;  %vm4269_vm12 = vweird.f32 %v5674_v34 }
 0x253   : > { %v7133_v26 = vpop.f32.mrf.mxu0  ;;  %v4252_v6 = vadd.f32 %v5672_v38, %v4251_v16  ;;  %v5676_v63 = vpop.eup %5675  ;;  %v4274_v24 = vand.u32 2147483648, %v7087_v1  ;;  %5677 = vpow2.f32 %v5459_v14  ;;  %v2477_v7 = vor.u32 %v2476_v36, %v2472_v44 }
 0x254   : > { %4652 = vst.msk [vmem:[%s6794_s17 + $0x24] sm:$0xf] %vm4642_vm9, %v4619_v52  ;;  %v4265_v48 = vsub.f32 1.0, %v4264_v27  ;;  %v7141_v51 = vadd.f32 1.0, %v5676_v63  ;;  %v2468_v37 = vrot.slane %v2467_v59, 4  ;;  %v2482_v57 = vrot.slane %v2480_v23, 5 }
 0x255   : > { %v4256_v12 = vsel %vm4255_vm11, %v5672_v38, %v4252_v6  ;;  %v3692_v11 = vshll.u32 %v5426_v4, 16  ;;  %vm4268_vm13 = vweird.f32 %v7087_v1  ;;  %v3691_v29 = vrot.slane %v3689_v15, 4 }
 0x256   : > { %v4261_v53 = vsel %vm7105_vm8, %v4260_v61, %v4256_v12  ;;  %v4266_v43 = vmul.f32 %v5674_v34, %v4265_v48  ;;  %5679 = vrcp.f32 %v7141_v51  ;;  %v2918_v5 = vpop.f32.mrf.mxu2  ;;  %vm7149_vm14 = vcmp.eq.f32.partialorder %v4272_v0, 8.507059e+37  ;;  %vm4270_vm15 = vmor %vm4268_vm13, %vm4269_vm12 }
 0x257   : > { %v4588_v33 = vmul.f32 %v4261_v53, %v7021_v9  ;;  %v2473_v58 = vsel %vm5983_vm5, %v2468_v37, %v2472_v44  ;;  %v2478_v61 = vrot.slane %v2477_v7, 4  ;;  %v4275_v1 = vor.u32 1.1754944e-38, %v4274_v24 }
 0x258   : > { %v4267_v38 = vadd.f32 %v5674_v34, %v4266_v43  ;;  %v3694_v25 = vrot.slane %v3692_v11, 5  ;;  %v3698_v46 = vshll.u32 %v5427_v19, 16  ;;  %v2634_v42 = vpop.f32.mrf.mxu1  ;;  %v4287_v0 = vand.u32 2147483647, %v7141_v51  ;;  %v7521_v43 = vld [vmem:[#allocation6_spill] sm:$0xff] }
 0x259   : > { %v7155_v21 = vpop.f32.mrf.mxu3  ;;  %v4620_v9 = vpack.c.bf16 %v4588_v33, %v4588_v33  ;;  %v5678_v50 = vpop.eup %5677  ;;  %v2483_v22 = vsel %vm5983_vm5, %v2478_v61, %v2482_v57  ;;  %v2516_v20 = vunpack.c.l.b16 %v2473_v58  ;;  %v3702_v15 = vshrl.u32 %v5427_v19, 16 }
 0x25a   : > { %v4271_v4 = vsel %vm4270_vm15, %v5674_v34, %v4267_v38  ;;  %v7166_v23 = vadd.f32 1.0, %v5678_v50  ;;  %v2517_v52 = vunpack.c.l.b16 %v2483_v22  ;;  %v3695_v27 = vor.u32 %v3694_v25, %v3691_v29 }
 0x25b   : > { %v3862_v16 = vpop.f32.mrf.mxu0  ;;  %4653 = vst.msk [vmem:[%s6794_s17 + $0x28] sm:$0xf] %vm4642_vm9, %v4620_v9  ;;  %v4276_v39 = vsel %vm7149_vm14, %v4275_v1, %v4271_v4  ;;  %v4289_v34 = vand.u32 2147483648, %v7141_v51  ;;  %v2975_v6 = vadd.f32 %v7120_v10, %v7111_v49  ;;  %v3700_v44 = vrot.slane %v3698_v46, 5 }
 0x25c   : > { %v4589_v14 = vmul.f32 %v4276_v39, %v7045_v32  ;;  %v5680_v59 = vpop.eup %5679  ;;  %5681 = vrcp.f32 %v7166_v23  ;;  %v3708_v36 = vshll.u32 %v5428_v41, 16  ;;  %v2533_v24 = vpack.c.b16 %v2517_v52, %v2516_v20 }
 0x25d   : > { %v4279_v48 = vmul.f32 %v5680_v59, %v7141_v51  ;;  %vm4283_vm0 = vweird.f32 %v7141_v51  ;;  %vm7175_vm1 = vcmp.eq.f32.partialorder %v4287_v0, 8.507059e+37  ;;  %v3696_v12 = vrot.slane %v3695_v27, 4 }
 0x25e   : > { %v4621_v63 = vpack.c.bf16 %v4589_v14, %v4589_v14  ;;  %v3704_v37 = vrot.slane %v3702_v15, 4  ;;  %v2921_v7 = vpop.f32.mrf.mxu2  ;;  %v4290_v10 = vor.u32 1.1754944e-38, %v4289_v34  ;;  %5154 = vmatmul.msk.bf16.gmra.mxu1 %vm458_vm2, %v2533_v24  ;;  %v3262_v53 = vadd.f32 %v7127_v47, %v2975_v6 }
 0x25f   : > { %v4280_v49 = vsub.f32 1.0, %v4279_v48  ;;  %v2689_v57 = vadd.f32 %v7129_v2, %v7521_v43  ;;  %v3701_v11 = vsel %vm5983_vm5, %v3696_v12, %v3700_v44  ;;  %v3710_v29 = vrot.slane %v3708_v36, 5 }
 0x260   : > { %4654 = vst.msk [vmem:[%s6794_s17 + $0x2c] sm:$0xf] %vm4642_vm9, %v4621_v63  ;;  %v3705_v33 = vor.u32 %v3704_v37, %v3700_v44  ;;  %v2690_v38 = vadd.f32 %v2634_v42, %v6380_v28  ;;  %v2636_v60 = vpop.f32.mrf.mxu1  ;;  %vm4284_vm3 = vweird.f32 %v5680_v59  ;;  %v3916_v61 = vadd.f32 %v7095_v31, %v3262_v53 }
 0x261   : > { %v3208_v19 = vpop.f32.mrf.mxu3  ;;  %v4281_v58 = vmul.f32 %v5680_v59, %v4280_v49  ;;  %v2976_v9 = vadd.f32 %v2918_v5, %v2689_v57  ;;  %v4302_v47 = vand.u32 2147483647, %v7166_v23  ;;  %v4304_v2 = vand.u32 2147483648, %v7166_v23  ;;  %vm4285_vm4 = vmor %vm4283_vm0, %vm4284_vm3 }
 0x262   : > { %v5682_v25 = vpop.eup %5681  ;;  %v3706_v46 = vrot.slane %v3705_v33, 4  ;;  %v2977_v50 = vadd.f32 %v2921_v7, %v2690_v38  ;;  %v3744_v22 = vunpack.c.l.b16 %v3701_v11  ;;  %v7193_v28 = vadd.f32 %v7042_v3, %v3916_v61 }
 0x263   : > { %v3864_v1 = vpop.f32.mrf.mxu0  ;;  %v4282_v4 = vadd.f32 %v5680_v59, %v4281_v58  ;;  %v4294_v0 = vmul.f32 %v5682_v25, %v7166_v23  ;;  %v3263_v5 = vadd.f32 %v7155_v21, %v2976_v9  ;;  %v2691_v20 = vadd.f32 %v2636_v60, %v6389_v13 }
 0x264   : > { %v3711_v31 = vsel %vm5983_vm5, %v3706_v46, %v3710_v29  ;;  %v3264_v42 = vadd.f32 %v3208_v19, %v2977_v50  ;;  %v5460_v27 = vmul.f32 -1.442695, %v7193_v28  ;;  %vm4299_vm6 = vweird.f32 %v5682_v25 }
 0x265   : > { %v4286_v41 = vsel %vm4285_vm4, %v5680_v59, %v4282_v4  ;;  %v4295_v39 = vsub.f32 1.0, %v4294_v0  ;;  %v3745_v52 = vunpack.c.l.b16 %v3711_v31  ;;  %v3917_v51 = vadd.f32 %v7133_v26, %v3263_v5 }
 0x266   : > { %v4291_v14 = vsel %vm7175_vm1, %v4290_v10, %v4286_v41  ;;  %v3918_v34 = vadd.f32 %v3862_v16, %v3264_v42  ;;  %v2923_v15 = vpop.f32.mrf.mxu2  ;;  %5683 = vpow2.f32 %v5460_v27  ;;  %vm4298_vm5 = vweird.f32 %v7166_v23 }
 0x267   : > { %v4590_v54 = vmul.f32 %v4291_v14, %v7093_v30  ;;  %v4296_v6 = vmul.f32 %v5682_v25, %v4295_v39  ;;  %v3761_v21 = vpack.c.b16 %v3745_v52, %v3744_v22  ;;  %v7207_v59 = vadd.f32 %v7042_v3, %v3917_v51  ;;  %vm4300_vm7 = vmor %vm4298_vm5, %vm4299_vm6 }
 0x268   : > { %v7210_v44 = vadd.f32 %v7042_v3, %v3918_v34  ;;  %v2978_v36 = vadd.f32 %v2923_v15, %v2691_v20  ;;  %v2639_v63 = vpop.f32.mrf.mxu1  ;;  %v4305_v26 = vor.u32 1.1754944e-38, %v4304_v2  ;;  %vm4303_vm8 = vcmp.eq.f32.partialorder %v4302_v47, 8.507059e+37 }
 0x269   : > { %v3210_v13 = vpop.f32.mrf.mxu3  ;;  %v4622_v48 = vpack.c.bf16 %v4590_v54, %v4590_v54  ;;  %v4297_v24 = vadd.f32 %v5682_v25, %v4296_v6  ;;  %5445 = vmatmul.msk.bf16.gmra.mxu0 %vm458_vm2, %v3761_v21  ;;  %v5461_v16 = vmul.f32 -1.442695, %v7207_v59  ;;  %v2692_v53 = vadd.f32 %v2639_v63, %v6409_v55 }
 0x26a   : > { %v5462_v32 = vmul.f32 -1.442695, %v7210_v44  ;;  %v3265_v12 = vadd.f32 %v3210_v13, %v2978_v36 }
 0x26b   : > { %v3867_v30 = vpop.f32.mrf.mxu0  ;;  %4655 = vst.msk [vmem:[%s6794_s17 + $0x30] sm:$0xf] %vm4642_vm9, %v4622_v48  ;;  %v4301_v37 = vsel %vm4300_vm7, %v5682_v25, %v4297_v24  ;;  %5685 = vpow2.f32 %v5461_v16 }
 0x26c   : > { %v4306_v7 = vsel %vm4303_vm8, %v4305_v26, %v4301_v37  ;;  %v3919_v49 = vadd.f32 %v3864_v1, %v3265_v12  ;;  %v5684_v23 = vpop.eup %5683  ;;  %5687 = vpow2.f32 %v5462_v32 }
 0x26d   : > { %v4591_v10 = vmul.f32 %v4306_v7, %v7125_v40  ;;  %v4080_v43 = vadd.f32 1.0, %v5684_v23 }
 0x26e   : > { %v7222_v57 = vadd.f32 %v7042_v3, %v3919_v49  ;;  %v2926_v19 = vpop.f32.mrf.mxu2 }
 0x26f   : > { %v4623_v11 = vpack.c.bf16 %v4591_v10, %v4591_v10  ;;  %v2979_v33 = vadd.f32 %v2926_v19, %v2692_v53  ;;  %5689 = vrcp.f32 %v4080_v43  ;;  %v4317_v47 = vand.u32 2147483647, %v4080_v43 }
 0x270   : > { %v2641_v38 = vpop.f32.mrf.mxu1  ;;  %v5463_v60 = vmul.f32 -1.442695, %v7222_v57  ;;  %v4319_v2 = vand.u32 2147483648, %v4080_v43  ;;  %vm4313_vm2 = vweird.f32 %v4080_v43 }
 0x271   : > { %v3213_v29 = vpop.f32.mrf.mxu3  ;;  %4656 = vst.msk [vmem:[%s6794_s17 + $0x34] sm:$0xf] %vm4642_vm9, %v4623_v11  ;;  %v5686_v40 = vpop.eup %5685  ;;  %v2693_v50 = vadd.f32 %v2641_v38, %v6422_v17  ;;  %vm7237_vm10 = vcmp.eq.f32.partialorder %v4317_v47, 8.507059e+37 }
 0x272   : > { %v3266_v58 = vadd.f32 %v3213_v29, %v2979_v33  ;;  %v5688_v9 = vpop.eup %5687  ;;  %v7227_v1 = vadd.f32 1.0, %v5686_v40  ;;  %5691 = vpow2.f32 %v5463_v60  ;;  %v4320_v52 = vor.u32 1.1754944e-38, %v4319_v2 }
 0x273   : > { %v3869_v61 = vpop.f32.mrf.mxu0  ;;  %v7229_v55 = vadd.f32 1.0, %v5688_v9 }
 0x274   : > { %v3920_v25 = vadd.f32 %v3867_v30, %v3266_v58  ;;  %5693 = vrcp.f32 %v7227_v1  ;;  %v4332_v14 = vand.u32 2147483647, %v7227_v1  ;;  %vm4328_vm12 = vweird.f32 %v7227_v1 }
 0x275   : > { %v5690_v46 = vpop.eup %5689  ;;  %5695 = vrcp.f32 %v7229_v55  ;;  %v4334_v6 = vand.u32 2147483648, %v7227_v1  ;;  %vm4343_vm13 = vweird.f32 %v7229_v55  ;;  %v4347_v36 = vand.u32 2147483647, %v7229_v55 }
 0x276   : > { %v2928_v4 = vpop.f32.mrf.mxu2  ;;  %v4309_v0 = vmul.f32 %v5690_v46, %v4080_v43  ;;  %v7235_v31 = vadd.f32 %v7042_v3, %v3920_v25  ;;  %vm4314_vm11 = vweird.f32 %v5690_v46  ;;  %v4349_v24 = vand.u32 2147483648, %v7229_v55 }
 0x277   : > { %v2980_v5 = vadd.f32 %v2928_v4, %v2693_v50  ;;  %vm4315_vm14 = vmor %vm4313_vm2, %vm4314_vm11  ;;  %vm7255_vm15 = vcmp.eq.f32.partialorder %v4332_v14, 8.507059e+37  ;;  %v4335_v7 = vor.u32 1.1754944e-38, %v4334_v6  ;;  %vm7265_vm3 = vcmp.eq.f32.partialorder %v4347_v36, 8.507059e+37 }
 0x278   : > { %v2644_v42 = vpop.f32.mrf.mxu1  ;;  %v5692_v20 = vpop.eup %5691  ;;  %v4310_v41 = vsub.f32 1.0, %v4309_v0  ;;  %v5464_v51 = vmul.f32 -1.442695, %v7235_v31  ;;  %v4350_v40 = vor.u32 1.1754944e-38, %v4349_v24 }
 0x279   : > { %v3215_v22 = vpop.f32.mrf.mxu3  ;;  %v7242_v17 = vadd.f32 1.0, %v5692_v20  ;;  %v2694_v30 = vadd.f32 %v2644_v42, %v6440_v18 }
 0x27a   : > { %v3267_v34 = vadd.f32 %v3215_v22, %v2980_v5  ;;  %v5694_v15 = vpop.eup %5693  ;;  %v4311_v54 = vmul.f32 %v5690_v46, %v4310_v41 }
 0x27b   : > { %v3872_v27 = vpop.f32.mrf.mxu0  ;;  %v5696_v21 = vpop.eup %5695  ;;  %v4324_v13 = vmul.f32 %v5694_v15, %v7227_v1  ;;  %5697 = vrcp.f32 %v7242_v17  ;;  %vm4329_vm0 = vweird.f32 %v5694_v15  ;;  %v4362_v2 = vand.u32 2147483647, %v7242_v17 }
 0x27c   : > { %v4312_v63 = vadd.f32 %v5690_v46, %v4311_v54  ;;  %v4339_v48 = vmul.f32 %v5696_v21, %v7229_v55  ;;  %5699 = vpow2.f32 %v5464_v51  ;;  %v3921_v32 = vadd.f32 %v3869_v61, %v3267_v34  ;;  %vm4330_vm4 = vmor %vm4328_vm12, %vm4329_vm0 }
 0x27d   : > { %v4325_v26 = vsub.f32 1.0, %v4324_v13  ;;  %vm4344_vm1 = vweird.f32 %v5696_v21  ;;  %v4364_v4 = vand.u32 2147483648, %v7242_v17  ;;  %vm4358_vm7 = vweird.f32 %v7242_v17 }
 0x27e   : > { %v2931_v12 = vpop.f32.mrf.mxu2  ;;  %v4316_v37 = vsel %vm4315_vm14, %v5690_v46, %v4312_v63  ;;  %v4340_v49 = vsub.f32 1.0, %v4339_v48  ;;  %v7262_v18 = vadd.f32 %v7042_v3, %v3921_v32  ;;  %vm4345_vm6 = vmor %vm4343_vm13, %vm4344_vm1  ;;  %vm4363_vm2 = vcmp.eq.f32.partialorder %v4362_v2, 8.507059e+37 }
 0x27f   : > { %v2981_v23 = vadd.f32 %v2931_v12, %v2694_v30  ;;  %v4321_v53 = vsel %vm7237_vm10, %v4320_v52, %v4316_v37  ;;  %v4326_v19 = vmul.f32 %v5694_v15, %v4325_v26 }
 0x280   : > { %v2646_v43 = vpop.f32.mrf.mxu1  ;;  %v4592_v11 = vmul.f32 %v4321_v53, %v7193_v28  ;;  %v4341_v33 = vmul.f32 %v5696_v21, %v4340_v49  ;;  %v5465_v9 = vmul.f32 -1.442695, %v7262_v18 }
 0x281   : > { %v3218_v10 = vpop.f32.mrf.mxu3  ;;  %v5698_v60 = vpop.eup %5697  ;;  %v4327_v58 = vadd.f32 %v5694_v15, %v4326_v19  ;;  %v2695_v39 = vadd.f32 %v2646_v43, %v6449_v56  ;;  %v4365_v56 = vor.u32 1.1754944e-38, %v4364_v4 }
 0x282   : > { %v3268_v29 = vadd.f32 %v3218_v10, %v2981_v23  ;;  %v4624_v25 = vpack.c.bf16 %v4592_v11, %v4592_v11  ;;  %v4342_v47 = vadd.f32 %v5696_v21, %v4341_v33  ;;  %v4354_v28 = vmul.f32 %v5698_v60, %v7242_v17  ;;  %v5700_v46 = vpop.eup %5699 }
 0x283   : > { %v3874_v38 = vpop.f32.mrf.mxu0  ;;  %v4331_v50 = vsel %vm4330_vm4, %v5694_v15, %v4327_v58  ;;  %5701 = vpow2.f32 %v5465_v9  ;;  %v7282_v42 = vadd.f32 1.0, %v5700_v46  ;;  %vm4359_vm5 = vweird.f32 %v5698_v60 }
 0x284   : > { %v3922_v0 = vadd.f32 %v3872_v27, %v3268_v29  ;;  %4657 = vst.msk [vmem:[%s6794_s17 + $0x38] sm:$0xf] %vm4642_vm9, %v4624_v25  ;;  %v4336_v1 = vsel %vm7255_vm15, %v4335_v7, %v4331_v50  ;;  %v4346_v22 = vsel %vm4345_vm6, %v5696_v21, %v4342_v47  ;;  %v4355_v5 = vsub.f32 1.0, %v4354_v28  ;;  %vm4360_vm8 = vmor %vm4358_vm7, %vm4359_vm5 }
 0x285   : > { %v4593_v20 = vmul.f32 %v4336_v1, %v7207_v59  ;;  %v4351_v41 = vsel %vm7265_vm3, %v4350_v40, %v4346_v22  ;;  %5703 = vrcp.f32 %v7282_v42  ;;  %v4377_v33 = vand.u32 2147483647, %v7282_v42 }
 0x286   : > { %v7288_v55 = vadd.f32 %v7042_v3, %v3922_v0  ;;  %v2933_v52 = vpop.f32.mrf.mxu2  ;;  %v4594_v27 = vmul.f32 %v4351_v41, %v7210_v44  ;;  %v4356_v14 = vmul.f32 %v5698_v60, %v4355_v5  ;;  %vm4373_vm11 = vweird.f32 %v7282_v42 }
 0x287   : > { %v4625_v34 = vpack.c.bf16 %v4593_v20, %v4593_v20  ;;  %v2982_v21 = vadd.f32 %v2933_v52, %v2695_v39  ;;  %vm4378_vm13 = vcmp.eq.f32.partialorder %v4377_v33, 8.507059e+37 }
 0x288   : > { %v5466_v59 = vmul.f32 -1.442695, %v7288_v55  ;;  %v2649_v15 = vpop.f32.mrf.mxu1  ;;  %v4626_v54 = vpack.c.bf16 %v4594_v27, %v4594_v27  ;;  %v4357_v6 = vadd.f32 %v5698_v60, %v4356_v14 }
 0x289   : > { %v3220_v51 = vpop.f32.mrf.mxu3  ;;  %v5702_v13 = vpop.eup %5701  ;;  %4658 = vst.msk [vmem:[%s6794_s17 + $0x3c] sm:$0xf] %vm4642_vm9, %v4625_v34  ;;  %v2696_v26 = vadd.f32 %v2649_v15, %v6469_v35 }
 0x28a   : > { %5705 = vpow2.f32 %v5466_v59  ;;  %4659 = vst.msk [vmem:[%s6794_s17 + $0x40] sm:$0xf] %vm4642_vm9, %v4626_v54  ;;  %v4361_v44 = vsel %vm4360_vm8, %v5698_v60, %v4357_v6  ;;  %v7299_v36 = vadd.f32 1.0, %v5702_v13  ;;  %v3269_v63 = vadd.f32 %v3220_v51, %v2982_v21 }
 0x28b   : > { %v3877_v48 = vpop.f32.mrf.mxu0  ;;  %v4366_v24 = vsel %vm4363_vm2, %v4365_v56, %v4361_v44  ;;  %v5704_v30 = vpop.eup %5703  ;;  %v7528_v56 = vld [vmem:[#allocation7_spill] sm:$0xff] }
 0x28c   : > { %v4595_v17 = vmul.f32 %v4366_v24, %v7222_v57  ;;  %5707 = vrcp.f32 %v7299_v36  ;;  %v4369_v16 = vmul.f32 %v5704_v30, %v7282_v42  ;;  %v3923_v32 = vadd.f32 %v3874_v38, %v3269_v63 }
 0x28d   : > { %v4379_v57 = vand.u32 2147483648, %v7282_v42  ;;  %vm4374_vm10 = vweird.f32 %v5704_v30  ;;  %v4394_v50 = vand.u32 2147483648, %v7299_v36  ;;  %vm4388_vm15 = vweird.f32 %v7299_v36 }
 0x28e   : > { %v2936_v12 = vpop.f32.mrf.mxu2  ;;  %v4627_v37 = vpack.c.bf16 %v4595_v17, %v4595_v17  ;;  %v4370_v10 = vsub.f32 1.0, %v4369_v16  ;;  %v7306_v53 = vadd.f32 %v7042_v3, %v3923_v32  ;;  %vm4375_vm12 = vmor %vm4373_vm11, %vm4374_vm10 }
 0x28f   : > { %v2983_v7 = vadd.f32 %v2936_v12, %v2696_v26  ;;  %v4380_v61 = vor.u32 1.1754944e-38, %v4379_v57  ;;  %v4395_v34 = vor.u32 1.1754944e-38, %v4394_v50 }
 0x290   : > { %v5706_v23 = vpop.eup %5705  ;;  %v2651_v19 = vpop.f32.mrf.mxu1  ;;  %4660 = vst.msk [vmem:[%s6794_s17 + $0x44] sm:$0xf] %vm4642_vm9, %v4627_v37  ;;  %v4371_v11 = vmul.f32 %v5704_v30, %v4370_v10  ;;  %v5467_v29 = vmul.f32 -1.442695, %v7306_v53 }
 0x291   : > { %v3223_v49 = vpop.f32.mrf.mxu3  ;;  %v7311_v43 = vadd.f32 1.0, %v5706_v23  ;;  %v2697_v9 = vadd.f32 %v2651_v19, %v6481_v8  ;;  %v4392_v8 = vand.u32 2147483647, %v7299_v36 }
 0x292   : > { %v3270_v35 = vadd.f32 %v3223_v49, %v2983_v7  ;;  %v5708_v38 = vpop.eup %5707  ;;  %v4372_v60 = vadd.f32 %v5704_v30, %v4371_v11 }
 0x293   : > { %5709 = vrcp.f32 %v7311_v43  ;;  %v4384_v58 = vmul.f32 %v5708_v38, %v7299_v36  ;;  %v3879_v25 = vpop.f32.mrf.mxu0  ;;  %vm4389_vm14 = vweird.f32 %v5708_v38  ;;  %vm4393_vm1 = vcmp.eq.f32.partialorder %v4392_v8, 8.507059e+37 }
 0x294   : > { %5711 = vpow2.f32 %v5467_v29  ;;  %v3924_v40 = vadd.f32 %v3877_v48, %v3270_v35  ;;  %v4376_v47 = vsel %vm4375_vm12, %v5704_v30, %v4372_v60  ;;  %vm4390_vm0 = vmor %vm4388_vm15, %vm4389_vm14  ;;  %v4407_v6 = vand.u32 2147483647, %v7311_v43 }
 0x295   : > { %v4385_v28 = vsub.f32 1.0, %v4384_v58  ;;  %v4381_v46 = vsel %vm4378_vm13, %v4380_v61, %v4376_v47  ;;  %v4409_v13 = vand.u32 2147483648, %v7311_v43  ;;  %vm4403_vm4 = vweird.f32 %v7311_v43 }
 0x296   : > { %v2938_v2 = vpop.f32.mrf.mxu2  ;;  %v7321_v4 = vadd.f32 %v7042_v3, %v3924_v40  ;;  %v4596_v22 = vmul.f32 %v4381_v46, %v7235_v31  ;;  %vm4408_vm5 = vcmp.eq.f32.partialorder %v4407_v6, 8.507059e+37 }
 0x297   : > { %v2984_v0 = vadd.f32 %v2938_v2, %v2697_v9  ;;  %v4386_v5 = vmul.f32 %v5708_v38, %v4385_v28 }
 0x298   : > { %v2654_v42 = vpop.f32.mrf.mxu1  ;;  %v5468_v41 = vmul.f32 -1.442695, %v7321_v4  ;;  %v4628_v27 = vpack.c.bf16 %v4596_v22, %v4596_v22 }
 0x299   : > { %v3225_v1 = vpop.f32.mrf.mxu3  ;;  %v5710_v20 = vpop.eup %5709  ;;  %v4387_v14 = vadd.f32 %v5708_v38, %v4386_v5  ;;  %v2698_v44 = vadd.f32 %v2654_v42, %v7528_v56 }
 0x29a   : > { %v3271_v39 = vadd.f32 %v3225_v1, %v2984_v0  ;;  %v5712_v52 = vpop.eup %5711  ;;  %v4399_v51 = vmul.f32 %v5710_v20, %v7311_v43  ;;  %5713 = vpow2.f32 %v5468_v41  ;;  %4661 = vst.msk [vmem:[%s6794_s17 + $0x48] sm:$0xf] %vm4642_vm9, %v4628_v27  ;;  %vm4404_vm3 = vweird.f32 %v5710_v20 }
 0x29b   : > { %v7328_v31 = vadd.f32 1.0, %v5712_v52  ;;  %v4391_v15 = vsel %vm4390_vm0, %v5708_v38, %v4387_v14  ;;  %v3882_v30 = vpop.f32.mrf.mxu0  ;;  %vm4405_vm6 = vmor %vm4403_vm4, %vm4404_vm3 }
 0x29c   : > { %v3925_v59 = vadd.f32 %v3879_v25, %v3271_v39  ;;  %v4400_v54 = vsub.f32 1.0, %v4399_v51  ;;  %v4396_v21 = vsel %vm4393_vm1, %v4395_v34, %v4391_v15 }
 0x29d   : > { %5715 = vrcp.f32 %v7328_v31  ;;  %v4597_v36 = vmul.f32 %v4396_v21, %v7262_v18  ;;  %v4410_v18 = vor.u32 1.1754944e-38, %v4409_v13  ;;  %v4424_v61 = vand.u32 2147483648, %v7328_v31 }
 0x29e   : > { %v4401_v63 = vmul.f32 %v5710_v20, %v4400_v54  ;;  %v7338_v48 = vadd.f32 %v7042_v3, %v3925_v59  ;;  %v2941_v24 = vpop.f32.mrf.mxu2  ;;  %v4422_v28 = vand.u32 2147483647, %v7328_v31  ;;  %vm4418_vm8 = vweird.f32 %v7328_v31 }
 0x29f   : > { %v2985_v17 = vadd.f32 %v2941_v24, %v2698_v44  ;;  %v4629_v16 = vpack.c.bf16 %v4597_v36, %v4597_v36  ;;  %v4425_v22 = vor.u32 1.1754944e-38, %v4424_v61 }
 0x2a0   : > { %v4402_v32 = vadd.f32 %v5710_v20, %v4401_v63  ;;  %v5469_v12 = vmul.f32 -1.442695, %v7338_v48  ;;  %v2656_v37 = vpop.f32.mrf.mxu1  ;;  %v5714_v7 = vpop.eup %5713  ;;  %vm4423_vm10 = vcmp.eq.f32.partialorder %v4422_v28, 8.507059e+37 }
 0x2a1   : > { %v3228_v26 = vpop.f32.mrf.mxu3  ;;  %4662 = vst.msk [vmem:[%s6794_s17 + $0x4c] sm:$0xf] %vm4642_vm9, %v4629_v16  ;;  %v7344_v10 = vadd.f32 1.0, %v5714_v7  ;;  %v2699_v29 = vadd.f32 %v2656_v37, %v6511_v62 }
 0x2a2   : > { %v3272_v49 = vadd.f32 %v3228_v26, %v2985_v17  ;;  %v4406_v23 = vsel %vm4405_vm6, %v5710_v20, %v4402_v32  ;;  %5717 = vpow2.f32 %v5469_v12  ;;  %v7529_v12 = vld [vmem:[#allocation8_spill] sm:$0xff] }
 0x2a3   : > { %v5716_v19 = vpop.eup %5715  ;;  %v4411_v57 = vsel %vm4408_vm5, %v4410_v18, %v4406_v23  ;;  %5719 = vrcp.f32 %v7344_v10  ;;  %v3884_v62 = vpop.f32.mrf.mxu0  ;;  %v4439_v27 = vand.u32 2147483648, %v7344_v10  ;;  %v4437_v59 = vand.u32 2147483647, %v7344_v10 }
 0x2a4   : > { %v3926_v35 = vadd.f32 %v3882_v30, %v3272_v49  ;;  %v4598_v43 = vmul.f32 %v4411_v57, %v7288_v55  ;;  %v4414_v11 = vmul.f32 %v5716_v19, %v7328_v31  ;;  %vm4419_vm7 = vweird.f32 %v5716_v19  ;;  %v7385_v49 = vld [vmem:[%s7480_s5] ss:$0 sm:$0xff] }
 0x2a5   : > { %vm4420_vm2 = vmor %vm4418_vm8, %vm4419_vm7  ;;  %vm4433_vm12 = vweird.f32 %v7344_v10  ;;  %vm4438_vm14 = vcmp.eq.f32.partialorder %v4437_v59, 8.507059e+37 }
 0x2a6   : > { %v7350_v33 = vadd.f32 %v7042_v3, %v3926_v35  ;;  %v4630_v38 = vpack.c.bf16 %v4598_v43, %v4598_v43  ;;  %v4415_v60 = vsub.f32 1.0, %v4414_v11  ;;  %v2943_v58 = vpop.f32.mrf.mxu2 }
 0x2a7   : > { %v2986_v9 = vadd.f32 %v2943_v58, %v2699_v29 }
 0x2a8   : > { %v5470_v40 = vmul.f32 -1.442695, %v7350_v33  ;;  %v5718_v47 = vpop.eup %5717  ;;  %4663 = vst.msk [vmem:[%s6794_s17 + $0x50] sm:$0xf] %vm4642_vm9, %v4630_v38  ;;  %v4416_v55 = vmul.f32 %v5716_v19, %v4415_v60  ;;  %v2659_v2 = vpop.f32.mrf.mxu1 }
 0x2a9   : > { %v3230_v25 = vpop.f32.mrf.mxu3  ;;  %v7358_v46 = vadd.f32 1.0, %v5718_v47  ;;  %v5720_v0 = vpop.eup %5719  ;;  %v2700_v39 = vadd.f32 %v2659_v2, %v6531_v45 }
 0x2aa   : > { %5721 = vpow2.f32 %v5470_v40  ;;  %v3273_v50 = vadd.f32 %v3230_v25, %v2986_v9  ;;  %v4417_v1 = vadd.f32 %v5716_v19, %v4416_v55  ;;  %v4429_v5 = vmul.f32 %v5720_v0, %v7344_v10 }
 0x2ab   : > { %5723 = vrcp.f32 %v7358_v46  ;;  %vm4434_vm11 = vweird.f32 %v5720_v0  ;;  %v4454_v32 = vand.u32 2147483648, %v7358_v46  ;;  %v4452_v18 = vand.u32 2147483647, %v7358_v46 }
 0x2ac   : > { %v4421_v8 = vsel %vm4420_vm2, %v5716_v19, %v4417_v1  ;;  %v3927_v42 = vadd.f32 %v3884_v62, %v3273_v50  ;;  %v4430_v41 = vsub.f32 1.0, %v4429_v5  ;;  %vm4435_vm13 = vmor %vm4433_vm12, %vm4434_vm11  ;;  %vm4448_vm0 = vweird.f32 %v7358_v46 }
 0x2ad   : > { %v4426_v20 = vsel %vm4423_vm10, %v4425_v22, %v4421_v8  ;;  %v4455_v38 = vor.u32 1.1754944e-38, %v4454_v32  ;;  %vm4453_vm3 = vcmp.eq.f32.partialorder %v4452_v18, 8.507059e+37 }
 0x2ae   : > { %v4599_v52 = vmul.f32 %v4426_v20, %v7306_v53  ;;  %v7367_v14 = vadd.f32 %v7042_v3, %v3927_v42  ;;  %v2946_v51 = vpop.f32.mrf.mxu2  ;;  %v4431_v31 = vmul.f32 %v5720_v0, %v4430_v41  ;;  %v4440_v3 = vor.u32 1.1754944e-38, %v4439_v27 }
 0x2af   : > { %v2987_v15 = vadd.f32 %v2946_v51, %v2700_v39 }
 0x2b0   : > { %v5722_v34 = vpop.eup %5721  ;;  %v4631_v6 = vpack.c.bf16 %v4599_v52, %v4599_v52  ;;  %v5471_v45 = vmul.f32 -1.442695, %v7367_v14  ;;  %v4432_v13 = vadd.f32 %v5720_v0, %v4431_v31  ;;  %v2661_v36 = vpop.f32.mrf.mxu1 }
 0x2b1   : > { %v3233_v54 = vpop.f32.mrf.mxu3  ;;  %v7370_v21 = vadd.f32 1.0, %v5722_v34  ;;  %v5724_v53 = vpop.eup %5723  ;;  %v2701_v37 = vadd.f32 %v2661_v36, %v7529_v12  ;;  %v7530_v34 = vld [vmem:[#allocation9_spill] sm:$0xff] }
 0x2b2   : > { %v3274_v56 = vadd.f32 %v3233_v54, %v2987_v15  ;;  %4664 = vst.msk [vmem:[%s6794_s17 + $0x54] sm:$0xf] %vm4642_vm9, %v4631_v6  ;;  %v4444_v44 = vmul.f32 %v5724_v53, %v7358_v46  ;;  %v4436_v63 = vsel %vm4435_vm13, %v5720_v0, %v4432_v13  ;;  %vm4449_vm15 = vweird.f32 %v5724_v53 }
 0x2b3   : > { %5725 = vrcp.f32 %v7370_v21  ;;  %v3887_v24 = vpop.f32.mrf.mxu0  ;;  %v4441_v30 = vsel %vm4438_vm14, %v4440_v3, %v4436_v63  ;;  %vm4450_vm1 = vmor %vm4448_vm0, %vm4449_vm15  ;;  %v4469_v55 = vand.u32 2147483648, %v7370_v21  ;;  %v4467_v46 = vand.u32 2147483647, %v7370_v21 }
 0x2b4   : > { %5727 = vpow2.f32 %v5471_v45  ;;  %v4445_v17 = vsub.f32 1.0, %v4444_v44  ;;  %v3928_v26 = vadd.f32 %v3887_v24, %v3274_v56  ;;  %v4600_v16 = vmul.f32 %v4441_v30, %v7321_v4 }
 0x2b5   : > { %vm4463_vm6 = vweird.f32 %v7370_v21  ;;  %vm4468_vm7 = vcmp.eq.f32.partialorder %v4467_v46, 8.507059e+37 }
 0x2b6   : > { %v4446_v7 = vmul.f32 %v5724_v53, %v4445_v17  ;;  %v7388_v23 = vadd.f32 %v7385_v49, %v3928_v26  ;;  %v2948_v10 = vpop.f32.mrf.mxu2  ;;  %v4632_v19 = vpack.c.bf16 %v4600_v16, %v4600_v16  ;;  %v7531_v26 = vld [vmem:[#allocation10_spill] sm:$0xff] }
 0x2b7   : > { %v2988_v4 = vadd.f32 %v2948_v10, %v2701_v37 }
 0x2b8   : > { %v4447_v35 = vadd.f32 %v5724_v53, %v4446_v7  ;;  %v5472_v43 = vmul.f32 -1.442695, %v7388_v23  ;;  %4665 = vst.msk [vmem:[%s6794_s17 + $0x58] sm:$0xf] %vm4642_vm9, %v4632_v19 }
 0x2b9   : > { %v5726_v57 = vpop.eup %5725  ;;  %v3235_v11 = vpop.f32.mrf.mxu3 }
 0x2ba   : > { %v5728_v29 = vpop.eup %5727  ;;  %v4459_v60 = vmul.f32 %v5726_v57, %v7370_v21  ;;  %v3275_v58 = vadd.f32 %v3235_v11, %v2988_v4  ;;  %v4451_v61 = vsel %vm4450_vm1, %v5724_v53, %v4447_v35  ;;  %5729 = vpow2.f32 %v5472_v43 }
 0x2bb   : > { %v4091_v40 = vadd.f32 1.0, %v5728_v29  ;;  %v4456_v9 = vsel %vm4453_vm3, %v4455_v38, %v4451_v61  ;;  %v3889_v28 = vpop.f32.mrf.mxu0  ;;  %vm4464_vm4 = vweird.f32 %v5726_v57 }
 0x2bc   : > { %v4460_v25 = vsub.f32 1.0, %v4459_v60  ;;  %v4601_v47 = vmul.f32 %v4456_v9, %v7338_v48  ;;  %v3929_v62 = vadd.f32 %v3889_v28, %v3275_v58  ;;  %vm4465_vm5 = vmor %vm4463_vm6, %vm4464_vm4  ;;  %v4470_v48 = vor.u32 1.1754944e-38, %v4469_v55 }
 0x2bd   : > { %5731 = vrcp.f32 %v4091_v40  ;;  %v4484_v54 = vand.u32 2147483648, %v4091_v40  ;;  %v4482_v53 = vand.u32 2147483647, %v4091_v40  ;;  %vm4478_vm2 = vweird.f32 %v4091_v40 }
 0x2be   : > { %v4461_v2 = vmul.f32 %v5726_v57, %v4460_v25  ;;  %v4633_v50 = vpack.c.bf16 %v4601_v47, %v4601_v47  ;;  %v7400_v22 = vadd.f32 %v7385_v49, %v3929_v62  ;;  %v2951_v8 = vpop.f32.mrf.mxu2 }
 0x2bf   : > { %v2664_v0 = vpop.f32.mrf.mxu1  ;;  %v4485_v44 = vor.u32 1.1754944e-38, %v4484_v54  ;;  %vm4483_vm11 = vcmp.eq.f32.partialorder %v4482_v53, 8.507059e+37 }
 0x2c0   : > { %v4462_v1 = vadd.f32 %v5726_v57, %v4461_v2  ;;  %v5730_v5 = vpop.eup %5729  ;;  %4666 = vst.msk [vmem:[%s6794_s17 + $0x5c] sm:$0xf] %vm4642_vm9, %v4633_v50  ;;  %v5473_v41 = vmul.f32 -1.442695, %v7400_v22  ;;  %v2702_v31 = vadd.f32 %v2664_v0, %v7530_v34 }
 0x2c1   : > { %v4092_v20 = vadd.f32 1.0, %v5730_v5  ;;  %v3238_v21 = vpop.f32.mrf.mxu3 }
 0x2c2   : > { %v4466_v42 = vsel %vm4465_vm5, %v5726_v57, %v4462_v1  ;;  %v2989_v6 = vadd.f32 %v2951_v8, %v2702_v31 }
 0x2c3   : > { %v5732_v39 = vpop.eup %5731  ;;  %v4471_v52 = vsel %vm4468_vm7, %v4470_v48, %v4466_v42  ;;  %5733 = vrcp.f32 %v4092_v20  ;;  %v4499_v18 = vand.u32 2147483648, %v4092_v20  ;;  %v4497_v4 = vand.u32 2147483647, %v4092_v20 }
 0x2c4   : > { %v4602_v27 = vmul.f32 %v4471_v52, %v7350_v33  ;;  %v4474_v51 = vmul.f32 %v5732_v39, %v4091_v40  ;;  %5735 = vpow2.f32 %v5473_v41  ;;  %vm4479_vm8 = vweird.f32 %v5732_v39 }
 0x2c5   : > { %vm4480_vm10 = vmor %vm4478_vm2, %vm4479_vm8  ;;  %v3276_v63 = vadd.f32 %v3238_v21, %v2989_v6  ;;  %vm4493_vm13 = vweird.f32 %v4092_v20  ;;  %v4500_v38 = vor.u32 1.1754944e-38, %v4499_v18  ;;  %vm4498_vm15 = vcmp.eq.f32.partialorder %v4497_v4, 8.507059e+37 }
 0x2c6   : > { %v4634_v59 = vpack.c.bf16 %v4602_v27, %v4602_v27  ;;  %v4475_v15 = vsub.f32 1.0, %v4474_v51  ;;  %v2953_v24 = vpop.f32.mrf.mxu2  ;;  %v7532_v27 = vld [vmem:[#allocation11_spill] sm:$0xff] }
 0x2c7   : > { %v2666_v13 = vpop.f32.mrf.mxu1 }
 0x2c8   : > { %4667 = vst.msk [vmem:[%s6794_s17 + $0x60] sm:$0xf] %vm4642_vm9, %v4634_v59  ;;  %v4476_v45 = vmul.f32 %v5732_v39, %v4475_v15  ;;  %v2703_v16 = vadd.f32 %v2666_v13, %v7531_v26 }
 0x2c9   : > { %v5734_v56 = vpop.eup %5733  ;;  %v3240_v29 = vpop.f32.mrf.mxu3 }
 0x2ca   : > { %v4477_v3 = vadd.f32 %v5732_v39, %v4476_v45  ;;  %v5736_v33 = vpop.eup %5735  ;;  %v4489_v36 = vmul.f32 %v5734_v56, %v4092_v20  ;;  %v2990_v10 = vadd.f32 %v2953_v24, %v2703_v16  ;;  %vm4494_vm12 = vweird.f32 %v5734_v56 }
 0x2cb   : > { %v4093_v17 = vadd.f32 1.0, %v5736_v33  ;;  %v3892_v37 = vpop.f32.mrf.mxu0  ;;  %vm4495_vm14 = vmor %vm4493_vm13, %vm4494_vm12 }
 0x2cc   : > { %v4481_v30 = vsel %vm4480_vm10, %v5732_v39, %v4477_v3  ;;  %v4490_v12 = vsub.f32 1.0, %v4489_v36  ;;  %v3930_v57 = vadd.f32 %v3892_v37, %v3276_v63 }
 0x2cd   : > { %v4486_v32 = vsel %vm4483_vm11, %v4485_v44, %v4481_v30  ;;  %5737 = vrcp.f32 %v4093_v17  ;;  %v4514_v46 = vand.u32 2147483648, %v4093_v17  ;;  %v4512_v0 = vand.u32 2147483647, %v4093_v17 }
 0x2ce   : > { %v4603_v7 = vmul.f32 %v4486_v32, %v7367_v14  ;;  %v4491_v19 = vmul.f32 %v5734_v56, %v4490_v12  ;;  %v7412_v11 = vadd.f32 %v7385_v49, %v3930_v57  ;;  %v3277_v14 = vadd.f32 %v3240_v29, %v2990_v10 }
 0x2cf   : > { %vm4508_vm1 = vweird.f32 %v4093_v17  ;;  %v4515_v8 = vor.u32 1.1754944e-38, %v4514_v46  ;;  %vm4513_vm4 = vcmp.eq.f32.partialorder %v4512_v0, 8.507059e+37 }
 0x2d0   : > { %v4635_v35 = vpack.c.bf16 %v4603_v7, %v4603_v7  ;;  %v4492_v43 = vadd.f32 %v5734_v56, %v4491_v19  ;;  %v5474_v58 = vmul.f32 -1.442695, %v7412_v11 }
 0x2d1   : > { %v3243_v59 = vpop.f32.mrf.mxu3 }
 0x2d2   : > { %4668 = vst.msk [vmem:[%s6794_s17 + $0x64] sm:$0xf] %vm4642_vm9, %v4635_v35  ;;  %v4496_v60 = vsel %vm4495_vm14, %v5734_v56, %v4492_v43  ;;  %5739 = vpow2.f32 %v5474_v58  ;;  %v7533_v56 = vld [vmem:[#allocation12_spill] sm:$0xff] }
 0x2d3   : > { %v5738_v61 = vpop.eup %5737  ;;  %v4501_v40 = vsel %vm4498_vm15, %v4500_v38, %v4496_v60  ;;  %v3894_v47 = vpop.f32.mrf.mxu0 }
 0x2d4   : > { %v4604_v9 = vmul.f32 %v4501_v40, %v7388_v23  ;;  %v4504_v25 = vmul.f32 %v5738_v61, %v4093_v17  ;;  %v3931_v55 = vadd.f32 %v3894_v47, %v3277_v14  ;;  %vm4509_vm0 = vweird.f32 %v5738_v61  ;;  %v2956_v23 = vpop.f32.mrf.mxu2 }
 0x2d5   : > { %vm4510_vm3 = vmor %vm4508_vm1, %vm4509_vm0 }
 0x2d6   : > { %v4636_v28 = vpack.c.bf16 %v4604_v9, %v4604_v9  ;;  %v4505_v2 = vsub.f32 1.0, %v4504_v25  ;;  %v7419_v62 = vadd.f32 %v7385_v49, %v3931_v55 }
 0x2d8   : > { %4669 = vst.msk [vmem:[%s6794_s17 + $0x68] sm:$0xf] %vm4642_vm9, %v4636_v28  ;;  %v4506_v50 = vmul.f32 %v5738_v61, %v4505_v2  ;;  %v5475_v1 = vmul.f32 -1.442695, %v7419_v62  ;;  %v5740_v5 = vpop.eup %5739 }
 0x2d9   : > { %v4094_v42 = vadd.f32 1.0, %v5740_v5  ;;  %v3245_v32 = vpop.f32.mrf.mxu3 }
 0x2da   : > { %v4507_v48 = vadd.f32 %v5738_v61, %v4506_v50  ;;  %5741 = vpow2.f32 %v5475_v1 }
 0x2db   : > { %v2669_v41 = vpop.f32.mrf.mxu1  ;;  %5743 = vrcp.f32 %v4094_v42  ;;  %v4527_v30 = vand.u32 2147483647, %v4094_v42  ;;  %vm4523_vm5 = vweird.f32 %v4094_v42 }
 0x2dc   : > { %v4511_v20 = vsel %vm4510_vm3, %v5738_v61, %v4507_v48  ;;  %v2704_v51 = vadd.f32 %v2669_v41, %v7532_v27  ;;  %v2958_v13 = vpop.f32.mrf.mxu2 }
 0x2dd   : > { %v4516_v39 = vsel %vm4513_vm4, %v4515_v8, %v4511_v20  ;;  %vm4528_vm8 = vcmp.eq.f32.partialorder %v4527_v30, 8.507059e+37 }
 0x2de   : > { %v4605_v52 = vmul.f32 %v4516_v39, %v7400_v22  ;;  %v2991_v31 = vadd.f32 %v2956_v23, %v2704_v51  ;;  %v4529_v22 = vand.u32 2147483648, %v4094_v42 }
 0x2e0   : > { %v4637_v34 = vpack.c.bf16 %v4605_v52, %v4605_v52  ;;  %v5742_v15 = vpop.eup %5741  ;;  %v3278_v21 = vadd.f32 %v3243_v59, %v2991_v31  ;;  %v4530_v12 = vor.u32 1.1754944e-38, %v4529_v22 }
 0x2e1   : > { %v4095_v54 = vadd.f32 1.0, %v5742_v15  ;;  %v5744_v6 = vpop.eup %5743 }
 0x2e2   : > { %4670 = vst.msk [vmem:[%s6794_s17 + $0x6c] sm:$0xf] %vm4642_vm9, %v4637_v34  ;;  %v4519_v45 = vmul.f32 %v5744_v6, %v4094_v42  ;;  %vm4524_vm6 = vweird.f32 %v5744_v6 }
 0x2e3   : > { %5745 = vrcp.f32 %v4095_v54  ;;  %v2671_v53 = vpop.f32.mrf.mxu1  ;;  %vm4525_vm7 = vmor %vm4523_vm5, %vm4524_vm6  ;;  %v4544_v35 = vand.u32 2147483648, %v4095_v54  ;;  %v4542_v38 = vand.u32 2147483647, %v4095_v54  ;;  %vm4538_vm10 = vweird.f32 %v4095_v54 }
 0x2e4   : > { %v2705_v3 = vadd.f32 %v2671_v53, %v7533_v56  ;;  %v4520_v33 = vsub.f32 1.0, %v4519_v45 }
 0x2e5   : > { %v4545_v40 = vor.u32 1.1754944e-38, %v4544_v35  ;;  %vm4543_vm12 = vcmp.eq.f32.partialorder %v4542_v38, 8.507059e+37 }
 0x2e6   : > { %v3897_v44 = vpop.f32.mrf.mxu0  ;;  %v2992_v63 = vadd.f32 %v2958_v13, %v2705_v3  ;;  %v4521_v24 = vmul.f32 %v5744_v6, %v4520_v33 }
 0x2e7   : > { %v3932_v36 = vadd.f32 %v3897_v44, %v3278_v21 }
 0x2e8   : > { %v4522_v16 = vadd.f32 %v5744_v6, %v4521_v24  ;;  %v3279_v18 = vadd.f32 %v3245_v32, %v2992_v63 }
 0x2e9   : > { %v3968_v17 = vadd.f32 %v7385_v49, %v3932_v36  ;;  %v5746_v26 = vpop.eup %5745 }
 0x2ea   : > { %v4534_v37 = vmul.f32 %v5746_v26, %v4095_v54  ;;  %v4526_v10 = vsel %vm4525_vm7, %v5744_v6, %v4522_v16  ;;  %vm4539_vm2 = vweird.f32 %v5746_v26 }
 0x2eb   : > { %v5476_v7 = vmul.f32 -1.442695, %v3968_v17  ;;  %v4531_v19 = vsel %vm4528_vm8, %v4530_v12, %v4526_v10  ;;  %vm4540_vm11 = vmor %vm4538_vm10, %vm4539_vm2 }
 0x2ec   : > { %v4535_v4 = vsub.f32 1.0, %v4534_v37  ;;  %v4606_v57 = vmul.f32 %v4531_v19, %v7412_v11 }
 0x2ed   : > { %5747 = vpow2.f32 %v5476_v7 }
 0x2ee   : > { %v3899_v43 = vpop.f32.mrf.mxu0  ;;  %v4536_v29 = vmul.f32 %v5746_v26, %v4535_v4  ;;  %v4638_v60 = vpack.c.bf16 %v4606_v57, %v4606_v57 }
 0x2ef   : > { %v3933_v14 = vadd.f32 %v3899_v43, %v3279_v18 }
 0x2f0   : > { %v4537_v58 = vadd.f32 %v5746_v26, %v4536_v29  ;;  %4671 = vst.msk [vmem:[%s6794_s17 + $0x70] sm:$0xf] %vm4642_vm9, %v4638_v60 }
 0x2f1   : > { %v3969_v61 = vadd.f32 %v7385_v49, %v3933_v14 }
 0x2f2   : > { %v4541_v25 = vsel %vm4540_vm11, %v5746_v26, %v4537_v58 }
 0x2f3   : > { %v5748_v9 = vpop.eup %5747  ;;  %v5477_v11 = vmul.f32 -1.442695, %v3969_v61  ;;  %v4546_v47 = vsel %vm4543_vm12, %v4545_v40, %v4541_v25 }
 0x2f4   : > { %v4096_v55 = vadd.f32 1.0, %v5748_v9  ;;  %v4607_v28 = vmul.f32 %v4546_v47, %v7419_v62 }
 0x2f5   : > { %5749 = vpow2.f32 %v5477_v11 }
 0x2f6   : > { %5751 = vrcp.f32 %v4096_v55  ;;  %v4639_v2 = vpack.c.bf16 %v4607_v28, %v4607_v28  ;;  %v4559_v5 = vand.u32 2147483648, %v4096_v55  ;;  %v4557_v23 = vand.u32 2147483647, %v4096_v55 }
 0x2f7   : > { %vm4553_vm14 = vweird.f32 %v4096_v55 }
 0x2f8   : > { %4672 = vst.msk [vmem:[%s6794_s17 + $0x74] sm:$0xf] %vm4642_vm9, %v4639_v2  ;;  %v4560_v62 = vor.u32 1.1754944e-38, %v4559_v5  ;;  %vm4558_vm0 = vcmp.eq.f32.partialorder %v4557_v23, 8.507059e+37 }
 0x2fb   : > { %v5750_v46 = vpop.eup %5749 }
 0x2fc   : > { %v5752_v50 = vpop.eup %5751  ;;  %v4097_v49 = vadd.f32 1.0, %v5750_v46 }
 0x2fd   : > { %v4549_v0 = vmul.f32 %v5752_v50, %v4096_v55  ;;  %vm4554_vm13 = vweird.f32 %v5752_v50 }
 0x2fe   : > { %5753 = vrcp.f32 %v4097_v49  ;;  %vm4555_vm15 = vmor %vm4553_vm14, %vm4554_vm13  ;;  %v4574_v51 = vand.u32 2147483648, %v4097_v49  ;;  %v4572_v59 = vand.u32 2147483647, %v4097_v49  ;;  %vm4568_vm3 = vweird.f32 %v4097_v49 }
 0x2ff   : > { %v4550_v1 = vsub.f32 1.0, %v4549_v0 }
 0x300   : > { %v4575_v54 = vor.u32 1.1754944e-38, %v4574_v51  ;;  %vm4573_vm6 = vcmp.eq.f32.partialorder %v4572_v59, 8.507059e+37 }
 0x301   : > { %v4551_v48 = vmul.f32 %v5752_v50, %v4550_v1 }
 0x303   : > { %v4552_v8 = vadd.f32 %v5752_v50, %v4551_v48 }
 0x304   : > { %v5754_v42 = vpop.eup %5753 }
 0x305   : > { %v4556_v20 = vsel %vm4555_vm15, %v5752_v50, %v4552_v8  ;;  %v4564_v41 = vmul.f32 %v5754_v42, %v4097_v49  ;;  %vm4569_vm1 = vweird.f32 %v5754_v42 }
 0x306   : > { %v4561_v39 = vsel %vm4558_vm0, %v4560_v62, %v4556_v20  ;;  %vm4570_vm4 = vmor %vm4568_vm3, %vm4569_vm1 }
 0x307   : > { %v4608_v52 = vmul.f32 %v4561_v39, %v3968_v17  ;;  %v4565_v27 = vsub.f32 1.0, %v4564_v41 }
 0x309   : > { %v4640_v34 = vpack.c.bf16 %v4608_v52, %v4608_v52  ;;  %v4566_v31 = vmul.f32 %v5754_v42, %v4565_v27 }
 0x30b   : > { %4673 = vst.msk [vmem:[%s6794_s17 + $0x78] sm:$0xf] %vm4642_vm9, %v4640_v34  ;;  %v4567_v15 = vadd.f32 %v5754_v42, %v4566_v31 }
 0x30d   : > { %v4571_v6 = vsel %vm4570_vm4, %v5754_v42, %v4567_v15 }
 0x30e   : > { %v4576_v21 = vsel %vm4573_vm6, %v4575_v54, %v4571_v6 }
 0x30f   : > { %v4609_v45 = vmul.f32 %v4576_v21, %v3969_v61 }
 0x311   : > { %v4641_v53 = vpack.c.bf16 %v4609_v45, %v4609_v45 }
 0x313   : > { %4674 = vst.msk [vmem:[%s6794_s17 + $0x7c] sm:$0xf] %vm4642_vm9, %v4641_v53 }
 0x314   : > { %5784 = shalt.err (!%p5781_p3)
}
 0x315   : > { %s5822_s15 = smov 64   ;;  %s5823_s17 = smov 4  }
 0x316   : > { %5584 = dma.vmem_to_hbm [thread:$0]  (%p5897_p5), %s4689_s25, 2048, %s4691_s12, %s4676_s13, %s5822_s15, %s5822_s15, %s5823_s17  }
 0x317 PF: > { %p5590_p4 = scmp.ge.s32.totalorder %s5819_s24, 2  ;;  %s4705_s26 = sand.u32 1, %s5807_s21  }
 0x318   : > { %s4706_s28 = scalar_lea.sflag [#allocation3], %s4705_s26 }
 0x319   : > { %p5587_p7 = pnand %p5590_p4, %p5901_p6 }
 0x31b   : > { %p5588_p8 = pneg %p5587_p7 }
 0x31d   : > { %5802 = dma.done.wait (%p5588_p8), %s4706_s28, 2048  }
 0x31e   : > { %5804 = vsyncadd (%p5588_p8), %s4706_s28, 4294965248  ;;  %p16_p9 = scmp.ge.s32.totalorder %s5884_s27, 4   ;;  %s7534_s21 = smov %s5811_s22 }
 0x31f   : > { %s7535_s22 = smov %s5815_s23  ;;  %s7536_s23 = smov %s5895_s30 }
 0x320   : > { %s7537_s24 = smov %s5884_s27  ;;  %18 = sbr.rel (!%p16_p9) target bundleno = 3 (0x3), region = 98 }
 0x325   :  { %4712 = vsyncpa [#allocation3], 1 }
 0x326   :  { %4714 = vsyncpa [#allocation3 + $0x1], 1 }

</bundles_post_ra>
